<compile_context>
chip_gen: v5e
topology: v5e:2x2
jax: 0.10.0
libtpu: 0.0.40
codegen_flags: <defaults>
</compile_context>

<pallas_src>
import functools

import jax
import jax.numpy as jnp
from jax import lax
from jax.experimental import pallas as pl
from jax.experimental.pallas import tpu as pltpu


# ----------------------------------------------------------------------------
# Pallas kernel: batched Chebyshev / Newton-Schulz approximate inverse,
# `pack` matrices per grid step packed block-diagonally for MXU occupancy.
# ----------------------------------------------------------------------------
def _chebyshev_inverse_kernel(a_ref, out_ref, abig_ref, abig_bf_ref, eye3_ref, *,
                              pack: int, n: int, bf16_iters: int, f32_iters: int):
    """One grid step: `pack` independent (n, n) matrices.

    a_ref      : (pack, n, n)       f32  input matrices for this grid step
    out_ref    : (n, pack*n)        f32  lane-dense packed output; column block b
                                         holds the approximate inverse of matrix b
    abig_ref   : (pack*n, pack*n)   f32  VMEM scratch, block-diagonal A
    abig_bf_ref: (pack*n, pack*n)   bf16 VMEM scratch, bf16 copy of A
    eye3_ref   : (pack*n, pack*n)   f32  VMEM scratch, 3 * I
    """
    bn = pack * n

    # ---- one-time scratch init (grid step 0 only) ---------------------------
    # Off-diagonal blocks of abig_ref are never written afterwards, so the zeros
    # persist across all subsequent grid steps; 3*I is constant.
    @pl.when(pl.program_id(0) == 0)
    def _():
        abig_ref[...] = jnp.zeros_like(abig_ref)
        row = lax.broadcasted_iota(jnp.int32, (bn, bn), 0)
        col = lax.broadcasted_iota(jnp.int32, (bn, bn), 1)
        eye3_ref[...] = jnp.where(row == col, jnp.float32(3.0), jnp.float32(0.0))

    # ---- per-step: diagonal blocks + per-block scaling alpha ----------------
    a_all = a_ref[...]                       # (pack, n, n) f32
    abs_all = jnp.abs(a_all)                 # abs computed once for all blocks
    row_idx = lax.broadcasted_iota(jnp.int32, (bn, 1), 0)
    scale = jnp.zeros((bn, 1), jnp.float32)
    for b in range(pack):                    # static, small
        abs_b = abs_all[b]
        # matrix_norm ord=1 : max column abs-sum ; ord=inf : max row abs-sum
        norm_1 = jnp.max(jnp.sum(abs_b, axis=0))
        norm_inf = jnp.max(jnp.sum(abs_b, axis=1))
        prod = norm_1 * norm_inf
        # Guard singular / non-finite blocks so NaN/Inf cannot leak into the
        # off-diagonal zeros and corrupt the OTHER matrices in this grid step.
        alpha = jnp.where((prod > 0.0) & (prod < jnp.inf), 1.0 / prod, 0.0)
        in_blk = (row_idx >= b * n) & (row_idx < (b + 1) * n)
        scale = jnp.where(in_blk, alpha, scale)
        abig_ref[pl.ds(b * n, n), pl.ds(b * n, n)] = a_all[b]

    a_big = abig_ref[...]
    # N0_b = alpha_b * A_b^T : one XLU transpose of the block-diagonal matrix,
    # scaled per row-block (off-diagonal blocks are exactly zero either way).
    n_t = a_big.T * scale                    # f32 (bn, bn)

    if bf16_iters > 0:
        abig_bf_ref[...] = a_big.astype(jnp.bfloat16)

    # ---- Newton-Schulz:  N <- N (3I - 3M + M^2),  M = A N -------------------
    # (identical in exact arithmetic to N <- N (3I - A N (3I - A N)))
    # Early iterations: bf16 MXU operands (native MXU dtype), f32 accumulation.
    # Last `f32_iters` iterations: f32 operands to restore full f32 accuracy.
    n_bf = n_t.astype(jnp.bfloat16)
    for _ in range(bf16_iters):
        m = jnp.dot(abig_bf_ref[...], n_bf, preferred_element_type=jnp.float32)
        m_bf = m.astype(jnp.bfloat16)
        p = jnp.dot(m_bf, m_bf, preferred_element_type=jnp.float32)
        t = eye3_ref[...] - 3.0 * m + p
        n_t = jnp.dot(n_bf, t.astype(jnp.bfloat16),
                      preferred_element_type=jnp.float32)
        n_bf = n_t.astype(jnp.bfloat16)

    for _ in range(f32_iters):
        m = jnp.dot(abig_ref[...], n_t, preferred_element_type=jnp.float32)
        p = jnp.dot(m, m, preferred_element_type=jnp.float32)
        n_t = jnp.dot(n_t, eye3_ref[...] - 3.0 * m + p,
                      preferred_element_type=jnp.float32)

    # ---- lane-dense packed store --------------------------------------------
    # n_t is exactly block-diagonal, so summing its `pack` row-blocks (sublane
    # slices only, no lane shuffles) yields a (n, pack*n) slab whose column
    # block b is the inverse of matrix b.
    packed = n_t[0:n, :]
    for b in range(1, pack):
        packed = packed + n_t[b * n:(b + 1) * n, :]
    out_ref[...] = packed


def _choose_pack(batch: int, n: int, device_kind: str = "") -> int:
    """Number of matrices packed block-diagonally per grid step."""
    if n > 128:
        # Dense NxN fallback.
        # TODO(synk): for very large N on v7x (64 MiB VMEM) tile the three
        # matmuls with pltpu.emit_pipeline instead of one dense block.
        return 1
    kind = device_kind.lower()
    wide_mxu = ("v6" in kind) or ("v7" in kind)   # 256-wide MXU generations
    target_bn = 256 if wide_mxu else 128          # v5e and older: 128-wide MXU
    max_pack = max(1, target_bn // n)
    # Largest pack whose packed width is a multiple of 128 lanes -> the
    # (n, pack*n) output store stays unmasked / full-lane.
    pack = next((p for p in range(max_pack, 0, -1) if (p * n) % 128 == 0),
                max_pack)
    if "v7" in kind:
        # v7x has 2 TensorCores: prefer >= 2 grid steps (so the "parallel" grid
        # axis can shard across cores) when the batch allows, while keeping the
        # output lane-dense.
        for p in range(pack, 0, -1):
            if (p * n) % 128 == 0 and batch > p:
                pack = p
                break
    return pack


def chebyshev_inverse_3d(a: jax.Array, iterations: int = 10, f32_tail: int = 2,
                         vmem_limit_bytes: int = 32 * 1024 * 1024) -> jax.Array:
    """Batched approximate matrix inverse, mirroring
    VEGVISIRModelClass.chebyshev_inverse_3d.

    a: (B, N, N) float32
    returns: (B, N, N) float32 approximation of a^{-1} per batch element.
    """
    B, N, N2 = a.shape
    assert N == N2, "matrices must be square"
    a = a.astype(jnp.float32)

    try:
        device_kind = jax.devices()[0].device_kind
    except Exception:  # pragma: no cover - conservative fallback
        device_kind = ""
    pack = _choose_pack(B, N, device_kind)

    b_pad = -(-B // pack) * pack
    if b_pad != B:
        # Pad the batch with identity matrices (their Newton-Schulz iteration is
        # trivially stable); padded results are sliced off below.
        eye_pad = jnp.broadcast_to(jnp.eye(N, dtype=jnp.float32),
                                   (b_pad - B, N, N))
        a_in = jnp.concatenate([a, eye_pad], axis=0)
    else:
        a_in = a
    num_blocks = b_pad // pack
    bn = pack * N

    f32_iters = min(iterations, max(0, f32_tail))
    bf16_iters = iterations - f32_iters

    kernel = functools.partial(_chebyshev_inverse_kernel, pack=pack, n=N,
                               bf16_iters=bf16_iters, f32_iters=f32_iters)

    out_packed = pl.pallas_call(
        kernel,
        out_shape=jax.ShapeDtypeStruct((num_blocks, N, bn), jnp.float32),
        grid_spec=pltpu.PrefetchScalarGridSpec(
            num_scalar_prefetch=0,
            grid=(num_blocks,),
            in_specs=[
                pl.BlockSpec((pack, N, N), lambda g: (g, 0, 0)),
            ],
            out_specs=pl.BlockSpec((pl.Squeezed(), N, bn), lambda g: (g, 0, 0)),
            scratch_shapes=[
                pltpu.VMEM((bn, bn), jnp.float32),    # block-diagonal A (f32)
                pltpu.VMEM((bn, bn), jnp.bfloat16),   # block-diagonal A (bf16)
                pltpu.VMEM((bn, bn), jnp.float32),    # 3 * I
            ],
        ),
        compiler_params=pltpu.CompilerParams(
            dimension_semantics=("parallel",),
            vmem_limit_bytes=vmem_limit_bytes,
        ),
        cost_estimate=pl.CostEstimate(
            flops=2 * num_blocks * iterations * 3 * bn ** 3,
            transcendentals=0,
            bytes_accessed=(b_pad * N * N + num_blocks * N * bn) * 4,
        ),
    )(a_in)

    # Un-pack the lane-dense slabs (layout plumbing only):
    # (num_blocks, N, pack*N) -> (num_blocks, N, pack, N) -> (B_pad, N, N)
    out = (out_packed.reshape(num_blocks, N, pack, N)
           .transpose(0, 2, 1, 3)
           .reshape(b_pad, N, N))
    return out[:B]


# Pure-JAX reference (direct transcription of the torch method) for sanity check.
def _chebyshev_inverse_3d_ref(a, iterations=10):
    abs_a = jnp.abs(a)
    norm_1 = jnp.max(jnp.sum(abs_a, axis=1), axis=-1)      # (B,) max col abs-sum
    norm_inf = jnp.max(jnp.sum(abs_a, axis=2), axis=-1)    # (B,) max row abs-sum
    alpha = 1.0 / (norm_1 * norm_inf)
    n_t = alpha[:, None, None] * jnp.transpose(a, (0, 2, 1))
    eye = jnp.eye(a.shape[1], dtype=a.dtype)[None]
    for _ in range(iterations):
        a_nt = jnp.matmul(a, n_t)
        n_t = jnp.matmul(n_t, 3.0 * eye - jnp.matmul(a_nt, 3.0 * eye - a_nt))
    return n_t


# TODO(synk): conditional_sampling's MultivariateNormal .sample() (stochastic
# draw), torch.save/load checkpointing and nn.Parameter bookkeeping have no
# Pallas equivalent and are intentionally not translated; the deterministic
# inverse hot-path above is.


if __name__ == "__main__":
    key = jax.random.PRNGKey(0)

    # Shapes consistent with conditional_sampling usage:
    #   batch dim = z_dim, matrix size = n_generated.
    z_dim = 4          # model_load.args.z_dim
    n_generated = 32   # number of generated sequences

    # Well-conditioned SPD-ish matrices so the Chebyshev iteration converges in
    # float32 (as it would for z_scales * I in the real model).
    r = jax.random.normal(key, (z_dim, n_generated, n_generated), dtype=jnp.float32)
    a = (
        jnp.matmul(r, jnp.transpose(r, (0, 2, 1))) * 0.05
        + jnp.eye(n_generated, dtype=jnp.float32)[None] * float(n_generated)
    )

    out = chebyshev_inverse_3d(a, iterations=10)
    out = jax.block_until_ready(out)

    ref = _chebyshev_inverse_3d_ref(a, iterations=10)
    assert out.shape == (z_dim, n_generated, n_generated)
    assert jnp.all(jnp.isfinite(out))
    assert jnp.allclose(out, ref, atol=1e-4, rtol=1e-4)

    # Second case exercising batch padding + (on 128-wide-MXU / v7x configs) a
    # multi-step grid.
    r2 = jax.random.normal(jax.random.PRNGKey(1), (5, 32, 32), dtype=jnp.float32)
    a2 = (
        jnp.matmul(r2, jnp.transpose(r2, (0, 2, 1))) * 0.05
        + jnp.eye(32, dtype=jnp.float32)[None] * 32.0
    )
    out2 = jax.block_until_ready(chebyshev_inverse_3d(a2, iterations=10))
    ref2 = _chebyshev_inverse_3d_ref(a2, iterations=10)
    assert out2.shape == (5, 32, 32)
    assert jnp.all(jnp.isfinite(out2))
    assert jnp.allclose(out2, ref2, atol=1e-4, rtol=1e-4)

    print("KERNEL_OK")
</pallas_src>

<mosaic_0001>
module attributes {stable_mosaic.version = 11 : i64} {
  func.func @_chebyshev_inverse_kernel(%arg0: i32, %arg1: memref<4x32x32xf32, #tpu.memory_space<vmem>>, %arg2: memref<1x32x128xf32, #tpu.memory_space<vmem>>, %arg3: memref<128x128xf32, #tpu.memory_space<vmem>>, %arg4: memref<128x128xbf16, #tpu.memory_space<vmem>>, %arg5: memref<128x128xf32, #tpu.memory_space<vmem>>) attributes {dimension_semantics = [#tpu.dimension_semantics<parallel>], iteration_bounds = array<i64: 1>, scalar_prefetch = 0 : i64, scratch_operands = 3 : i64, tpu.core_type = #tpu.core_type<tc>, window_params = [{transform_indices = @transform_0, window_bounds = array<i64: 4, 32, 32>}, {transform_indices = @transform_1, window_bounds = array<i64: 1, 32, 128>}]} {
    %c0_i32 = arith.constant 0 : i32
    %0 = arith.cmpi eq, %arg0, %c0_i32 : i32
    %1 = arith.extui %0 : i1 to i32
    %c0_i32_0 = arith.constant 0 : i32
    %2 = arith.cmpi ne, %1, %c0_i32_0 : i32
    scf.if %2 {
      %cst_131 = arith.constant 0.000000e+00 : f32
      %249 = vector.broadcast %cst_131 : f32 to vector<128x128xf32>
      %c0_132 = arith.constant 0 : index
      %c0_133 = arith.constant 0 : index
      %250 = vector.load %arg3[%c0_132, %c0_133] : memref<128x128xf32, #tpu.memory_space<vmem>>, vector<128x128xf32>
      tpu.vector_store %arg3[%c0_132, %c0_133], %249 {strides = array<i32>} : memref<128x128xf32, #tpu.memory_space<vmem>>, vector<128x128xf32>,
      %251 = tpu.iota {dimensions = array<i32: 0>} : vector<128x128xi32>
      %252 = tpu.iota {dimensions = array<i32: 1>} : vector<128x128xi32>
      %253 = arith.cmpi eq, %251, %252 : vector<128x128xi32>
      %cst_134 = arith.constant 3.000000e+00 : f32
      %cst_135 = arith.constant 0.000000e+00 : f32
      %254 = vector.broadcast %cst_134 : f32 to vector<128x128xf32>
      %255 = vector.broadcast %cst_135 : f32 to vector<128x128xf32>
      %256 = arith.select %253, %254, %255 : vector<128x128xi1>, vector<128x128xf32>
      %c0_136 = arith.constant 0 : index
      %c0_137 = arith.constant 0 : index
      %257 = vector.load %arg5[%c0_136, %c0_137] : memref<128x128xf32, #tpu.memory_space<vmem>>, vector<128x128xf32>
      tpu.vector_store %arg5[%c0_136, %c0_137], %256 {strides = array<i32>} : memref<128x128xf32, #tpu.memory_space<vmem>>, vector<128x128xf32>,
    } else {
    }
    %c0 = arith.constant 0 : index
    %c0_1 = arith.constant 0 : index
    %c0_2 = arith.constant 0 : index
    %3 = vector.load %arg1[%c0, %c0_1, %c0_2] : memref<4x32x32xf32, #tpu.memory_space<vmem>>, vector<4x32x32xf32>
    %4 = math.absf %3 : vector<4x32x32xf32>
    %5 = tpu.iota {dimensions = array<i32: 0>} : vector<128x1xi32>
    %cst = arith.constant 0.000000e+00 : f32
    %6 = vector.broadcast %cst : f32 to vector<128x1xf32>
    %7 = vector.extract_strided_slice %4 {offsets = [0, 0, 0], sizes = [1, 32, 32], strides = [1, 1, 1]} : vector<4x32x32xf32> to vector<1x32x32xf32>
    %8 = vector.shape_cast %7 : vector<1x32x32xf32> to vector<32x32xf32>
    %cst_3 = arith.constant dense<0.000000e+00> : vector<32xf32>
    %9 = vector.multi_reduction <add>, %8, %cst_3 [0] : vector<32x32xf32> to vector<32xf32>
    %10 = vector.shape_cast %9 : vector<32xf32> to vector<1x32xf32>
    %cst_4 = arith.constant dense<0xFF800000> : vector<1xf32>
    %11 = vector.multi_reduction <maximumf>, %10, %cst_4 [1] : vector<1x32xf32> to vector<1xf32>
    %12 = vector.shape_cast %11 : vector<1xf32> to vector<1x1xf32>
    %13 = vector.extract %12[0, 0] : f32 from vector<1x1xf32>
    %cst_5 = arith.constant dense<0.000000e+00> : vector<32xf32>
    %14 = vector.multi_reduction <add>, %8, %cst_5 [1] : vector<32x32xf32> to vector<32xf32>
    %15 = vector.shape_cast %14 : vector<32xf32> to vector<1x32xf32>
    %cst_6 = arith.constant dense<0xFF800000> : vector<1xf32>
    %16 = vector.multi_reduction <maximumf>, %15, %cst_6 [1] : vector<1x32xf32> to vector<1xf32>
    %17 = vector.shape_cast %16 : vector<1xf32> to vector<1x1xf32>
    %18 = vector.extract %17[0, 0] : f32 from vector<1x1xf32>
    %19 = arith.mulf %13, %18 : f32
    %cst_7 = arith.constant 0.000000e+00 : f32
    %20 = arith.cmpf ogt, %19, %cst_7 : f32
    %cst_8 = arith.constant 0x7F800000 : f32
    %21 = arith.cmpf olt, %19, %cst_8 : f32
    %22 = arith.andi %20, %21 : i1
    %cst_9 = arith.constant 1.000000e+00 : f32
    %23 = arith.divf %cst_9, %19 : f32
    %cst_10 = arith.constant 0.000000e+00 : f32
    %24 = arith.select %22, %23, %cst_10 : f32
    %c0_i32_11 = arith.constant 0 : i32
    %25 = vector.broadcast %c0_i32_11 : i32 to vector<128x1xi32>
    %26 = arith.cmpi sge, %5, %25 : vector<128x1xi32>
    %c32_i32 = arith.constant 32 : i32
    %27 = vector.broadcast %c32_i32 : i32 to vector<128x1xi32>
    %28 = arith.cmpi slt, %5, %27 : vector<128x1xi32>
    %29 = arith.andi %26, %28 : vector<128x1xi1>
    %30 = vector.broadcast %24 : f32 to vector<128x1xf32>
    %31 = arith.select %29, %30, %6 : vector<128x1xi1>, vector<128x1xf32>
    %32 = vector.extract_strided_slice %3 {offsets = [0, 0, 0], sizes = [1, 32, 32], strides = [1, 1, 1]} : vector<4x32x32xf32> to vector<1x32x32xf32>
    %33 = vector.shape_cast %32 : vector<1x32x32xf32> to vector<32x32xf32>
    %c0_12 = arith.constant 0 : index
    %c0_13 = arith.constant 0 : index
    %34 = vector.load %arg3[%c0_12, %c0_13] : memref<128x128xf32, #tpu.memory_space<vmem>>, vector<32x32xf32>
    tpu.vector_store %arg3[%c0_12, %c0_13], %33 {strides = array<i32>} : memref<128x128xf32, #tpu.memory_space<vmem>>, vector<32x32xf32>,
    %35 = vector.extract_strided_slice %4 {offsets = [1, 0, 0], sizes = [1, 32, 32], strides = [1, 1, 1]} : vector<4x32x32xf32> to vector<1x32x32xf32>
    %36 = vector.shape_cast %35 : vector<1x32x32xf32> to vector<32x32xf32>
    %cst_14 = arith.constant dense<0.000000e+00> : vector<32xf32>
    %37 = vector.multi_reduction <add>, %36, %cst_14 [0] : vector<32x32xf32> to vector<32xf32>
    %38 = vector.shape_cast %37 : vector<32xf32> to vector<1x32xf32>
    %cst_15 = arith.constant dense<0xFF800000> : vector<1xf32>
    %39 = vector.multi_reduction <maximumf>, %38, %cst_15 [1] : vector<1x32xf32> to vector<1xf32>
    %40 = vector.shape_cast %39 : vector<1xf32> to vector<1x1xf32>
    %41 = vector.extract %40[0, 0] : f32 from vector<1x1xf32>
    %cst_16 = arith.constant dense<0.000000e+00> : vector<32xf32>
    %42 = vector.multi_reduction <add>, %36, %cst_16 [1] : vector<32x32xf32> to vector<32xf32>
    %43 = vector.shape_cast %42 : vector<32xf32> to vector<1x32xf32>
    %cst_17 = arith.constant dense<0xFF800000> : vector<1xf32>
    %44 = vector.multi_reduction <maximumf>, %43, %cst_17 [1] : vector<1x32xf32> to vector<1xf32>
    %45 = vector.shape_cast %44 : vector<1xf32> to vector<1x1xf32>
    %46 = vector.extract %45[0, 0] : f32 from vector<1x1xf32>
    %47 = arith.mulf %41, %46 : f32
    %cst_18 = arith.constant 0.000000e+00 : f32
    %48 = arith.cmpf ogt, %47, %cst_18 : f32
    %cst_19 = arith.constant 0x7F800000 : f32
    %49 = arith.cmpf olt, %47, %cst_19 : f32
    %50 = arith.andi %48, %49 : i1
    %cst_20 = arith.constant 1.000000e+00 : f32
    %51 = arith.divf %cst_20, %47 : f32
    %cst_21 = arith.constant 0.000000e+00 : f32
    %52 = arith.select %50, %51, %cst_21 : f32
    %c32_i32_22 = arith.constant 32 : i32
    %53 = vector.broadcast %c32_i32_22 : i32 to vector<128x1xi32>
    %54 = arith.cmpi sge, %5, %53 : vector<128x1xi32>
    %c64_i32 = arith.constant 64 : i32
    %55 = vector.broadcast %c64_i32 : i32 to vector<128x1xi32>
    %56 = arith.cmpi slt, %5, %55 : vector<128x1xi32>
    %57 = arith.andi %54, %56 : vector<128x1xi1>
    %58 = vector.broadcast %52 : f32 to vector<128x1xf32>
    %59 = arith.select %57, %58, %31 : vector<128x1xi1>, vector<128x1xf32>
    %60 = vector.extract_strided_slice %3 {offsets = [1, 0, 0], sizes = [1, 32, 32], strides = [1, 1, 1]} : vector<4x32x32xf32> to vector<1x32x32xf32>
    %61 = vector.shape_cast %60 : vector<1x32x32xf32> to vector<32x32xf32>
    %c32 = arith.constant 32 : index
    %c32_23 = arith.constant 32 : index
    %62 = vector.load %arg3[%c32, %c32_23] : memref<128x128xf32, #tpu.memory_space<vmem>>, vector<32x32xf32>
    tpu.vector_store %arg3[%c32, %c32_23], %61 {strides = array<i32>} : memref<128x128xf32, #tpu.memory_space<vmem>>, vector<32x32xf32>,
    %63 = vector.extract_strided_slice %4 {offsets = [2, 0, 0], sizes = [1, 32, 32], strides = [1, 1, 1]} : vector<4x32x32xf32> to vector<1x32x32xf32>
    %64 = vector.shape_cast %63 : vector<1x32x32xf32> to vector<32x32xf32>
    %cst_24 = arith.constant dense<0.000000e+00> : vector<32xf32>
    %65 = vector.multi_reduction <add>, %64, %cst_24 [0] : vector<32x32xf32> to vector<32xf32>
    %66 = vector.shape_cast %65 : vector<32xf32> to vector<1x32xf32>
    %cst_25 = arith.constant dense<0xFF800000> : vector<1xf32>
    %67 = vector.multi_reduction <maximumf>, %66, %cst_25 [1] : vector<1x32xf32> to vector<1xf32>
    %68 = vector.shape_cast %67 : vector<1xf32> to vector<1x1xf32>
    %69 = vector.extract %68[0, 0] : f32 from vector<1x1xf32>
    %cst_26 = arith.constant dense<0.000000e+00> : vector<32xf32>
    %70 = vector.multi_reduction <add>, %64, %cst_26 [1] : vector<32x32xf32> to vector<32xf32>
    %71 = vector.shape_cast %70 : vector<32xf32> to vector<1x32xf32>
    %cst_27 = arith.constant dense<0xFF800000> : vector<1xf32>
    %72 = vector.multi_reduction <maximumf>, %71, %cst_27 [1] : vector<1x32xf32> to vector<1xf32>
    %73 = vector.shape_cast %72 : vector<1xf32> to vector<1x1xf32>
    %74 = vector.extract %73[0, 0] : f32 from vector<1x1xf32>
    %75 = arith.mulf %69, %74 : f32
    %cst_28 = arith.constant 0.000000e+00 : f32
    %76 = arith.cmpf ogt, %75, %cst_28 : f32
    %cst_29 = arith.constant 0x7F800000 : f32
    %77 = arith.cmpf olt, %75, %cst_29 : f32
    %78 = arith.andi %76, %77 : i1
    %cst_30 = arith.constant 1.000000e+00 : f32
    %79 = arith.divf %cst_30, %75 : f32
    %cst_31 = arith.constant 0.000000e+00 : f32
    %80 = arith.select %78, %79, %cst_31 : f32
    %c64_i32_32 = arith.constant 64 : i32
    %81 = vector.broadcast %c64_i32_32 : i32 to vector<128x1xi32>
    %82 = arith.cmpi sge, %5, %81 : vector<128x1xi32>
    %c96_i32 = arith.constant 96 : i32
    %83 = vector.broadcast %c96_i32 : i32 to vector<128x1xi32>
    %84 = arith.cmpi slt, %5, %83 : vector<128x1xi32>
    %85 = arith.andi %82, %84 : vector<128x1xi1>
    %86 = vector.broadcast %80 : f32 to vector<128x1xf32>
    %87 = arith.select %85, %86, %59 : vector<128x1xi1>, vector<128x1xf32>
    %88 = vector.extract_strided_slice %3 {offsets = [2, 0, 0], sizes = [1, 32, 32], strides = [1, 1, 1]} : vector<4x32x32xf32> to vector<1x32x32xf32>
    %89 = vector.shape_cast %88 : vector<1x32x32xf32> to vector<32x32xf32>
    %c64 = arith.constant 64 : index
    %c64_33 = arith.constant 64 : index
    %90 = vector.load %arg3[%c64, %c64_33] : memref<128x128xf32, #tpu.memory_space<vmem>>, vector<32x32xf32>
    tpu.vector_store %arg3[%c64, %c64_33], %89 {strides = array<i32>} : memref<128x128xf32, #tpu.memory_space<vmem>>, vector<32x32xf32>,
    %91 = vector.extract_strided_slice %4 {offsets = [3, 0, 0], sizes = [1, 32, 32], strides = [1, 1, 1]} : vector<4x32x32xf32> to vector<1x32x32xf32>
    %92 = vector.shape_cast %91 : vector<1x32x32xf32> to vector<32x32xf32>
    %cst_34 = arith.constant dense<0.000000e+00> : vector<32xf32>
    %93 = vector.multi_reduction <add>, %92, %cst_34 [0] : vector<32x32xf32> to vector<32xf32>
    %94 = vector.shape_cast %93 : vector<32xf32> to vector<1x32xf32>
    %cst_35 = arith.constant dense<0xFF800000> : vector<1xf32>
    %95 = vector.multi_reduction <maximumf>, %94, %cst_35 [1] : vector<1x32xf32> to vector<1xf32>
    %96 = vector.shape_cast %95 : vector<1xf32> to vector<1x1xf32>
    %97 = vector.extract %96[0, 0] : f32 from vector<1x1xf32>
    %cst_36 = arith.constant dense<0.000000e+00> : vector<32xf32>
    %98 = vector.multi_reduction <add>, %92, %cst_36 [1] : vector<32x32xf32> to vector<32xf32>
    %99 = vector.shape_cast %98 : vector<32xf32> to vector<1x32xf32>
    %cst_37 = arith.constant dense<0xFF800000> : vector<1xf32>
    %100 = vector.multi_reduction <maximumf>, %99, %cst_37 [1] : vector<1x32xf32> to vector<1xf32>
    %101 = vector.shape_cast %100 : vector<1xf32> to vector<1x1xf32>
    %102 = vector.extract %101[0, 0] : f32 from vector<1x1xf32>
    %103 = arith.mulf %97, %102 : f32
    %cst_38 = arith.constant 0.000000e+00 : f32
    %104 = arith.cmpf ogt, %103, %cst_38 : f32
    %cst_39 = arith.constant 0x7F800000 : f32
    %105 = arith.cmpf olt, %103, %cst_39 : f32
    %106 = arith.andi %104, %105 : i1
    %cst_40 = arith.constant 1.000000e+00 : f32
    %107 = arith.divf %cst_40, %103 : f32
    %cst_41 = arith.constant 0.000000e+00 : f32
    %108 = arith.select %106, %107, %cst_41 : f32
    %c96_i32_42 = arith.constant 96 : i32
    %109 = vector.broadcast %c96_i32_42 : i32 to vector<128x1xi32>
    %110 = arith.cmpi sge, %5, %109 : vector<128x1xi32>
    %c128_i32 = arith.constant 128 : i32
    %111 = vector.broadcast %c128_i32 : i32 to vector<128x1xi32>
    %112 = arith.cmpi slt, %5, %111 : vector<128x1xi32>
    %113 = arith.andi %110, %112 : vector<128x1xi1>
    %114 = vector.broadcast %108 : f32 to vector<128x1xf32>
    %115 = arith.select %113, %114, %87 : vector<128x1xi1>, vector<128x1xf32>
    %116 = vector.extract_strided_slice %3 {offsets = [3, 0, 0], sizes = [1, 32, 32], strides = [1, 1, 1]} : vector<4x32x32xf32> to vector<1x32x32xf32>
    %117 = vector.shape_cast %116 : vector<1x32x32xf32> to vector<32x32xf32>
    %c96 = arith.constant 96 : index
    %c96_43 = arith.constant 96 : index
    %118 = vector.load %arg3[%c96, %c96_43] : memref<128x128xf32, #tpu.memory_space<vmem>>, vector<32x32xf32>
    tpu.vector_store %arg3[%c96, %c96_43], %117 {strides = array<i32>} : memref<128x128xf32, #tpu.memory_space<vmem>>, vector<32x32xf32>,
    %c0_44 = arith.constant 0 : index
    %c0_45 = arith.constant 0 : index
    %119 = vector.load %arg3[%c0_44, %c0_45] : memref<128x128xf32, #tpu.memory_space<vmem>>, vector<128x128xf32>
    %120 = tpu.transpose %119, [1, 0] : vector<128x128xf32> -> vector<128x128xf32>
    %121 = vector.broadcast %115 : vector<128x1xf32> to vector<128x128xf32>
    %122 = arith.mulf %120, %121 : vector<128x128xf32>
    %123 = arith.truncf %119 : vector<128x128xf32> to vector<128x128xbf16>
    %c0_46 = arith.constant 0 : index
    %c0_47 = arith.constant 0 : index
    %124 = vector.load %arg4[%c0_46, %c0_47] : memref<128x128xbf16, #tpu.memory_space<vmem>>, vector<128x128xbf16>
    tpu.vector_store %arg4[%c0_46, %c0_47], %123 {strides = array<i32>} : memref<128x128xbf16, #tpu.memory_space<vmem>>, vector<128x128xbf16>,
    %125 = arith.truncf %122 : vector<128x128xf32> to vector<128x128xbf16>
    %c0_48 = arith.constant 0 : index
    %c0_49 = arith.constant 0 : index
    %126 = vector.load %arg4[%c0_48, %c0_49] : memref<128x128xbf16, #tpu.memory_space<vmem>>, vector<128x128xbf16>
    %cst_50 = arith.constant dense<0.000000e+00> : vector<128x128xf32>
    %127 = tpu.matmul %126, %125, %cst_50 {dimension_numbers = #tpu.dot_dimension_numbers<[1], [0], [0], [1], [0, 0, 1, 1], [], []>} : vector<128x128xbf16>, vector<128x128xbf16>, vector<128x128xf32> -> vector<128x128xf32>
    %128 = arith.truncf %127 : vector<128x128xf32> to vector<128x128xbf16>
    %cst_51 = arith.constant dense<0.000000e+00> : vector<128x128xf32>
    %129 = tpu.matmul %128, %128, %cst_51 {dimension_numbers = #tpu.dot_dimension_numbers<[1], [0], [0], [1], [0, 0, 1, 1], [], []>} : vector<128x128xbf16>, vector<128x128xbf16>, vector<128x128xf32> -> vector<128x128xf32>
    %c0_52 = arith.constant 0 : index
    %c0_53 = arith.constant 0 : index
    %130 = vector.load %arg5[%c0_52, %c0_53] : memref<128x128xf32, #tpu.memory_space<vmem>>, vector<128x128xf32>
    %cst_54 = arith.constant 3.000000e+00 : f32
    %131 = vector.broadcast %cst_54 : f32 to vector<128x128xf32>
    %132 = arith.mulf %131, %127 : vector<128x128xf32>
    %133 = arith.subf %130, %132 : vector<128x128xf32>
    %134 = arith.addf %133, %129 : vector<128x128xf32>
    %135 = arith.truncf %134 : vector<128x128xf32> to vector<128x128xbf16>
    %cst_55 = arith.constant dense<0.000000e+00> : vector<128x128xf32>
    %136 = tpu.matmul %125, %135, %cst_55 {dimension_numbers = #tpu.dot_dimension_numbers<[1], [0], [0], [1], [0, 0, 1, 1], [], []>} : vector<128x128xbf16>, vector<128x128xbf16>, vector<128x128xf32> -> vector<128x128xf32>
    %137 = arith.truncf %136 : vector<128x128xf32> to vector<128x128xbf16>
    %c0_56 = arith.constant 0 : index
    %c0_57 = arith.constant 0 : index
    %138 = vector.load %arg4[%c0_56, %c0_57] : memref<128x128xbf16, #tpu.memory_space<vmem>>, vector<128x128xbf16>
    %cst_58 = arith.constant dense<0.000000e+00> : vector<128x128xf32>
    %139 = tpu.matmul %138, %137, %cst_58 {dimension_numbers = #tpu.dot_dimension_numbers<[1], [0], [0], [1], [0, 0, 1, 1], [], []>} : vector<128x128xbf16>, vector<128x128xbf16>, vector<128x128xf32> -> vector<128x128xf32>
    %140 = arith.truncf %139 : vector<128x128xf32> to vector<128x128xbf16>
    %cst_59 = arith.constant dense<0.000000e+00> : vector<128x128xf32>
    %141 = tpu.matmul %140, %140, %cst_59 {dimension_numbers = #tpu.dot_dimension_numbers<[1], [0], [0], [1], [0, 0, 1, 1], [], []>} : vector<128x128xbf16>, vector<128x128xbf16>, vector<128x128xf32> -> vector<128x128xf32>
    %c0_60 = arith.constant 0 : index
    %c0_61 = arith.constant 0 : index
    %142 = vector.load %arg5[%c0_60, %c0_61] : memref<128x128xf32, #tpu.memory_space<vmem>>, vector<128x128xf32>
    %cst_62 = arith.constant 3.000000e+00 : f32
    %143 = vector.broadcast %cst_62 : f32 to vector<128x128xf32>
    %144 = arith.mulf %143, %139 : vector<128x128xf32>
    %145 = arith.subf %142, %144 : vector<128x128xf32>
    %146 = arith.addf %145, %141 : vector<128x128xf32>
    %147 = arith.truncf %146 : vector<128x128xf32> to vector<128x128xbf16>
    %cst_63 = arith.constant dense<0.000000e+00> : vector<128x128xf32>
    %148 = tpu.matmul %137, %147, %cst_63 {dimension_numbers = #tpu.dot_dimension_numbers<[1], [0], [0], [1], [0, 0, 1, 1], [], []>} : vector<128x128xbf16>, vector<128x128xbf16>, vector<128x128xf32> -> vector<128x128xf32>
    %149 = arith.truncf %148 : vector<128x128xf32> to vector<128x128xbf16>
    %c0_64 = arith.constant 0 : index
    %c0_65 = arith.constant 0 : index
    %150 = vector.load %arg4[%c0_64, %c0_65] : memref<128x128xbf16, #tpu.memory_space<vmem>>, vector<128x128xbf16>
    %cst_66 = arith.constant dense<0.000000e+00> : vector<128x128xf32>
    %151 = tpu.matmul %150, %149, %cst_66 {dimension_numbers = #tpu.dot_dimension_numbers<[1], [0], [0], [1], [0, 0, 1, 1], [], []>} : vector<128x128xbf16>, vector<128x128xbf16>, vector<128x128xf32> -> vector<128x128xf32>
    %152 = arith.truncf %151 : vector<128x128xf32> to vector<128x128xbf16>
    %cst_67 = arith.constant dense<0.000000e+00> : vector<128x128xf32>
    %153 = tpu.matmul %152, %152, %cst_67 {dimension_numbers = #tpu.dot_dimension_numbers<[1], [0], [0], [1], [0, 0, 1, 1], [], []>} : vector<128x128xbf16>, vector<128x128xbf16>, vector<128x128xf32> -> vector<128x128xf32>
    %c0_68 = arith.constant 0 : index
    %c0_69 = arith.constant 0 : index
    %154 = vector.load %arg5[%c0_68, %c0_69] : memref<128x128xf32, #tpu.memory_space<vmem>>, vector<128x128xf32>
    %cst_70 = arith.constant 3.000000e+00 : f32
    %155 = vector.broadcast %cst_70 : f32 to vector<128x128xf32>
    %156 = arith.mulf %155, %151 : vector<128x128xf32>
    %157 = arith.subf %154, %156 : vector<128x128xf32>
    %158 = arith.addf %157, %153 : vector<128x128xf32>
    %159 = arith.truncf %158 : vector<128x128xf32> to vector<128x128xbf16>
    %cst_71 = arith.constant dense<0.000000e+00> : vector<128x128xf32>
    %160 = tpu.matmul %149, %159, %cst_71 {dimension_numbers = #tpu.dot_dimension_numbers<[1], [0], [0], [1], [0, 0, 1, 1], [], []>} : vector<128x128xbf16>, vector<128x128xbf16>, vector<128x128xf32> -> vector<128x128xf32>
    %161 = arith.truncf %160 : vector<128x128xf32> to vector<128x128xbf16>
    %c0_72 = arith.constant 0 : index
    %c0_73 = arith.constant 0 : index
    %162 = vector.load %arg4[%c0_72, %c0_73] : memref<128x128xbf16, #tpu.memory_space<vmem>>, vector<128x128xbf16>
    %cst_74 = arith.constant dense<0.000000e+00> : vector<128x128xf32>
    %163 = tpu.matmul %162, %161, %cst_74 {dimension_numbers = #tpu.dot_dimension_numbers<[1], [0], [0], [1], [0, 0, 1, 1], [], []>} : vector<128x128xbf16>, vector<128x128xbf16>, vector<128x128xf32> -> vector<128x128xf32>
    %164 = arith.truncf %163 : vector<128x128xf32> to vector<128x128xbf16>
    %cst_75 = arith.constant dense<0.000000e+00> : vector<128x128xf32>
    %165 = tpu.matmul %164, %164, %cst_75 {dimension_numbers = #tpu.dot_dimension_numbers<[1], [0], [0], [1], [0, 0, 1, 1], [], []>} : vector<128x128xbf16>, vector<128x128xbf16>, vector<128x128xf32> -> vector<128x128xf32>
    %c0_76 = arith.constant 0 : index
    %c0_77 = arith.constant 0 : index
    %166 = vector.load %arg5[%c0_76, %c0_77] : memref<128x128xf32, #tpu.memory_space<vmem>>, vector<128x128xf32>
    %cst_78 = arith.constant 3.000000e+00 : f32
    %167 = vector.broadcast %cst_78 : f32 to vector<128x128xf32>
    %168 = arith.mulf %167, %163 : vector<128x128xf32>
    %169 = arith.subf %166, %168 : vector<128x128xf32>
    %170 = arith.addf %169, %165 : vector<128x128xf32>
    %171 = arith.truncf %170 : vector<128x128xf32> to vector<128x128xbf16>
    %cst_79 = arith.constant dense<0.000000e+00> : vector<128x128xf32>
    %172 = tpu.matmul %161, %171, %cst_79 {dimension_numbers = #tpu.dot_dimension_numbers<[1], [0], [0], [1], [0, 0, 1, 1], [], []>} : vector<128x128xbf16>, vector<128x128xbf16>, vector<128x128xf32> -> vector<128x128xf32>
    %173 = arith.truncf %172 : vector<128x128xf32> to vector<128x128xbf16>
    %c0_80 = arith.constant 0 : index
    %c0_81 = arith.constant 0 : index
    %174 = vector.load %arg4[%c0_80, %c0_81] : memref<128x128xbf16, #tpu.memory_space<vmem>>, vector<128x128xbf16>
    %cst_82 = arith.constant dense<0.000000e+00> : vector<128x128xf32>
    %175 = tpu.matmul %174, %173, %cst_82 {dimension_numbers = #tpu.dot_dimension_numbers<[1], [0], [0], [1], [0, 0, 1, 1], [], []>} : vector<128x128xbf16>, vector<128x128xbf16>, vector<128x128xf32> -> vector<128x128xf32>
    %176 = arith.truncf %175 : vector<128x128xf32> to vector<128x128xbf16>
    %cst_83 = arith.constant dense<0.000000e+00> : vector<128x128xf32>
    %177 = tpu.matmul %176, %176, %cst_83 {dimension_numbers = #tpu.dot_dimension_numbers<[1], [0], [0], [1], [0, 0, 1, 1], [], []>} : vector<128x128xbf16>, vector<128x128xbf16>, vector<128x128xf32> -> vector<128x128xf32>
    %c0_84 = arith.constant 0 : index
    %c0_85 = arith.constant 0 : index
    %178 = vector.load %arg5[%c0_84, %c0_85] : memref<128x128xf32, #tpu.memory_space<vmem>>, vector<128x128xf32>
    %cst_86 = arith.constant 3.000000e+00 : f32
    %179 = vector.broadcast %cst_86 : f32 to vector<128x128xf32>
    %180 = arith.mulf %179, %175 : vector<128x128xf32>
    %181 = arith.subf %178, %180 : vector<128x128xf32>
    %182 = arith.addf %181, %177 : vector<128x128xf32>
    %183 = arith.truncf %182 : vector<128x128xf32> to vector<128x128xbf16>
    %cst_87 = arith.constant dense<0.000000e+00> : vector<128x128xf32>
    %184 = tpu.matmul %173, %183, %cst_87 {dimension_numbers = #tpu.dot_dimension_numbers<[1], [0], [0], [1], [0, 0, 1, 1], [], []>} : vector<128x128xbf16>, vector<128x128xbf16>, vector<128x128xf32> -> vector<128x128xf32>
    %185 = arith.truncf %184 : vector<128x128xf32> to vector<128x128xbf16>
    %c0_88 = arith.constant 0 : index
    %c0_89 = arith.constant 0 : index
    %186 = vector.load %arg4[%c0_88, %c0_89] : memref<128x128xbf16, #tpu.memory_space<vmem>>, vector<128x128xbf16>
    %cst_90 = arith.constant dense<0.000000e+00> : vector<128x128xf32>
    %187 = tpu.matmul %186, %185, %cst_90 {dimension_numbers = #tpu.dot_dimension_numbers<[1], [0], [0], [1], [0, 0, 1, 1], [], []>} : vector<128x128xbf16>, vector<128x128xbf16>, vector<128x128xf32> -> vector<128x128xf32>
    %188 = arith.truncf %187 : vector<128x128xf32> to vector<128x128xbf16>
    %cst_91 = arith.constant dense<0.000000e+00> : vector<128x128xf32>
    %189 = tpu.matmul %188, %188, %cst_91 {dimension_numbers = #tpu.dot_dimension_numbers<[1], [0], [0], [1], [0, 0, 1, 1], [], []>} : vector<128x128xbf16>, vector<128x128xbf16>, vector<128x128xf32> -> vector<128x128xf32>
    %c0_92 = arith.constant 0 : index
    %c0_93 = arith.constant 0 : index
    %190 = vector.load %arg5[%c0_92, %c0_93] : memref<128x128xf32, #tpu.memory_space<vmem>>, vector<128x128xf32>
    %cst_94 = arith.constant 3.000000e+00 : f32
    %191 = vector.broadcast %cst_94 : f32 to vector<128x128xf32>
    %192 = arith.mulf %191, %187 : vector<128x128xf32>
    %193 = arith.subf %190, %192 : vector<128x128xf32>
    %194 = arith.addf %193, %189 : vector<128x128xf32>
    %195 = arith.truncf %194 : vector<128x128xf32> to vector<128x128xbf16>
    %cst_95 = arith.constant dense<0.000000e+00> : vector<128x128xf32>
    %196 = tpu.matmul %185, %195, %cst_95 {dimension_numbers = #tpu.dot_dimension_numbers<[1], [0], [0], [1], [0, 0, 1, 1], [], []>} : vector<128x128xbf16>, vector<128x128xbf16>, vector<128x128xf32> -> vector<128x128xf32>
    %197 = arith.truncf %196 : vector<128x128xf32> to vector<128x128xbf16>
    %c0_96 = arith.constant 0 : index
    %c0_97 = arith.constant 0 : index
    %198 = vector.load %arg4[%c0_96, %c0_97] : memref<128x128xbf16, #tpu.memory_space<vmem>>, vector<128x128xbf16>
    %cst_98 = arith.constant dense<0.000000e+00> : vector<128x128xf32>
    %199 = tpu.matmul %198, %197, %cst_98 {dimension_numbers = #tpu.dot_dimension_numbers<[1], [0], [0], [1], [0, 0, 1, 1], [], []>} : vector<128x128xbf16>, vector<128x128xbf16>, vector<128x128xf32> -> vector<128x128xf32>
    %200 = arith.truncf %199 : vector<128x128xf32> to vector<128x128xbf16>
    %cst_99 = arith.constant dense<0.000000e+00> : vector<128x128xf32>
    %201 = tpu.matmul %200, %200, %cst_99 {dimension_numbers = #tpu.dot_dimension_numbers<[1], [0], [0], [1], [0, 0, 1, 1], [], []>} : vector<128x128xbf16>, vector<128x128xbf16>, vector<128x128xf32> -> vector<128x128xf32>
    %c0_100 = arith.constant 0 : index
    %c0_101 = arith.constant 0 : index
    %202 = vector.load %arg5[%c0_100, %c0_101] : memref<128x128xf32, #tpu.memory_space<vmem>>, vector<128x128xf32>
    %cst_102 = arith.constant 3.000000e+00 : f32
    %203 = vector.broadcast %cst_102 : f32 to vector<128x128xf32>
    %204 = arith.mulf %203, %199 : vector<128x128xf32>
    %205 = arith.subf %202, %204 : vector<128x128xf32>
    %206 = arith.addf %205, %201 : vector<128x128xf32>
    %207 = arith.truncf %206 : vector<128x128xf32> to vector<128x128xbf16>
    %cst_103 = arith.constant dense<0.000000e+00> : vector<128x128xf32>
    %208 = tpu.matmul %197, %207, %cst_103 {dimension_numbers = #tpu.dot_dimension_numbers<[1], [0], [0], [1], [0, 0, 1, 1], [], []>} : vector<128x128xbf16>, vector<128x128xbf16>, vector<128x128xf32> -> vector<128x128xf32>
    %209 = arith.truncf %208 : vector<128x128xf32> to vector<128x128xbf16>
    %c0_104 = arith.constant 0 : index
    %c0_105 = arith.constant 0 : index
    %210 = vector.load %arg4[%c0_104, %c0_105] : memref<128x128xbf16, #tpu.memory_space<vmem>>, vector<128x128xbf16>
    %cst_106 = arith.constant dense<0.000000e+00> : vector<128x128xf32>
    %211 = tpu.matmul %210, %209, %cst_106 {dimension_numbers = #tpu.dot_dimension_numbers<[1], [0], [0], [1], [0, 0, 1, 1], [], []>} : vector<128x128xbf16>, vector<128x128xbf16>, vector<128x128xf32> -> vector<128x128xf32>
    %212 = arith.truncf %211 : vector<128x128xf32> to vector<128x128xbf16>
    %cst_107 = arith.constant dense<0.000000e+00> : vector<128x128xf32>
    %213 = tpu.matmul %212, %212, %cst_107 {dimension_numbers = #tpu.dot_dimension_numbers<[1], [0], [0], [1], [0, 0, 1, 1], [], []>} : vector<128x128xbf16>, vector<128x128xbf16>, vector<128x128xf32> -> vector<128x128xf32>
    %c0_108 = arith.constant 0 : index
    %c0_109 = arith.constant 0 : index
    %214 = vector.load %arg5[%c0_108, %c0_109] : memref<128x128xf32, #tpu.memory_space<vmem>>, vector<128x128xf32>
    %cst_110 = arith.constant 3.000000e+00 : f32
    %215 = vector.broadcast %cst_110 : f32 to vector<128x128xf32>
    %216 = arith.mulf %215, %211 : vector<128x128xf32>
    %217 = arith.subf %214, %216 : vector<128x128xf32>
    %218 = arith.addf %217, %213 : vector<128x128xf32>
    %219 = arith.truncf %218 : vector<128x128xf32> to vector<128x128xbf16>
    %cst_111 = arith.constant dense<0.000000e+00> : vector<128x128xf32>
    %220 = tpu.matmul %209, %219, %cst_111 {dimension_numbers = #tpu.dot_dimension_numbers<[1], [0], [0], [1], [0, 0, 1, 1], [], []>} : vector<128x128xbf16>, vector<128x128xbf16>, vector<128x128xf32> -> vector<128x128xf32>
    %c0_112 = arith.constant 0 : index
    %c0_113 = arith.constant 0 : index
    %221 = vector.load %arg3[%c0_112, %c0_113] : memref<128x128xf32, #tpu.memory_space<vmem>>, vector<128x128xf32>
    %cst_114 = arith.constant dense<0.000000e+00> : vector<128x128xf32>
    %222 = tpu.matmul %221, %220, %cst_114 {dimension_numbers = #tpu.dot_dimension_numbers<[1], [0], [0], [1], [0, 0, 1, 1], [], []>} : vector<128x128xf32>, vector<128x128xf32>, vector<128x128xf32> -> vector<128x128xf32>
    %cst_115 = arith.constant dense<0.000000e+00> : vector<128x128xf32>
    %223 = tpu.matmul %222, %222, %cst_115 {dimension_numbers = #tpu.dot_dimension_numbers<[1], [0], [0], [1], [0, 0, 1, 1], [], []>} : vector<128x128xf32>, vector<128x128xf32>, vector<128x128xf32> -> vector<128x128xf32>
    %c0_116 = arith.constant 0 : index
    %c0_117 = arith.constant 0 : index
    %224 = vector.load %arg5[%c0_116, %c0_117] : memref<128x128xf32, #tpu.memory_space<vmem>>, vector<128x128xf32>
    %cst_118 = arith.constant 3.000000e+00 : f32
    %225 = vector.broadcast %cst_118 : f32 to vector<128x128xf32>
    %226 = arith.mulf %225, %222 : vector<128x128xf32>
    %227 = arith.subf %224, %226 : vector<128x128xf32>
    %228 = arith.addf %227, %223 : vector<128x128xf32>
    %cst_119 = arith.constant dense<0.000000e+00> : vector<128x128xf32>
    %229 = tpu.matmul %220, %228, %cst_119 {dimension_numbers = #tpu.dot_dimension_numbers<[1], [0], [0], [1], [0, 0, 1, 1], [], []>} : vector<128x128xf32>, vector<128x128xf32>, vector<128x128xf32> -> vector<128x128xf32>
    %c0_120 = arith.constant 0 : index
    %c0_121 = arith.constant 0 : index
    %230 = vector.load %arg3[%c0_120, %c0_121] : memref<128x128xf32, #tpu.memory_space<vmem>>, vector<128x128xf32>
    %cst_122 = arith.constant dense<0.000000e+00> : vector<128x128xf32>
    %231 = tpu.matmul %230, %229, %cst_122 {dimension_numbers = #tpu.dot_dimension_numbers<[1], [0], [0], [1], [0, 0, 1, 1], [], []>} : vector<128x128xf32>, vector<128x128xf32>, vector<128x128xf32> -> vector<128x128xf32>
    %cst_123 = arith.constant dense<0.000000e+00> : vector<128x128xf32>
    %232 = tpu.matmul %231, %231, %cst_123 {dimension_numbers = #tpu.dot_dimension_numbers<[1], [0], [0], [1], [0, 0, 1, 1], [], []>} : vector<128x128xf32>, vector<128x128xf32>, vector<128x128xf32> -> vector<128x128xf32>
    %c0_124 = arith.constant 0 : index
    %c0_125 = arith.constant 0 : index
    %233 = vector.load %arg5[%c0_124, %c0_125] : memref<128x128xf32, #tpu.memory_space<vmem>>, vector<128x128xf32>
    %cst_126 = arith.constant 3.000000e+00 : f32
    %234 = vector.broadcast %cst_126 : f32 to vector<128x128xf32>
    %235 = arith.mulf %234, %231 : vector<128x128xf32>
    %236 = arith.subf %233, %235 : vector<128x128xf32>
    %237 = arith.addf %236, %232 : vector<128x128xf32>
    %cst_127 = arith.constant dense<0.000000e+00> : vector<128x128xf32>
    %238 = tpu.matmul %229, %237, %cst_127 {dimension_numbers = #tpu.dot_dimension_numbers<[1], [0], [0], [1], [0, 0, 1, 1], [], []>} : vector<128x128xf32>, vector<128x128xf32>, vector<128x128xf32> -> vector<128x128xf32>
    %239 = vector.extract_strided_slice %238 {offsets = [0, 0], sizes = [32, 128], strides = [1, 1]} : vector<128x128xf32> to vector<32x128xf32>
    %240 = vector.extract_strided_slice %238 {offsets = [32, 0], sizes = [32, 128], strides = [1, 1]} : vector<128x128xf32> to vector<32x128xf32>
    %241 = arith.addf %239, %240 : vector<32x128xf32>
    %242 = vector.extract_strided_slice %238 {offsets = [64, 0], sizes = [32, 128], strides = [1, 1]} : vector<128x128xf32> to vector<32x128xf32>
    %243 = arith.addf %241, %242 : vector<32x128xf32>
    %244 = vector.extract_strided_slice %238 {offsets = [96, 0], sizes = [32, 128], strides = [1, 1]} : vector<128x128xf32> to vector<32x128xf32>
    %245 = arith.addf %243, %244 : vector<32x128xf32>
    %c0_128 = arith.constant 0 : index
    %c0_129 = arith.constant 0 : index
    %c0_130 = arith.constant 0 : index
    %246 = vector.load %arg2[%c0_128, %c0_129, %c0_130] : memref<1x32x128xf32, #tpu.memory_space<vmem>>, vector<1x32x128xf32>
    %247 = vector.shape_cast %246 : vector<1x32x128xf32> to vector<32x128xf32>
    %248 = vector.shape_cast %245 : vector<32x128xf32> to vector<1x32x128xf32>
    tpu.vector_store %arg2[%c0_128, %c0_129, %c0_130], %248 {strides = array<i32>} : memref<1x32x128xf32, #tpu.memory_space<vmem>>, vector<1x32x128xf32>,
    return
  }
  func.func @transform_0(%arg0: i32) -> (i32, i32, i32) {
    %c0_i32 = arith.constant 0 : i32
    %c0_i32_0 = arith.constant 0 : i32
    %c0_i32_1 = arith.constant 0 : i32
    return %arg0, %c0_i32, %c0_i32_0 : i32, i32, i32
  }
  func.func @transform_1(%arg0: i32) -> (i32, i32, i32) {
    %c0_i32 = arith.constant 0 : i32
    %c0_i32_0 = arith.constant 0 : i32
    %c0_i32_1 = arith.constant 0 : i32
    return %arg0, %c0_i32, %c0_i32_0 : i32, i32, i32
  }
}

</mosaic_0001>

<bundles_post_ra>
// kernel: tpu_custom_call.1
= control target key start
LH: loop header
LB: loop body
LE: loop exit
PB: predicated region body
PF: predicated region fallthrough
CT: control target
= control target key end

     0   :  { %6 = vsyncpa [#allocation6], 0  ;;  %s4861_s0 = inlined_call_operand.hbm [shape: f32[4,32,32], index: 0, kind: input, shape index: {}]   ;;  %s4862_s1 = inlined_call_operand.hbm [shape: f32[1,32,128], index: 1, kind: output, shape index: {}]  }
   0x1   :  { %7 = vsyncpa [#allocation7], 0  ;;  %s12_s8 = sshll.u32 %s4861_s0, 4  ;;  %s3397_s9 = smov [#allocation5]   ;;  %s13_s8 = int_to_ptr.hbm [resolvable:$true] %s12_s8 }
   0x2   :  { %s14_s10 = sshll.u32 %s3397_s9, 4  ;;  %s3398_s11 = smov 128   ;;  %s15_s10 = int_to_ptr.vmem [resolvable:$true] %s14_s10 }
   0x3   :  { %s3399_s12 = smov 8  }
   0x4   :  { %20 = dma.hbm_to_vmem [thread:$0]  %s13_s8, 2048, %s15_s10, [#allocation6], %s3398_s11, %s3398_s11, %s3399_s12  }
   0x5   :  { %3393 = dma.done.wait [#allocation6], 2048  }
   0x6   :  { %3394 = vsyncadd [#allocation6], 4294965248  ;;  %v3400_v0 = vmov 0.0   ;;  %v114_v1 = vld [vmem:[#allocation5 + $0x10] sm:$0xff]  ;;  %vm161_vm0 = vcmask 261120   ;;  %v112_v2 = vld [vmem:[#allocation5] sm:$0xff] }
   0x7   :  { %31 = vst [vmem:[#allocation2 + $0x10] sm:$0xff] %v3400_v0  ;;  %v115_v3 = vld [vmem:[#allocation5 + $0x18] sm:$0xff]  ;;  %v130_v4 = vand.u32 2147483647, %v114_v1  ;;  %v128_v5 = vand.u32 2147483647, %v112_v2 }
   0x8   :  { %29 = vst [vmem:[#allocation2] sm:$0xff] %v3400_v0  ;;  %v113_v6 = vld [vmem:[#allocation5 + $0x8] sm:$0xff]  ;;  %v131_v7 = vand.u32 2147483647, %v115_v3  ;;  %v3436_v13 = vld [vmem:[#allocation5 + $0x30] sm:$0xff]  ;;  %v3441_v16 = vld [vmem:[#allocation5 + $0x20] sm:$0xff] }
   0x9   :  { %30 = vst [vmem:[#allocation2 + $0x8] sm:$0xff] %v3400_v0  ;;  %v129_v8 = vand.u32 2147483647, %v113_v6  ;;  %v3430_v9 = vld [vmem:[#allocation5 + $0x28] sm:$0xff]  ;;  %v165_v10 = vsel %vm161_vm0, %v130_v4, 0.0  ;;  %v162_v11 = vsel %vm161_vm0, %v128_v5, 0.0 }
   0xa   :  { %32 = vst [vmem:[#allocation2 + $0x18] sm:$0xff] %v3400_v0  ;;  %v133_v12 = vand.u32 2147483647, %v3430_v9  ;;  %183 = vadd.xlane.f32.xlu1 %v165_v10  ;;  %179 = vadd.xlane.f32.xlu0 %v162_v11  ;;  %v134_v15 = vand.u32 2147483647, %v3436_v13  ;;  %v3445_v19 = vld [vmem:[#allocation5 + $0x38] sm:$0xff] }
   0xb   :  { %33 = vst [vmem:[#allocation2 + $0x20] sm:$0xff] %v3400_v0  ;;  %v163_v14 = vsel %vm161_vm0, %v129_v8, 0.0  ;;  %v132_v20 = vand.u32 2147483647, %v3441_v16  ;;  %v167_v21 = vsel %vm161_vm0, %v131_v7, 0.0  ;;  %v3451_v23 = vld [vmem:[#allocation5 + $0x40] sm:$0xff] }
   0xc   :  { %34 = vst [vmem:[#allocation2 + $0x28] sm:$0xff] %v3400_v0  ;;  %v164_v17 = vadd.f32 %v163_v14, %v162_v11  ;;  %v289_v18 = vsel %vm161_vm0, %v133_v12, 0.0  ;;  %v135_v22 = vand.u32 2147483647, %v3445_v19  ;;  %v291_v25 = vsel %vm161_vm0, %v134_v15, 0.0  ;;  %v3458_v27 = vld [vmem:[#allocation5 + $0x48] sm:$0xff] }
   0xd   :  { %35 = vst [vmem:[#allocation2 + $0x30] sm:$0xff] %v3400_v0  ;;  %v3456_v26 = vsel %vm161_vm0, %v132_v20, 0.0  ;;  %v136_v31 = vand.u32 2147483647, %v3451_v23  ;;  %v3467_v32 = vld [vmem:[#allocation5 + $0x50] sm:$0xff]  ;;  %v3469_v33 = vld [vmem:[#allocation5 + $0x60] sm:$0xff] }
   0xe   :  { %286 = vst.msk [vmem:[#allocation2 + $0x10] sm:$0xff] %vm161_vm0, %v114_v1  ;;  %v166_v24 = vadd.f32 %v165_v10, %v164_v17  ;;  %v290_v28 = vadd.f32 %v289_v18, %v3456_v26  ;;  %v3464_v30 = vsel %vm161_vm0, %v135_v22, 0.0  ;;  %v137_v35 = vand.u32 2147483647, %v3458_v27  ;;  %v3474_v37 = vld [vmem:[#allocation5 + $0x68] sm:$0xff]  ;;  %v3482_v43 = vld [vmem:[#allocation5 + $0x70] sm:$0xff] }
   0xf   :  { %36 = vst [vmem:[#allocation2 + $0x38] sm:$0xff] %v3400_v0  ;;  %v140_v36 = vand.u32 2147483647, %v3469_v33  ;;  %v141_v39 = vand.u32 2147483647, %v3474_v37  ;;  %v431_v45 = vsel %vm161_vm0, %v136_v31, 0.0 }
  0x10   :  { %37 = vst [vmem:[#allocation2 + $0x40] sm:$0xff] %v3400_v0  ;;  %v168_v29 = vadd.f32 %v167_v21, %v166_v24  ;;  %v292_v34 = vadd.f32 %v291_v25, %v290_v28  ;;  %v138_v41 = vand.u32 2147483647, %v3467_v32  ;;  %v3487_v47 = vld [vmem:[#allocation5 + $0x78] sm:$0xff]  ;;  %v142_v48 = vand.u32 2147483647, %v3482_v43 }
  0x11   :  { %38 = vst [vmem:[#allocation2 + $0x48] sm:$0xff] %v3400_v0  ;;  %v574_v42 = vsel %vm161_vm0, %v140_v36, 0.0  ;;  %v575_v46 = vsel %vm161_vm0, %v141_v39, 0.0  ;;  %v432_v50 = vsel %vm161_vm0, %v137_v35, 0.0  ;;  %v143_v52 = vand.u32 2147483647, %v3487_v47 }
  0x12   :  { %39 = vst [vmem:[#allocation2 + $0x50] sm:$0xff] %v3400_v0  ;;  %v169_v38 = vrot.slane %v168_v29, 4  ;;  %185 = vadd.xlane.f32.xlu1 %v167_v21  ;;  %181 = vadd.xlane.f32.xlu0 %v163_v14  ;;  %v294_v40 = vadd.f32 %v3464_v30, %v292_v34  ;;  %v576_v51 = vadd.f32 %v575_v46, %v574_v42  ;;  %v123_v54 = vld [vmem:[#allocation5 + $0x58] sm:$0xff]  ;;  %v577_v55 = vsel %vm161_vm0, %v142_v48, 0.0  ;;  %s3401_s0 = smov 32   ;;  %s3402_s13 = smov 64  }
  0x13   :  { %40 = vst [vmem:[#allocation2 + $0x58] sm:$0xff] %v3400_v0  ;;  %v433_v58 = vadd.f32 %v432_v50, %v431_v45  ;;  %v434_v61 = vsel %vm161_vm0, %v138_v41, 0.0  ;;  %v139_v62 = vand.u32 2147483647, %v123_v54  ;;  %v579_v63 = vsel %vm161_vm0, %v143_v52, 0.0  ;;  %s3403_s14 = smov 96  }
  0x14   :  { %41 = vst [vmem:[#allocation2 + $0x60] sm:$0xff] %v3400_v0  ;;  %v170_v44 = vadd.f32 %v169_v38, %v168_v29  ;;  %v295_v49 = vrot.slane %v294_v40, 4  ;;  %v578_v59 = vadd.f32 %v577_v55, %v576_v51  ;;  %vm426_vm1 = vcmask 523520   ;;  %s3404_s6 = smov [#allocation8]   ;;  %s3169_s10 = sshll.u32 %s4862_s1, 4  ;;  %s3170_s10 = int_to_ptr.hbm [resolvable:$true] %s3169_s10 }
  0x15   :  { %42 = vst [vmem:[#allocation2 + $0x68] sm:$0xff] %v3400_v0  ;;  %v435_v4 = vadd.f32 %v434_v61, %v433_v58  ;;  %v436_v7 = vsel %vm161_vm0, %v139_v62, 0.0  ;;  %v719_v52 = vld [vmem:[#allocation2 + $0x10] sm:$0xff]  ;;  %vm569_vm2 = vcmask 785920   ;;  %vm712_vm7 = vcmask 1048320   ;;  %s3167_s7 = sshll.u32 %s3404_s6, 4  ;;  %s3168_s7 = int_to_ptr.vmem [resolvable:$true] %s3167_s7 }
  0x16   :  { %43 = vst [vmem:[#allocation2 + $0x70] sm:$0xff] %v3400_v0  ;;  %v171_v53 = vrot.slane %v170_v44, 2  ;;  %v296_v56 = vadd.f32 %v295_v49, %v294_v40  ;;  %v580_v5 = vadd.f32 %v579_v63, %v578_v59 }
  0x17   :  { %44 = vst [vmem:[#allocation2 + $0x78] sm:$0xff] %v3400_v0  ;;  %v437_v11 = vadd.f32 %v436_v7, %v435_v4 }
  0x18   :  { %284 = vst.msk [vmem:[#allocation2] sm:$0xff] %vm161_vm0, %v112_v2  ;;  %v172_v57 = vadd.f32 %v171_v53, %v170_v44  ;;  %v297_v60 = vrot.slane %v296_v56, 2  ;;  %v581_v12 = vrot.slane %v580_v5, 4 }
  0x19   :  { %287 = vst.msk [vmem:[#allocation2 + $0x18] sm:$0xff] %vm161_vm0, %v115_v3  ;;  %v438_v15 = vrot.slane %v437_v11, 4 }
  0x1a   :  { %285 = vst.msk [vmem:[#allocation2 + $0x8] sm:$0xff] %vm161_vm0, %v113_v6  ;;  %v173_v1 = vrot.slane %v172_v57, 1  ;;  %307 = vadd.xlane.f32.xlu0 %v289_v18  ;;  %309 = vadd.xlane.f32.xlu1 %v291_v25  ;;  %v298_v2 = vadd.f32 %v297_v60, %v296_v56  ;;  %v582_v17 = vadd.f32 %v581_v12, %v580_v5 }
  0x1b   :  { %v439_v18 = vadd.f32 %v438_v15, %v437_v11 }
  0x1c   :  { %v174_v3 = vadd.f32 %v173_v1, %v172_v57  ;;  %v299_v6 = vrot.slane %v298_v2, 1  ;;  %v583_v20 = vrot.slane %v582_v17, 2 }
  0x1d   :  { %v440_v21 = vrot.slane %v439_v18, 2 }
  0x1e   :  { %v175_v8 = vsel %vm161_vm0, %v174_v3, -inf  ;;  %v300_v10 = vadd.f32 %v299_v6, %v298_v2  ;;  %v584_v22 = vadd.f32 %v583_v20, %v582_v17 }
  0x1f   :  { %176 = vmax.xlane.f32.xlu2 %v175_v8  ;;  %v441_v24 = vadd.f32 %v440_v21, %v439_v18  ;;  %v717_v36 = vld [vmem:[#allocation2] sm:$0xff] }
  0x20   :  { %v301_v14 = vsel %vm161_vm0, %v300_v10, -inf  ;;  %v585_v25 = vrot.slane %v584_v22, 1  ;;  %v720_v53 = vld [vmem:[#allocation2 + $0x18] sm:$0xff] }
  0x21   :  { %v442_v28 = vrot.slane %v441_v24, 1  ;;  %v718_v38 = vld [vmem:[#allocation2 + $0x8] sm:$0xff] }
  0x22   :  { %302 = vmax.xlane.f32.xlu0 %v301_v14  ;;  %448 = vadd.xlane.f32.xlu1 %v431_v45  ;;  %v586_v29 = vadd.f32 %v585_v25, %v584_v22  ;;  %v3229_v39 = vpack.c.bf16 %v718_v38, %v717_v36 }
  0x23   :  { %v443_v31 = vadd.f32 %v442_v28, %v441_v24 }
  0x24   :  { %v587_v34 = vsel %vm161_vm0, %v586_v29, -inf  ;;  %3230 = vst [vmem:[#allocation3 + $0x30] sm:$0xff] %v3229_v39  }
  0x27   :  { %305 = vadd.xlane.f32.xlu2 %v3456_v26  ;;  %v444_v26 = vsel %vm161_vm0, %v443_v31, -inf }
  0x2a   :  { %452 = vadd.xlane.f32.xlu0 %v434_v61  ;;  %454 = vadd.xlane.f32.xlu1 %v436_v7 }
  0x2f   :  { %311 = vadd.xlane.f32.xlu2 %v3464_v30 }
  0x32   :  { %591 = vadd.xlane.f32.xlu0 %v574_v42  ;;  %593 = vadd.xlane.f32.xlu1 %v575_v46 }
  0x37   :  { %450 = vadd.xlane.f32.xlu2 %v432_v50 }
  0x3a   :  { %597 = vadd.xlane.f32.xlu0 %v579_v63  ;;  %588 = vmax.xlane.f32.xlu1 %v587_v34 }
  0x3f   :  { %445 = vmax.xlane.f32.xlu2 %v444_v26 }
  0x47   :  { %595 = vadd.xlane.f32.xlu2 %v577_v55 }
  0x4e   :  { %416 = vrot.lane.b32.xlu0 %v3430_v9, %s3401_s0 }
  0x53   :  { %418 = vrot.lane.b32.xlu1 %v3436_v13, %s3401_s0 }
  0x56   :  { %557 = vrot.lane.b32.xlu0 %v3451_v23, %s3402_s13 }
  0x5b   :  { %561 = vrot.lane.b32.xlu1 %v3467_v32, %s3402_s13 }
  0x5e   :  { %563 = vrot.lane.b32.xlu0 %v123_v54, %s3402_s13  ;;  %v3234_v54 = vpack.c.bf16 %v720_v53, %v719_v52 }
  0x5f   :  { %414 = vrot.lane.b32.xlu2 %v3441_v16, %s3401_s0 }
  0x60   :  { %3266 = vst [vmem:[#allocation3] sm:$0xff] %v3234_v54  }
  0x63   :  { %702 = vrot.lane.b32.xlu1 %v3474_v37, %s3403_s14 }
  0x66   :  { %704 = vrot.lane.b32.xlu0 %v3482_v43, %s3403_s14 }
  0x67   :  { %420 = vrot.lane.b32.xlu2 %v3445_v19, %s3401_s0 }
  0x6f   :  { %559 = vrot.lane.b32.xlu2 %v3458_v27, %s3402_s13 }
  0x77   :  { %700 = vrot.lane.b32.xlu2 %v3469_v33, %s3403_s14 }
  0x7d   :  { %v184_v9 = vpop.xlane.xlu1 %183  ;;  %v180_v13 = vpop.xlane.xlu0 %179 }
  0x7f   :  { %706 = vrot.lane.b32.xlu2 %v3487_v47, %s3403_s14 }
  0x85   :  { %v186_v23 = vpop.xlane.xlu1 %185  ;;  %v182_v30 = vpop.xlane.xlu0 %181 }
  0x86   :  { %v188_v32 = vmax.f32 %v184_v9, %v186_v23  ;;  %v187_v16 = vmax.f32 %v180_v13, %v182_v30 }
  0x88   :  { %v189_v35 = vmax.f32 %v187_v16, %v188_v32 }
  0x8a   :  { %v190_v37 = vrot.slane %v189_v35, 4 }
  0x8c   :  { %v191_v19 = vmax.f32 %v189_v35, %v190_v37 }
  0x8d   :  { %v308_v40 = vpop.xlane.xlu0 %307  ;;  %v310_v41 = vpop.xlane.xlu1 %309 }
  0x8e   :  { %v192_v27 = vrot.slane %v191_v19, 2 }
  0x90   :  { %v193_v42 = vmax.f32 %v191_v19, %v192_v27 }
  0x92   :  { %v177_v33 = vpop.xlane.xlu2 %176  ;;  %v194_v43 = vrot.slane %v193_v42, 1 }
  0x93   :  { %3289 = vpush %v177_v33 }
  0x94   :  { %v195_v44 = vmax.f32 %v193_v42, %v194_v43 }
  0x95   :  { %v3513_v45 = vpop.xlane.xlu0 %302  ;;  %v449_v46 = vpop.xlane.xlu1 %448 }
  0x96   :  { %3291 = vpush %v195_v44 }
  0x98   :  { %733 = vxpose.xlu1.b32.start [1/16] %v717_v36, 128 }
  0x9a   :  { %v306_v47 = vpop.xlane.xlu2 %305 }
  0x9b   :  { %v313_v4 = vmax.f32 %v306_v47, %v308_v40 }
  0x9d   :  { %v453_v48 = vpop.xlane.xlu0 %452  ;;  %v455_v49 = vpop.xlane.xlu1 %454 }
  0x9e   :  { %v457_v50 = vmax.f32 %v453_v48, %v455_v49 }
  0xa0   :  { %734 = vxpose.xlu1.b32.cont [2/16] %v718_v38, 128 }
  0xa2   :  { %v312_v51 = vpop.xlane.xlu2 %311 }
  0xa3   :  { %v314_v5 = vmax.f32 %v310_v41, %v312_v51 }
  0xa5   :  { %v592_v55 = vpop.xlane.xlu0 %591  ;;  %v594_v56 = vpop.xlane.xlu1 %593  ;;  %v315_v8 = vmax.f32 %v313_v4, %v314_v5 }
  0xa6   :  { %v599_v57 = vmax.f32 %v592_v55, %v594_v56 }
  0xa7   :  { %v316_v11 = vrot.slane %v315_v8, 4 }
  0xa8   :  { %735 = vxpose.xlu1.b32.cont [3/16] %v719_v52, 128 }
  0xa9   :  { %v317_v21 = vmax.f32 %v315_v8, %v316_v11 }
  0xaa   :  { %v451_v58 = vpop.xlane.xlu2 %450 }
  0xab   :  { %v456_v59 = vmax.f32 %v449_v46, %v451_v58  ;;  %v318_v24 = vrot.slane %v317_v21, 2 }
  0xad   :  { %v3515_v60 = vmax.f32 %v456_v59, %v457_v50  ;;  %v598_v62 = vpop.xlane.xlu0 %597  ;;  %v3519_v2 = vpop.xlane.xlu1 %588  ;;  %v319_v23 = vmax.f32 %v317_v21, %v318_v24 }
  0xaf   :  { %v320_v36 = vrot.slane %v319_v23, 1  ;;  %v459_v54 = vrot.slane %v3515_v60, 4 }
  0xb0   :  { %736 = vxpose.xlu1.b32.cont [4/16] %v720_v53, 128 }
  0xb1   :  { %v321_v43 = vmax.f32 %v319_v23, %v320_v36  ;;  %v460_v56 = vmax.f32 %v3515_v60, %v459_v54 }
  0xb2   :  { %v3517_v61 = vpop.xlane.xlu2 %445 }
  0xba   :  { %v596_v63 = vpop.xlane.xlu2 %595 }
  0xbb   :  { %v600_v1 = vmax.f32 %v596_v63, %v598_v62 }
  0xbd   :  { %v3521_v3 = vmax.f32 %v599_v57, %v600_v1  ;;  %v461_v57 = vrot.slane %v460_v56, 2 }
  0xbf   :  { %v462_v63 = vmax.f32 %v460_v56, %v461_v57 }
  0xc0   :  { %v417_v6 = vpop.permute.xlu0 %416 }
  0xc1   :  { %428 = vst.msk [vmem:[#allocation2 + $0x28] sm:$0xff] %vm426_vm1, %v417_v6 }
  0xc2   :  { %v415_v7 = vpop.permute.xlu2 %414 }
  0xc3   :  { %427 = vst.msk [vmem:[#allocation2 + $0x20] sm:$0xff] %vm426_vm1, %v415_v7  ;;  %v463_v7 = vrot.slane %v462_v63, 1 }
  0xc4   :  { %s3290_s15 = spop %3289 }
  0xc5   :  { %v419_v10 = vpop.permute.xlu1 %418  ;;  %v464_v11 = vmax.f32 %v462_v63, %v463_v7 }
  0xc6   :  { %429 = vst.msk [vmem:[#allocation2 + $0x30] sm:$0xff] %vm426_vm1, %v419_v10 }
  0xc7   :  { %s3292_s16 = spop %3291 }
  0xc8   :  { %s3526_s17 = smul.f32 %s3292_s16, %s3290_s15  ;;  %v558_v12 = vpop.permute.xlu0 %557  ;;  %v722_v15 = vld [vmem:[#allocation2 + $0x28] sm:$0xff] }
  0xc9   :  { %570 = vst.msk [vmem:[#allocation2 + $0x40] sm:$0xff] %vm569_vm2, %v558_v12 }
  0xca   :  { %v721_v14 = vld [vmem:[#allocation2 + $0x20] sm:$0xff]  ;;  %v421_v17 = vpop.permute.xlu2 %420  ;;  %v202_v18 = vstv %s3526_s17  ;;  %p198_p0 = scmp.gt.f32.partialorder %s3526_s17, 0.0  ;;  %p199_p1 = scmp.lt.f32.partialorder %s3526_s17, inf }
  0xcb   :  { %737 = vxpose.xlu1.b32.cont [5/16] %v721_v14, 128  ;;  %v3239_v20 = vpack.c.bf16 %v722_v15, %v721_v14  ;;  %430 = vst.msk [vmem:[#allocation2 + $0x38] sm:$0xff] %vm426_vm1, %v421_v17  ;;  %3321 = vrcp.f32 %v202_v18  ;;  %v214_v30 = vand.u32 2147483648, %v202_v18  ;;  %v212_v16 = vand.u32 2147483647, %v202_v18 }
  0xcc   :  { %vm208_vm4 = vweird.f32 %v202_v18  ;;  %p3541_p2 = pnand %p199_p1, %p198_p0 }
  0xcd   :  { %3267 = vst [vmem:[#allocation3 + $0x18] sm:$0xff] %v3239_v20   ;;  %v562_v22 = vpop.permute.xlu1 %561  ;;  %v723_v28 = vld [vmem:[#allocation2 + $0x30] sm:$0xff]  ;;  %v215_v38 = vor.u32 1.1754944e-38, %v214_v30  ;;  %vm213_vm6 = vcmp.eq.f32.partialorder %v212_v16, 8.507059e+37  ;;  %v602_v20 = vrot.slane %v3521_v3, 4 }
  0xce   :  { %572 = vst.msk [vmem:[#allocation2 + $0x50] sm:$0xff] %vm569_vm2, %v562_v22 }
  0xcf   :  { %v603_v22 = vmax.f32 %v3521_v3, %v602_v20 }
  0xd0   :  { %v564_v9 = vpop.permute.xlu0 %563  ;;  %v725_v39 = vld [vmem:[#allocation2 + $0x40] sm:$0xff] }
  0xd1   :  { %v3322_v25 = vpop.eup %3321  ;;  %573 = vst.msk [vmem:[#allocation2 + $0x58] sm:$0xff] %vm569_vm2, %v564_v9 }
  0xd2   :  { %v724_v29 = vld [vmem:[#allocation2 + $0x38] sm:$0xff]  ;;  %v560_v31 = vpop.permute.xlu2 %559  ;;  %v204_v34 = vmul.f32 %v3322_v25, %v202_v18  ;;  %vm209_vm3 = vweird.f32 %v3322_v25 }
  0xd3   :  { %738 = vxpose.xlu1.b32.cont [6/16] %v722_v15, 128  ;;  %v3244_v26 = vpack.c.bf16 %v724_v29, %v723_v28  ;;  %571 = vst.msk [vmem:[#allocation2 + $0x48] sm:$0xff] %vm569_vm2, %v560_v31  ;;  %vm210_vm5 = vmor %vm208_vm4, %vm209_vm3 }
  0xd4   :  { %v205_v13 = vsub.f32 1.0, %v204_v34 }
  0xd5   :  { %3268 = vst [vmem:[#allocation3 + $0x10] sm:$0xff] %v3244_v26   ;;  %v727_v42 = vld [vmem:[#allocation2 + $0x50] sm:$0xff]  ;;  %v703_v46 = vpop.permute.xlu1 %702 }
  0xd6   :  { %v206_v32 = vmul.f32 %v3322_v25, %v205_v13  ;;  %714 = vst.msk [vmem:[#allocation2 + $0x68] sm:$0xff] %vm712_vm7, %v703_v46 }
  0xd8   :  { %v207_v35 = vadd.f32 %v3322_v25, %v206_v32  ;;  %v728_v33 = vld [vmem:[#allocation2 + $0x58] sm:$0xff]  ;;  %v705_v50 = vpop.permute.xlu0 %704 }
  0xd9   :  { %v3254_v44 = vpack.c.bf16 %v728_v33, %v727_v42  ;;  %715 = vst.msk [vmem:[#allocation2 + $0x70] sm:$0xff] %vm712_vm7, %v705_v50 }
  0xda   :  { %v211_v37 = vsel %vm210_vm5, %v3322_v25, %v207_v35  ;;  %v726_v19 = vld [vmem:[#allocation2 + $0x48] sm:$0xff]  ;;  %v701_v40 = vpop.permute.xlu2 %700 }
  0xdb   :  { %739 = vxpose.xlu1.b32.cont [7/16] %v723_v28, 128  ;;  %v216_v41 = vsel %vm213_vm6, %v215_v38, %v211_v37  ;;  %v3249_v27 = vpack.c.bf16 %v726_v19, %v725_v39  ;;  %713 = vst.msk [vmem:[#allocation2 + $0x60] sm:$0xff] %vm712_vm7, %v701_v40  ;;  %v604_v28 = vrot.slane %v603_v22, 2 }
  0xdc   :  { %3293 = vpush %v216_v41 }
  0xdd   :  { %3295 = vpush %v3513_v45  ;;  %v730_v48 = vld [vmem:[#allocation2 + $0x68] sm:$0xff]  ;;  %v605_v9 = vmax.f32 %v603_v22, %v604_v28 }
  0xde   :  { %3297 = vpush %v321_v43 }
  0xdf   :  { %3269 = vst [vmem:[#allocation3 + $0x8] sm:$0xff] %v3249_v27   ;;  %v606_v3 = vrot.slane %v605_v9, 1 }
  0xe0   :  { %3270 = vst [vmem:[#allocation3 + $0x20] sm:$0xff] %v3254_v44   ;;  %v731_v51 = vld [vmem:[#allocation2 + $0x70] sm:$0xff] }
  0xe2   :  { %v729_v47 = vld [vmem:[#allocation2 + $0x60] sm:$0xff]  ;;  %v707_v45 = vpop.permute.xlu2 %706 }
  0xe3   :  { %740 = vxpose.xlu1.b32.cont [8/16] %v724_v29, 128  ;;  %v3259_v49 = vpack.c.bf16 %v730_v48, %v729_v47  ;;  %716 = vst.msk [vmem:[#allocation2 + $0x78] sm:$0xff] %vm712_vm7, %v707_v45 }
  0xe5   :  { %3271 = vst [vmem:[#allocation3 + $0x28] sm:$0xff] %v3259_v49  }
  0xe6   :  { %v3617_v28 = vld [vmem:[#allocation3 + $0x8] sm:$0xff] }
  0xea   :  { %v732_v52 = vld [vmem:[#allocation2 + $0x78] sm:$0xff] }
  0xeb   :  { %741 = vxpose.xlu1.b32.cont [9/16] %v725_v39, 128  ;;  %v3264_v53 = vpack.c.bf16 %v732_v52, %v731_v51 }
  0xed   :  { %3272 = vst [vmem:[#allocation3 + $0x38] sm:$0xff] %v3264_v53  }
  0xf3   :  { %742 = vxpose.xlu1.b32.cont [10/16] %v726_v19, 128  ;;  %v607_v19 = vmax.f32 %v605_v9, %v606_v3  ;;  %v3633_v9 = vld [vmem:[#allocation3 + $0x10] sm:$0xff] }
  0xfb   :  { %743 = vxpose.xlu1.b32.cont [11/16] %v727_v42, 128 }
 0x103   :  { %744 = vxpose.xlu1.b32.cont [12/16] %v728_v33, 128 }
 0x10b   :  { %745 = vxpose.xlu1.b32.cont [13/16] %v729_v47, 128 }
 0x10d   :  { %s3545_s19 = spop %3293 }
 0x10e   :  { %s3182_s20 = scalar_select %p3541_p2, 0.0, %s3545_s19 }
 0x10f   :  { %s3296_s21 = spop %3295 }
 0x110   :  { %s3298_s22 = spop %3297  ;;  %v267_v12 = vstv %s3182_s20 }
 0x111   :  { %s3551_s23 = smul.f32 %s3298_s22, %s3296_s21 }
 0x113   :  { %746 = vxpose.xlu1.b32.cont [14/16] %v730_v48, 128  ;;  %v328_v55 = vstv %s3551_s23  ;;  %p324_p3 = scmp.gt.f32.partialorder %s3551_s23, 0.0  ;;  %p325_p4 = scmp.lt.f32.partialorder %s3551_s23, inf }
 0x114   :  { %3323 = vrcp.f32 %v328_v55  ;;  %v340_v1 = vand.u32 2147483648, %v328_v55  ;;  %v338_v5 = vand.u32 2147483647, %v328_v55  ;;  %vm334_vm9 = vweird.f32 %v328_v55 }
 0x115   :  { %p3562_p5 = pnand %p325_p4, %p324_p3 }
 0x116   :  { %v341_v60 = vor.u32 1.1754944e-38, %v340_v1  ;;  %vm339_vm11 = vcmp.eq.f32.partialorder %v338_v5, 8.507059e+37 }
 0x11a   :  { %v3324_v58 = vpop.eup %3323 }
 0x11b   :  { %747 = vxpose.xlu1.b32.cont [15/16] %v731_v51, 128  ;;  %v330_v59 = vmul.f32 %v3324_v58, %v328_v55  ;;  %vm335_vm8 = vweird.f32 %v3324_v58 }
 0x11c   :  { %vm336_vm10 = vmor %vm334_vm9, %vm335_vm8 }
 0x11d   :  { %v331_v62 = vsub.f32 1.0, %v330_v59 }
 0x11f   :  { %v332_v4 = vmul.f32 %v3324_v58, %v331_v62 }
 0x121   :  { %v333_v6 = vadd.f32 %v3324_v58, %v332_v4 }
 0x123   :  { %748 = vxpose.xlu1.b32.end [16/16] %v732_v52, 128  ;;  %v337_v8 = vsel %vm336_vm10, %v3324_v58, %v333_v6 }
 0x124   :  { %v342_v10 = vsel %vm339_vm11, %v341_v60, %v337_v8 }
 0x125   :  { %3299 = vpush %v342_v10 }
 0x126   :  { %3301 = vpush %v3517_v61 }
 0x127   :  { %3303 = vpush %v464_v11 }
 0x14f   :  { %v749_v14 = vpop.trf.xlu1 }
 0x150   :  { %v765_v15 = vmul.f32 %v749_v14, %v267_v12 }
 0x156   :  { %s3566_s25 = spop %3299 }
 0x157   :  { %v750_v17 = vpop.trf.xlu1  ;;  %s3183_s26 = scalar_select %p3562_p5, 0.0, %s3566_s25 }
 0x158   :  { %v766_v61 = vmul.f32 %v750_v17, %v267_v12  ;;  %s3302_s27 = spop %3301 }
 0x159   :  { %s3304_s28 = spop %3303  ;;  %v393_v39 = vstv %s3183_s26 }
 0x15a   :  { %v3571_v18 = vpack.c.bf16 %v766_v61, %v765_v15  ;;  %s3574_s29 = smul.f32 %s3304_s28, %s3302_s27 }
 0x15c   :  { %v471_v21 = vstv %s3574_s29  ;;  %p467_p6 = scmp.gt.f32.partialorder %s3574_s29, 0.0  ;;  %p468_p7 = scmp.lt.f32.partialorder %s3574_s29, inf }
 0x15d   :  { %3325 = vrcp.f32 %v471_v21  ;;  %v483_v23 = vand.u32 2147483648, %v471_v21  ;;  %v481_v32 = vand.u32 2147483647, %v471_v21  ;;  %vm477_vm13 = vweird.f32 %v471_v21 }
 0x15e   :  { %p469_p8 = pnand %p468_p7, %p467_p6 }
 0x15f   :  { %v751_v24 = vpop.trf.xlu1  ;;  %v484_v36 = vor.u32 1.1754944e-38, %v483_v23  ;;  %vm482_vm15 = vcmp.eq.f32.partialorder %v481_v32, 8.507059e+37 }
 0x160   :  { %v767_v25 = vmul.f32 %v751_v24, %v267_v12 }
 0x163   :  { %v3326_v29 = vpop.eup %3325 }
 0x164   :  { %v473_v31 = vmul.f32 %v3326_v29, %v471_v21  ;;  %vm478_vm12 = vweird.f32 %v3326_v29 }
 0x165   :  { %vm479_vm14 = vmor %vm477_vm13, %vm478_vm12 }
 0x166   :  { %v474_v26 = vsub.f32 1.0, %v473_v31  ;;  %v3623_v31 = vld [vmem:[#allocation3 + $0x20] sm:$0xff] }
 0x167   :  { %v752_v34 = vpop.trf.xlu1  ;;  %4940 = vst [vmem:[#allocation11_spill] sm:$0xff] %v3623_v31 }
 0x168   :  { %v768_v13 = vmul.f32 %v752_v34, %v267_v12  ;;  %v475_v30 = vmul.f32 %v3326_v29, %v474_v26  ;;  %v3627_v34 = vld [vmem:[#allocation3 + $0x18] sm:$0xff]  ;;  %v3629_v26 = vld [vmem:[#allocation3 + $0x28] sm:$0xff] }
 0x169   :  { %4941 = vst [vmem:[#allocation12_spill] sm:$0xff] %v3629_v26 }
 0x16a   :  { %v3578_v16 = vpack.c.bf16 %v768_v13, %v767_v25  ;;  %v476_v35 = vadd.f32 %v3326_v29, %v475_v30  ;;  %v3613_v25 = vld [vmem:[#allocation3 + $0x30] sm:$0xff]  ;;  %v3635_v13 = vld [vmem:[#allocation3 + $0x38] sm:$0xff] }
 0x16b   :  { %4942 = vst [vmem:[#allocation13_spill] sm:$0xff] %v3635_v13 }
 0x16c   :  { %v480_v38 = vsel %vm479_vm14, %v3326_v29, %v476_v35  ;;  %v3621_v29 = vld [vmem:[#allocation3] sm:$0xff] }
 0x16d   :  { %v485_v37 = vsel %vm482_vm15, %v484_v36, %v480_v38 }
 0x16e   :  { %3305 = vpush %v485_v37 }
 0x16f   :  { %v753_v40 = vpop.trf.xlu1  ;;  %3307 = vpush %v3519_v2 }
 0x170   :  { %v769_v41 = vmul.f32 %v753_v40, %v393_v39  ;;  %3309 = vpush %v607_v19 }
 0x177   :  { %v754_v27 = vpop.trf.xlu1 }
 0x178   :  { %v770_v42 = vmul.f32 %v754_v27, %v393_v39 }
 0x17a   :  { %v3585_v33 = vpack.c.bf16 %v770_v42, %v769_v41 }
 0x17f   :  { %v755_v43 = vpop.trf.xlu1 }
 0x180   :  { %v771_v44 = vmul.f32 %v755_v43, %v393_v39 }
 0x187   :  { %v756_v46 = vpop.trf.xlu1 }
 0x188   :  { %v772_v47 = vmul.f32 %v756_v46, %v393_v39 }
 0x18a   :  { %v3587_v48 = vpack.c.bf16 %v772_v47, %v771_v44 }
 0x18f   :  { %v757_v49 = vpop.trf.xlu1 }
 0x197   :  { %v758_v2 = vpop.trf.xlu1 }
 0x19f   :  { %s3306_s30 = spop %3305  ;;  %v759_v5 = vpop.trf.xlu1 }
 0x1a0   :  { %s5085_s30 = smov (%p469_p8, %s3306_s30), 0.0  ;;  %s3308_s2 = spop %3307 }
 0x1a1   :  { %v536_v50 = vstv %s5085_s30  ;;  %s3310_s3 = spop %3309 }
 0x1a2   :  { %v773_v45 = vmul.f32 %v757_v49, %v536_v50  ;;  %v774_v51 = vmul.f32 %v758_v2, %v536_v50  ;;  %s609_s4 = smul.f32 %s3310_s3, %s3308_s2  ;;  %v775_v22 = vmul.f32 %v759_v5, %v536_v50 }
 0x1a4   :  { %v614_v52 = vstv %s609_s4  ;;  %v3591_v53 = vpack.c.bf16 %v774_v51, %v773_v45  ;;  %p610_p9 = scmp.gt.f32.partialorder %s609_s4, 0.0  ;;  %p611_p10 = scmp.lt.f32.partialorder %s609_s4, inf }
 0x1a5   :  { %3327 = vrcp.f32 %v614_v52  ;;  %v626_v57 = vand.u32 2147483648, %v614_v52  ;;  %v624_v59 = vand.u32 2147483647, %v614_v52  ;;  %vm620_vm1 = vweird.f32 %v614_v52 }
 0x1a6   :  { %p612_p11 = pnand %p611_p10, %p610_p9 }
 0x1a7   :  { %v627_v63 = vor.u32 1.1754944e-38, %v626_v57  ;;  %vm625_vm3 = vcmp.eq.f32.partialorder %v624_v59, 8.507059e+37  ;;  %v760_v6 = vpop.trf.xlu1 }
 0x1a8   :  { %v776_v20 = vmul.f32 %v760_v6, %v536_v50 }
 0x1aa   :  { %v3601_v24 = vpack.c.bf16 %v776_v20, %v775_v22 }
 0x1ab   :  { %v3328_v54 = vpop.eup %3327 }
 0x1ac   :  { %v616_v55 = vmul.f32 %v3328_v54, %v614_v52  ;;  %vm621_vm0 = vweird.f32 %v3328_v54 }
 0x1ad   :  { %vm622_vm2 = vmor %vm620_vm1, %vm621_vm0 }
 0x1ae   :  { %v617_v56 = vsub.f32 1.0, %v616_v55 }
 0x1af   :  { %v761_v7 = vpop.trf.xlu1 }
 0x1b0   :  { %v618_v58 = vmul.f32 %v3328_v54, %v617_v56 }
 0x1b2   :  { %v619_v62 = vadd.f32 %v3328_v54, %v618_v58 }
 0x1b4   :  { %v623_v1 = vsel %vm622_vm2, %v3328_v54, %v619_v62  ;;  %v45_v54 = vlaneseq }
 0x1b5   :  { %v628_v4 = vsel %vm625_vm3, %v627_v63, %v623_v1 }
 0x1b6   :  { %3311 = vpush %v628_v4  ;;  %v3681_v55 = vshrl.u32 %v45_v54, 7  ;;  %v3683_v56 = vand.u32 127, %v45_v54 }
 0x1b7   :  { %v762_v60 = vpop.trf.xlu1 }
 0x1b8   :  { %vm64_vm4 = vcmp.eq.s32.totalorder %v3681_v55, %v3683_v56  ;;  %v54_v58 = vadd.s32 64, %v3681_v55 }
 0x1b9   :  { %v3689_v59 = vsel %vm64_vm4, 3.0, %v3400_v0 }
 0x1ba   :  { %4943 = vst [vmem:[#allocation14_spill] sm:$0xff] %v3689_v59  ;;  %vm72_vm5 = vcmp.eq.s32.totalorder %v54_v58, %v3683_v56 }
 0x1bb   :  { %v3696_v5 = vsel %vm72_vm5, 3.0, %v3400_v0 }
 0x1bc   :  { %4944 = vst [vmem:[#allocation15_spill] sm:$0xff] %v3696_v5 }
 0x1bf   :  { %v763_v8 = vpop.trf.xlu1 }
 0x1c7   :  { %v764_v10 = vpop.trf.xlu1 }
 0x1e7   :  { %s3312_s5 = spop %3311 }
 0x1e8   :  { %s5087_s5 = smov (%p612_p11, %s3312_s5), 0.0 }
 0x1e9   :  { %v679_v11 = vstv %s5087_s5 }
 0x1ea   :  { %v779_v12 = vmul.f32 %v763_v8, %v679_v11  ;;  %v780_v14 = vmul.f32 %v764_v10, %v679_v11  ;;  %v777_v15 = vmul.f32 %v761_v7, %v679_v11  ;;  %v778_v17 = vmul.f32 %v762_v60, %v679_v11 }
 0x1ec   :  { %v3593_v61 = vpack.c.bf16 %v780_v14, %v779_v12  ;;  %v3597_v21 = vpack.c.bf16 %v778_v17, %v777_v15 }
 0x1ee   :  { %885 = vmatpush.bf16.msra.mxu0 %v3593_v61  ;;  %3273 = vmatpush.bf16.msra.mxu2 %v3593_v61 }
 0x1f2   :  { %886 = vmatpush.bf16.msra.mxu0 %v3597_v21  ;;  %3274 = vmatpush.bf16.msra.mxu2 %v3597_v21 }
 0x1f6   :  { %887 = vmatpush.bf16.msra.mxu0 %v3601_v24  ;;  %3275 = vmatpush.bf16.msra.mxu2 %v3601_v24 }
 0x1fa   :  { %888 = vmatpush.bf16.msra.mxu0 %v3591_v53  ;;  %3276 = vmatpush.bf16.msra.mxu2 %v3591_v53 }
 0x1fe   :  { %889 = vmatpush.bf16.msra.mxu0 %v3587_v48  ;;  %3277 = vmatpush.bf16.msra.mxu2 %v3587_v48 }
 0x202   :  { %890 = vmatpush.bf16.msra.mxu0 %v3585_v33  ;;  %3278 = vmatpush.bf16.msra.mxu2 %v3585_v33 }
 0x206   :  { %891 = vmatpush.bf16.msra.mxu0 %v3578_v16  ;;  %3279 = vmatpush.bf16.msra.mxu2 %v3578_v16 }
 0x20a   :  { %892 = vmatpush.bf16.msra.mxu0 %v3571_v18  ;;  %3280 = vmatpush.bf16.msra.mxu2 %v3571_v18 }
 0x20d   :  { %893 = vmatmul.bf16.vlgmr.msra.gmra.mxu0 %v3613_v25  ;;  %913 = vmatmul.bf16.vlgmr.msra.gmra.mxu2 %v3617_v28 }
 0x21d   :  { %898 = vmatmul.bf16.gmra.mxu0 %v3621_v29  ;;  %918 = vmatmul.bf16.gmra.mxu2 %v3623_v31 }
 0x22d   :  { %903 = vmatmul.bf16.gmra.mxu0 %v3627_v34  ;;  %923 = vmatmul.bf16.gmra.mxu2 %v3629_v26 }
 0x23d   :  { %908 = vmatmul.bf16.gmra.mxu0 %v3633_v9  ;;  %928 = vmatmul.bf16.gmra.mxu2 %v3635_v13 }
 0x28a   :  { %v894_v23 = vpop.f32.mrf.mxu0 }
 0x28b   :  { %v1007_v57 = vmul.f32 3.0, %v894_v23 }
 0x28d   :  { %v1023_v62 = vsub.f32 %v3689_v59, %v1007_v57 }
 0x290   :  { %v914_v30 = vpop.f32.mrf.mxu2 }
 0x291   :  { %v1015_v1 = vmul.f32 3.0, %v914_v30 }
 0x292   :  { %v3641_v35 = vpop.f32.mrf.mxu0 }
 0x293   :  { %v934_v52 = vpack.c.bf16 %v3641_v35, %v894_v23  ;;  %v1031_v6 = vsub.f32 %v3696_v5, %v1015_v1  ;;  %v60_v23 = vadd.s32 112, %v3681_v55 }
 0x295   :  { %vm78_vm6 = vcmp.eq.s32.totalorder %v60_v23, %v3683_v56 }
 0x296   :  { %v3725_v54 = vsel %vm78_vm6, 3.0, %v3400_v0 }
 0x298   :  { %v3639_v32 = vpop.f32.mrf.mxu2 }
 0x299   :  { %v938_v49 = vpack.c.bf16 %v3639_v32, %v914_v30  ;;  %v61_v30 = vadd.s32 120, %v3681_v55 }
 0x29a   :  { %v3645_v36 = vpop.f32.mrf.mxu0 }
 0x29b   :  { %vm79_vm7 = vcmp.eq.s32.totalorder %v61_v30, %v3683_v56 }
 0x29c   :  { %v3728_v57 = vsel %vm79_vm7, 3.0, %v3400_v0 }
 0x29d   :  { %4945 = vst [vmem:[#allocation16_spill] sm:$0xff] %v3728_v57 }
 0x2a0   :  { %v3643_v3 = vpop.f32.mrf.mxu2 }
 0x2a2   :  { %v3649_v37 = vpop.f32.mrf.mxu0 }
 0x2a3   :  { %v935_v51 = vpack.c.bf16 %v3649_v37, %v3645_v36 }
 0x2a8   :  { %v3647_v38 = vpop.f32.mrf.mxu2 }
 0x2a9   :  { %v939_v47 = vpack.c.bf16 %v3647_v38, %v3643_v3 }
 0x2aa   :  { %v3653_v19 = vpop.f32.mrf.mxu0 }
 0x2b0   :  { %v3651_v39 = vpop.f32.mrf.mxu2 }
 0x2b2   :  { %v3659_v27 = vpop.f32.mrf.mxu0 }
 0x2b3   :  { %v936_v45 = vpack.c.bf16 %v3659_v27, %v3653_v19 }
 0x2b8   :  { %v3655_v40 = vpop.f32.mrf.mxu2 }
 0x2b9   :  { %v940_v46 = vpack.c.bf16 %v3655_v40, %v3651_v39  ;;  %v1020_v58 = vmul.f32 3.0, %v3655_v40 }
 0x2ba   :  { %v3665_v44 = vpop.f32.mrf.mxu0 }
 0x2c0   :  { %v3657_v41 = vpop.f32.mrf.mxu2 }
 0x2c2   :  { %v3672_v2 = vpop.f32.mrf.mxu0 }
 0x2c3   :  { %v937_v50 = vpack.c.bf16 %v3672_v2, %v3665_v44 }
 0x2c8   :  { %v3661_v42 = vpop.f32.mrf.mxu2 }
 0x2c9   :  { %v941_v43 = vpack.c.bf16 %v3661_v42, %v3657_v41 }
 0x2cb   :  { %942 = vmatpush.bf16.msra.mxu1 %v941_v43  ;;  %3281 = vmatpush.bf16.msra.mxu3 %v941_v43 }
 0x2cf   :  { %943 = vmatpush.bf16.msra.mxu1 %v940_v46  ;;  %3282 = vmatpush.bf16.msra.mxu3 %v940_v46 }
 0x2d3   :  { %944 = vmatpush.bf16.msra.mxu1 %v939_v47  ;;  %3283 = vmatpush.bf16.msra.mxu3 %v939_v47 }
 0x2d7   :  { %945 = vmatpush.bf16.msra.mxu1 %v938_v49  ;;  %3284 = vmatpush.bf16.msra.mxu3 %v938_v49 }
 0x2db   :  { %946 = vmatpush.bf16.msra.mxu1 %v937_v50  ;;  %3285 = vmatpush.bf16.msra.mxu3 %v937_v50 }
 0x2df   :  { %947 = vmatpush.bf16.msra.mxu1 %v936_v45  ;;  %3286 = vmatpush.bf16.msra.mxu3 %v936_v45 }
 0x2e3   :  { %948 = vmatpush.bf16.msra.mxu1 %v935_v51  ;;  %3287 = vmatpush.bf16.msra.mxu3 %v935_v51 }
 0x2e7   :  { %949 = vmatpush.bf16.msra.mxu1 %v934_v52  ;;  %3288 = vmatpush.bf16.msra.mxu3 %v934_v52 }
 0x2ea   :  { %950 = vmatmul.bf16.vlgmr.msra.gmra.mxu1 %v934_v52  ;;  %970 = vmatmul.bf16.vlgmr.msra.gmra.mxu3 %v938_v49  ;;  %v58_v49 = vadd.s32 96, %v3681_v55  ;;  %v56_v52 = vadd.s32 80, %v3681_v55 }
 0x2ec   :  { %vm76_vm9 = vcmp.eq.s32.totalorder %v58_v49, %v3683_v56  ;;  %vm74_vm11 = vcmp.eq.s32.totalorder %v56_v52, %v3683_v56  ;;  %v53_v52 = vadd.s32 56, %v3681_v55 }
 0x2ee   :  { %vm71_vm13 = vcmp.eq.s32.totalorder %v53_v52, %v3683_v56 }
 0x2fa   :  { %955 = vmatmul.bf16.gmra.mxu1 %v935_v51  ;;  %975 = vmatmul.bf16.gmra.mxu3 %v939_v47  ;;  %v57_v51 = vadd.s32 88, %v3681_v55 }
 0x2fc   :  { %vm75_vm10 = vcmp.eq.s32.totalorder %v57_v51, %v3683_v56 }
 0x2fd   :  { %v3749_v49 = vsel %vm75_vm10, 3.0, %v3400_v0 }
 0x30a   :  { %960 = vmatmul.bf16.gmra.mxu1 %v936_v45  ;;  %980 = vmatmul.bf16.gmra.mxu3 %v940_v46  ;;  %v1022_v45 = vmul.f32 3.0, %v3661_v42 }
 0x30c   :  { %v1038_v1 = vsub.f32 %v3728_v57, %v1022_v45 }
 0x31a   :  { %965 = vmatmul.bf16.gmra.mxu1 %v937_v50  ;;  %985 = vmatmul.bf16.gmra.mxu3 %v941_v43  ;;  %v59_v43 = vadd.s32 104, %v3681_v55  ;;  %v1021_v50 = vmul.f32 3.0, %v3657_v41  ;;  %v55_v41 = vadd.s32 72, %v3681_v55 }
 0x31c   :  { %vm77_vm8 = vcmp.eq.s32.totalorder %v59_v43, %v3683_v56  ;;  %vm73_vm12 = vcmp.eq.s32.totalorder %v55_v41, %v3683_v56  ;;  %v52_v41 = vadd.s32 48, %v3681_v55 }
 0x31d   :  { %v3734_v42 = vsel %vm77_vm8, 3.0, %v3400_v0 }
 0x31e   :  { %v1036_v23 = vsub.f32 %v3734_v42, %v1020_v58  ;;  %vm70_vm14 = vcmp.eq.s32.totalorder %v52_v41, %v3683_v56 }
 0x367   :  { %v951_v63 = vpop.f32.mrf.mxu1 }
 0x368   :  { %v3693_v4 = vadd.f32 %v1023_v62, %v951_v63  ;;  %v1019_v62 = vmul.f32 3.0, %v3651_v39  ;;  %v1037_v63 = vsub.f32 %v3725_v54, %v1021_v50  ;;  %v1017_v39 = vmul.f32 3.0, %v3643_v3 }
 0x36d   :  { %v971_v7 = vpop.f32.mrf.mxu3 }
 0x36e   :  { %v3699_v60 = vadd.f32 %v1031_v6, %v971_v7  ;;  %v3742_v6 = vsel %vm76_vm9, 3.0, %v3400_v0  ;;  %v1018_v7 = vmul.f32 3.0, %v3647_v38  ;;  %v3754_v38 = vsel %vm74_vm11, 3.0, %v3400_v0 }
 0x36f   :  { %v3701_v8 = vpop.f32.mrf.mxu1  ;;  %v1035_v45 = vsub.f32 %v3742_v6, %v1019_v62  ;;  %v51_v62 = vadd.s32 40, %v3681_v55 }
 0x370   :  { %v1034_v58 = vsub.f32 %v3749_v49, %v1018_v7 }
 0x371   :  { %vm69_vm15 = vcmp.eq.s32.totalorder %v51_v62, %v3683_v56  ;;  %v1010_v62 = vmul.f32 3.0, %v3649_v37 }
 0x375   :  { %v3703_v10 = vpop.f32.mrf.mxu3 }
 0x377   :  { %v3705_v12 = vpop.f32.mrf.mxu1 }
 0x37d   :  { %v976_v11 = vpop.f32.mrf.mxu3 }
 0x37f   :  { %v3707_v15 = vpop.f32.mrf.mxu1 }
 0x385   :  { %v978_v14 = vpop.f32.mrf.mxu3 }
 0x387   :  { %v3709_v20 = vpop.f32.mrf.mxu1 }
 0x38d   :  { %v981_v17 = vpop.f32.mrf.mxu3 }
 0x38e   :  { %v1051_v3 = vadd.f32 %v1035_v45, %v981_v17 }
 0x38f   :  { %v3714_v46 = vpop.f32.mrf.mxu1 }
 0x395   :  { %v983_v22 = vpop.f32.mrf.mxu3 }
 0x396   :  { %v1052_v51 = vadd.f32 %v1036_v23, %v983_v22  ;;  %v1033_v22 = vsub.f32 %v3754_v38, %v1017_v39  ;;  %v50_v23 = vadd.s32 32, %v3681_v55 }
 0x397   :  { %v966_v50 = vpop.f32.mrf.mxu1 }
 0x398   :  { %v1049_v7 = vadd.f32 %v1033_v22, %v976_v11  ;;  %v1012_v11 = vmul.f32 3.0, %v3659_v27  ;;  %vm68_vm0 = vcmp.eq.s32.totalorder %v50_v23, %v3683_v56 }
 0x399   :  { %v3792_v41 = vsel %vm68_vm0, 3.0, %v3400_v0 }
 0x39a   :  { %4947 = vst [vmem:[#allocation18_spill] sm:$0xff] %v3792_v41 }
 0x39d   :  { %v986_v47 = vpop.f32.mrf.mxu3 }
 0x39e   :  { %v1053_v30 = vadd.f32 %v1037_v63, %v986_v47  ;;  %v1016_v47 = vmul.f32 3.0, %v3639_v32  ;;  %v3760_v63 = vsel %vm73_vm12, 3.0, %v3400_v0  ;;  %v1014_v32 = vmul.f32 3.0, %v3672_v2 }
 0x39f   :  { %v3777_v2 = vsel %vm70_vm14, 3.0, %v3400_v0  ;;  %v968_v45 = vpop.f32.mrf.mxu1 }
 0x3a0   :  { %v1032_v17 = vsub.f32 %v3760_v63, %v1016_v47  ;;  %4946 = vst [vmem:[#allocation17_spill] sm:$0xff] %v3777_v2  ;;  %v1011_v47 = vmul.f32 3.0, %v3653_v19 }
 0x3a5   :  { %v988_v40 = vpop.f32.mrf.mxu3 }
 0x3a6   :  { %v1054_v43 = vadd.f32 %v1038_v1, %v988_v40  ;;  %v1050_v1 = vadd.f32 %v1034_v58, %v978_v14  ;;  %v1061_v40 = vpack.c.bf16 %v1052_v51, %v1051_v3  ;;  %v1013_v14 = vmul.f32 3.0, %v3665_v44 }
 0x3a7   :  { %v48_v51 = vadd.s32 16, %v3681_v55  ;;  %v47_v44 = vadd.s32 8, %v3681_v55 }
 0x3a8   :  { %v1062_v57 = vpack.c.bf16 %v1054_v43, %v1053_v30  ;;  %v3771_v30 = vsel %vm71_vm13, 3.0, %v3400_v0  ;;  %v1048_v43 = vadd.f32 %v1032_v17, %v3703_v10  ;;  %v1060_v39 = vpack.c.bf16 %v1050_v1, %v1049_v7 }
 0x3a9   :  { %v1030_v52 = vsub.f32 %v3771_v30, %v1014_v32  ;;  %v3786_v10 = vsel %vm69_vm15, 3.0, %v3400_v0  ;;  %v1029_v58 = vsub.f32 %v3777_v2, %v1013_v14  ;;  %vm66_vm2 = vcmp.eq.s32.totalorder %v48_v51, %v3683_v56 }
 0x3aa   :  { %1063 = vmatpush.bf16.msrb.mxu2 %v1062_v57  ;;  %v49_v57 = vadd.s32 24, %v3681_v55  ;;  %v1059_v27 = vpack.c.bf16 %v1048_v43, %v3699_v60  ;;  %v1028_v55 = vsub.f32 %v3786_v10, %v1012_v11  ;;  %vm65_vm3 = vcmp.eq.s32.totalorder %v47_v44, %v3683_v56 }
 0x3ab   :  { %v1046_v3 = vadd.f32 %v1030_v52, %v968_v45  ;;  %v1045_v22 = vadd.f32 %v1029_v58, %v966_v50  ;;  %v1009_v1 = vmul.f32 3.0, %v3645_v36  ;;  %v1027_v60 = vsub.f32 %v3792_v41, %v1011_v47 }
 0x3ac   :  { %vm67_vm1 = vcmp.eq.s32.totalorder %v49_v57, %v3683_v56  ;;  %v3805_v37 = vsel %vm66_vm2, 3.0, %v3400_v0  ;;  %v1008_v32 = vmul.f32 3.0, %v3641_v35  ;;  %v3811_v56 = vsel %vm65_vm3, 3.0, %v3400_v0 }
 0x3ad   :  { %v3799_v19 = vsel %vm67_vm1, 3.0, %v3400_v0  ;;  %v1058_v23 = vpack.c.bf16 %v1046_v3, %v1045_v22  ;;  %4948 = vst [vmem:[#allocation19_spill] sm:$0xff] %v3805_v37  ;;  %v1043_v17 = vadd.f32 %v1027_v60, %v3709_v20  ;;  %v1025_v36 = vsub.f32 %v3805_v37, %v1009_v1 }
 0x3ae   :  { %1064 = vmatpush.bf16.msrb.mxu2 %v1061_v40  ;;  %v1044_v40 = vadd.f32 %v1028_v55, %v3714_v46  ;;  %v1026_v50 = vsub.f32 %v3799_v19, %v1010_v62  ;;  %v1024_v46 = vsub.f32 %v3811_v56, %v1008_v32 }
 0x3af   :  { %v1041_v14 = vadd.f32 %v1025_v36, %v3705_v12 }
 0x3b0   :  { %v1042_v7 = vadd.f32 %v1026_v50, %v3707_v15  ;;  %v1057_v57 = vpack.c.bf16 %v1044_v40, %v1043_v17  ;;  %v1040_v35 = vadd.f32 %v1024_v46, %v3701_v8 }
 0x3b2   :  { %1065 = vmatpush.bf16.msrb.mxu2 %v1060_v39  ;;  %v1056_v43 = vpack.c.bf16 %v1042_v7, %v1041_v14  ;;  %v1055_v20 = vpack.c.bf16 %v1040_v35, %v3693_v4 }
 0x3b6   :  { %1066 = vmatpush.bf16.msrb.mxu2 %v1059_v27 }
 0x3ba   :  { %1067 = vmatpush.bf16.msrb.mxu2 %v1058_v23 }
 0x3be   :  { %1068 = vmatpush.bf16.msrb.mxu2 %v1057_v57 }
 0x3c2   :  { %1069 = vmatpush.bf16.msrb.mxu2 %v1056_v43 }
 0x3c6   :  { %1070 = vmatpush.bf16.msrb.mxu2 %v1055_v20 }
 0x3c9   :  { %1071 = vmatmul.bf16.vlgmr.msrb.gmra.mxu2 %v3571_v18 }
 0x3d9   :  { %1076 = vmatmul.bf16.gmra.mxu2 %v3578_v16 }
 0x3e9   :  { %1081 = vmatmul.bf16.gmra.mxu2 %v3585_v33 }
 0x3f9   :  { %1086 = vmatmul.bf16.gmra.mxu2 %v3587_v48 }
 0x409   :  { %1091 = vmatmul.bf16.gmra.mxu2 %v3591_v53 }
 0x419   :  { %1096 = vmatmul.bf16.gmra.mxu2 %v3601_v24 }
 0x429   :  { %1101 = vmatmul.bf16.gmra.mxu2 %v3597_v21 }
 0x439   :  { %1106 = vmatmul.bf16.gmra.mxu2 %v3593_v61 }
 0x44c   :  { %v1072_v0 = vpop.f32.mrf.mxu2 }
 0x454   :  { %v1074_v8 = vpop.f32.mrf.mxu2 }
 0x455   :  { %v3848_v62 = vpack.c.bf16 %v1074_v8, %v1072_v0 }
 0x45c   :  { %v1077_v4 = vpop.f32.mrf.mxu2 }
 0x464   :  { %v1079_v12 = vpop.f32.mrf.mxu2 }
 0x465   :  { %v3845_v27 = vpack.c.bf16 %v1079_v12, %v1077_v4 }
 0x46c   :  { %v1082_v15 = vpop.f32.mrf.mxu2 }
 0x474   :  { %v1084_v18 = vpop.f32.mrf.mxu2 }
 0x475   :  { %v3842_v3 = vpack.c.bf16 %v1084_v18, %v1082_v15 }
 0x47c   :  { %v1087_v39 = vpop.f32.mrf.mxu2 }
 0x484   :  { %v1089_v16 = vpop.f32.mrf.mxu2 }
 0x485   :  { %v3839_v58 = vpack.c.bf16 %v1089_v16, %v1087_v39 }
 0x48c   :  { %v1092_v45 = vpop.f32.mrf.mxu2 }
 0x494   :  { %v1094_v33 = vpop.f32.mrf.mxu2 }
 0x495   :  { %v3836_v47 = vpack.c.bf16 %v1094_v33, %v1092_v45 }
 0x49c   :  { %v1097_v11 = vpop.f32.mrf.mxu2 }
 0x4a4   :  { %v1099_v48 = vpop.f32.mrf.mxu2 }
 0x4a5   :  { %v3833_v21 = vpack.c.bf16 %v1099_v48, %v1097_v11 }
 0x4ac   :  { %v1102_v51 = vpop.f32.mrf.mxu2 }
 0x4b4   :  { %v1104_v53 = vpop.f32.mrf.mxu2 }
 0x4b5   :  { %v3830_v61 = vpack.c.bf16 %v1104_v53, %v1102_v51 }
 0x4bc   :  { %v1107_v52 = vpop.f32.mrf.mxu2 }
 0x4c4   :  { %v1109_v24 = vpop.f32.mrf.mxu2 }
 0x4c5   :  { %v3827_v44 = vpack.c.bf16 %v1109_v24, %v1107_v52 }
 0x4c7   :  { %1120 = vmatpush.bf16.msrb.mxu3 %v3827_v44 }
 0x4cb   :  { %1121 = vmatpush.bf16.msrb.mxu3 %v3830_v61 }
 0x4cf   :  { %1122 = vmatpush.bf16.msrb.mxu3 %v3833_v21 }
 0x4d3   :  { %1123 = vmatpush.bf16.msrb.mxu3 %v3836_v47 }
 0x4d7   :  { %1124 = vmatpush.bf16.msrb.mxu3 %v3839_v58 }
 0x4db   :  { %1125 = vmatpush.bf16.msrb.mxu3 %v3842_v3 }
 0x4df   :  { %1126 = vmatpush.bf16.msrb.mxu3 %v3845_v27 }
 0x4e3   :  { %1127 = vmatpush.bf16.msrb.mxu3 %v3848_v62 }
 0x4e6   :  { %1128 = vmatmul.bf16.vlgmr.msrb.gmra.mxu3 %v3613_v25 }
 0x4f6   :  { %1133 = vmatmul.bf16.gmra.mxu3 %v3621_v29 }
 0x506   :  { %1138 = vmatmul.bf16.gmra.mxu3 %v3627_v34 }
 0x516   :  { %1143 = vmatmul.bf16.gmra.mxu3 %v3633_v9 }
 0x526   :  { %1148 = vmatmul.bf16.gmra.mxu3 %v3617_v28 }
 0x536   :  { %1153 = vmatmul.bf16.gmra.mxu3 %v3623_v31 }
 0x546   :  { %1158 = vmatmul.bf16.gmra.mxu3 %v3629_v26 }
 0x556   :  { %1163 = vmatmul.bf16.gmra.mxu3 %v3635_v13 }
 0x569   :  { %v1129_v55 = vpop.f32.mrf.mxu3 }
 0x56a   :  { %v1226_v16 = vmul.f32 3.0, %v1129_v55 }
 0x56c   :  { %v1242_v45 = vsub.f32 %v3689_v59, %v1226_v16 }
 0x571   :  { %v3859_v22 = vpop.f32.mrf.mxu3 }
 0x572   :  { %v1169_v39 = vpack.c.bf16 %v3859_v22, %v1129_v55 }
 0x579   :  { %v1134_v1 = vpop.f32.mrf.mxu3 }
 0x57a   :  { %v1228_v51 = vmul.f32 3.0, %v1134_v1 }
 0x57c   :  { %v1244_v53 = vsub.f32 %v3805_v37, %v1228_v51 }
 0x581   :  { %v3861_v60 = vpop.f32.mrf.mxu3 }
 0x582   :  { %v1170_v18 = vpack.c.bf16 %v3861_v60, %v1134_v1 }
 0x589   :  { %v1139_v40 = vpop.f32.mrf.mxu3 }
 0x591   :  { %v3863_v23 = vpop.f32.mrf.mxu3 }
 0x592   :  { %v1171_v15 = vpack.c.bf16 %v3863_v23, %v1139_v40 }
 0x599   :  { %v1144_v32 = vpop.f32.mrf.mxu3 }
 0x5a1   :  { %v3865_v50 = vpop.f32.mrf.mxu3 }
 0x5a2   :  { %v1172_v12 = vpack.c.bf16 %v3865_v50, %v1144_v32 }
 0x5a9   :  { %v1149_v17 = vpop.f32.mrf.mxu3 }
 0x5b1   :  { %v3867_v36 = vpop.f32.mrf.mxu3 }
 0x5b2   :  { %v1173_v4 = vpack.c.bf16 %v3867_v36, %v1149_v17 }
 0x5b9   :  { %v3869_v7 = vpop.f32.mrf.mxu3 }
 0x5c1   :  { %v3871_v57 = vpop.f32.mrf.mxu3 }
 0x5c2   :  { %v1174_v8 = vpack.c.bf16 %v3871_v57, %v3869_v7 }
 0x5c9   :  { %v1159_v46 = vpop.f32.mrf.mxu3 }
 0x5d1   :  { %v1161_v14 = vpop.f32.mrf.mxu3 }
 0x5d2   :  { %v1175_v0 = vpack.c.bf16 %v1161_v14, %v1159_v46 }
 0x5d9   :  { %v1164_v35 = vpop.f32.mrf.mxu3 }
 0x5e1   :  { %v1166_v43 = vpop.f32.mrf.mxu3 }
 0x5e2   :  { %v1176_v20 = vpack.c.bf16 %v1166_v43, %v1164_v35 }
 0x5e4   :  { %1177 = vmatpush.bf16.msrb.mxu0 %v1176_v20 }
 0x5e8   :  { %1178 = vmatpush.bf16.msrb.mxu0 %v1175_v0 }
 0x5ec   :  { %1179 = vmatpush.bf16.msrb.mxu0 %v1174_v8 }
 0x5f0   :  { %1180 = vmatpush.bf16.msrb.mxu0 %v1173_v4 }
 0x5f4   :  { %1181 = vmatpush.bf16.msrb.mxu0 %v1172_v12 }
 0x5f8   :  { %1182 = vmatpush.bf16.msrb.mxu0 %v1171_v15 }
 0x5fc   :  { %1183 = vmatpush.bf16.msrb.mxu0 %v1170_v18 }
 0x600   :  { %1184 = vmatpush.bf16.msrb.mxu0 %v1169_v39 }
 0x603   :  { %1185 = vmatmul.bf16.vlgmr.msrb.gmra.mxu0 %v1169_v39 }
 0x613   :  { %1190 = vmatmul.bf16.gmra.mxu0 %v1170_v18 }
 0x623   :  { %1195 = vmatmul.bf16.gmra.mxu0 %v1171_v15 }
 0x633   :  { %1200 = vmatmul.bf16.gmra.mxu0 %v1172_v12  ;;  %v1230_v12 = vmul.f32 3.0, %v1139_v40 }
 0x643   :  { %1205 = vmatmul.bf16.gmra.mxu0 %v1173_v4  ;;  %v1232_v4 = vmul.f32 3.0, %v1144_v32  ;;  %v1238_v32 = vmul.f32 3.0, %v1159_v46 }
 0x645   :  { %v1248_v18 = vsub.f32 %v3777_v2, %v1232_v4  ;;  %v4949_v2 = vld [vmem:[#allocation16_spill] sm:$0xff]  ;;  %v1254_v26 = vsub.f32 %v3742_v6, %v1238_v32 }
 0x653   :  { %1210 = vmatmul.bf16.gmra.mxu0 %v1174_v8  ;;  %v1246_v8 = vsub.f32 %v3792_v41, %v1230_v12  ;;  %v1240_v41 = vmul.f32 3.0, %v1164_v35 }
 0x655   :  { %v1256_v4 = vsub.f32 %v3725_v54, %v1240_v41 }
 0x663   :  { %1215 = vmatmul.bf16.gmra.mxu0 %v1175_v0 }
 0x673   :  { %1220 = vmatmul.bf16.gmra.mxu0 %v1176_v20 }
 0x680   :  { %v1186_v33 = vpop.f32.mrf.mxu0 }
 0x681   :  { %v3881_v11 = vadd.f32 %v1242_v45, %v1186_v33  ;;  %v1234_v33 = vmul.f32 3.0, %v1149_v17  ;;  %v1237_v17 = vmul.f32 3.0, %v3871_v57 }
 0x683   :  { %v1250_v1 = vsub.f32 %v3696_v5, %v1234_v33  ;;  %v1236_v5 = vmul.f32 3.0, %v3869_v7  ;;  %v1253_v46 = vsub.f32 %v3749_v49, %v1237_v17 }
 0x688   :  { %v3883_v48 = vpop.f32.mrf.mxu0 }
 0x690   :  { %v1191_v52 = vpop.f32.mrf.mxu0 }
 0x691   :  { %v3886_v24 = vadd.f32 %v1244_v53, %v1191_v52 }
 0x698   :  { %v1193_v15 = vpop.f32.mrf.mxu0 }
 0x6a0   :  { %v1196_v0 = vpop.f32.mrf.mxu0 }
 0x6a1   :  { %v1262_v20 = vadd.f32 %v1246_v8, %v1196_v0  ;;  %v1241_v8 = vmul.f32 3.0, %v1166_v43  ;;  %v1239_v0 = vmul.f32 3.0, %v1161_v14  ;;  %v1235_v14 = vmul.f32 3.0, %v3867_v36 }
 0x6a2   :  { %v1252_v43 = vsub.f32 %v3754_v38, %v1236_v5 }
 0x6a3   :  { %v1255_v33 = vsub.f32 %v3734_v42, %v1239_v0  ;;  %v1233_v0 = vmul.f32 3.0, %v3865_v50  ;;  %v1227_v50 = vmul.f32 3.0, %v3859_v22 }
 0x6a5   :  { %v1249_v36 = vsub.f32 %v3771_v30, %v1233_v0 }
 0x6a8   :  { %v1198_v55 = vpop.f32.mrf.mxu0 }
 0x6b0   :  { %v1201_v39 = vpop.f32.mrf.mxu0 }
 0x6b1   :  { %v1264_v16 = vadd.f32 %v1248_v18, %v1201_v39  ;;  %v1257_v18 = vsub.f32 %v4949_v2, %v1241_v8 }
 0x6b8   :  { %v1203_v45 = vpop.f32.mrf.mxu0 }
 0x6c0   :  { %v1206_v51 = vpop.f32.mrf.mxu0 }
 0x6c1   :  { %v1266_v37 = vadd.f32 %v1250_v1, %v1206_v51 }
 0x6c8   :  { %v1208_v53 = vpop.f32.mrf.mxu0 }
 0x6d0   :  { %v1211_v52 = vpop.f32.mrf.mxu0 }
 0x6d8   :  { %v1213_v59 = vpop.f32.mrf.mxu0 }
 0x6d9   :  { %v1269_v8 = vadd.f32 %v1253_v46, %v1213_v59 }
 0x6e0   :  { %v1216_v40 = vpop.f32.mrf.mxu0 }
 0x6e1   :  { %v1270_v41 = vadd.f32 %v1254_v26, %v1216_v40  ;;  %v1229_v40 = vmul.f32 3.0, %v3861_v60 }
 0x6e8   :  { %v1218_v13 = vpop.f32.mrf.mxu0 }
 0x6e9   :  { %v1271_v31 = vadd.f32 %v1255_v33, %v1218_v13  ;;  %v1231_v13 = vmul.f32 3.0, %v3863_v23  ;;  %v1243_v23 = vsub.f32 %v3811_v56, %v1227_v50 }
 0x6eb   :  { %v1280_v57 = vpack.c.bf16 %v1271_v31, %v1270_v41  ;;  %v1247_v59 = vsub.f32 %v3786_v10, %v1231_v13 }
 0x6ed   :  { %v1263_v31 = vadd.f32 %v1247_v59, %v1198_v55 }
 0x6f0   :  { %v1221_v12 = vpop.f32.mrf.mxu0 }
 0x6f1   :  { %v1272_v1 = vadd.f32 %v1256_v4, %v1221_v12  ;;  %v1251_v12 = vsub.f32 %v3760_v63, %v1235_v14  ;;  %v1268_v4 = vadd.f32 %v1252_v43, %v1211_v52  ;;  %v1245_v52 = vsub.f32 %v3799_v19, %v1229_v40  ;;  %v4950_v43 = vld [vmem:[#allocation11_spill] sm:$0xff] }
 0x6f3   :  { %v1267_v7 = vadd.f32 %v1251_v12, %v1208_v53  ;;  %v1279_v32 = vpack.c.bf16 %v1269_v8, %v1268_v4  ;;  %v1261_v53 = vadd.f32 %v1245_v52, %v1193_v15  ;;  %v4951_v8 = vld [vmem:[#allocation12_spill] sm:$0xff] }
 0x6f5   :  { %v1278_v26 = vpack.c.bf16 %v1267_v7, %v1266_v37  ;;  %v1275_v37 = vpack.c.bf16 %v1261_v53, %v3886_v24 }
 0x6f8   :  { %v1223_v39 = vpop.f32.mrf.mxu0 }
 0x6f9   :  { %v1273_v51 = vadd.f32 %v1257_v18, %v1223_v39  ;;  %v1265_v18 = vadd.f32 %v1249_v36, %v1203_v45  ;;  %v1276_v39 = vpack.c.bf16 %v1263_v31, %v1262_v20  ;;  %v1259_v45 = vadd.f32 %v1243_v23, %v3883_v48 }
 0x6fb   :  { %v1281_v35 = vpack.c.bf16 %v1273_v51, %v1272_v1  ;;  %v1277_v5 = vpack.c.bf16 %v1265_v18, %v1264_v16  ;;  %v1274_v60 = vpack.c.bf16 %v1259_v45, %v3881_v11 }
 0x6fd   :  { %1282 = vmatpush.bf16.msrb.mxu1 %v1281_v35 }
 0x701   :  { %1283 = vmatpush.bf16.msrb.mxu1 %v1280_v57  ;;  %v4952_v57 = vld [vmem:[#allocation13_spill] sm:$0xff] }
 0x705   :  { %1284 = vmatpush.bf16.msrb.mxu1 %v1279_v32 }
 0x709   :  { %1285 = vmatpush.bf16.msrb.mxu1 %v1278_v26 }
 0x70d   :  { %1286 = vmatpush.bf16.msrb.mxu1 %v1277_v5 }
 0x711   :  { %1287 = vmatpush.bf16.msrb.mxu1 %v1276_v39 }
 0x715   :  { %1288 = vmatpush.bf16.msrb.mxu1 %v1275_v37 }
 0x719   :  { %1289 = vmatpush.bf16.msrb.mxu1 %v1274_v60  ;;  %v4953_v60 = vld [vmem:[#allocation14_spill] sm:$0xff] }
 0x71c   :  { %1290 = vmatmul.bf16.vlgmr.msrb.gmra.mxu1 %v3848_v62 }
 0x72c   :  { %1295 = vmatmul.bf16.gmra.mxu1 %v3845_v27 }
 0x73c   :  { %1300 = vmatmul.bf16.gmra.mxu1 %v3842_v3 }
 0x74c   :  { %1305 = vmatmul.bf16.gmra.mxu1 %v3839_v58 }
 0x75c   :  { %1310 = vmatmul.bf16.gmra.mxu1 %v3836_v47 }
 0x76c   :  { %1315 = vmatmul.bf16.gmra.mxu1 %v3833_v21 }
 0x77c   :  { %1320 = vmatmul.bf16.gmra.mxu1 %v3830_v61 }
 0x78c   :  { %1325 = vmatmul.bf16.gmra.mxu1 %v3827_v44 }
 0x799   :  { %v1291_v22 = vpop.f32.mrf.mxu1 }
 0x7a1   :  { %v1293_v48 = vpop.f32.mrf.mxu1 }
 0x7a2   :  { %v3941_v41 = vpack.c.bf16 %v1293_v48, %v1291_v22 }
 0x7a9   :  { %v1296_v11 = vpop.f32.mrf.mxu1 }
 0x7b1   :  { %v1298_v24 = vpop.f32.mrf.mxu1 }
 0x7b2   :  { %v3938_v46 = vpack.c.bf16 %v1298_v24, %v1296_v11 }
 0x7b9   :  { %v1301_v15 = vpop.f32.mrf.mxu1 }
 0x7c1   :  { %v1303_v62 = vpop.f32.mrf.mxu1 }
 0x7c2   :  { %v3935_v14 = vpack.c.bf16 %v1303_v62, %v1301_v15  ;;  %v4954_v62 = vld [vmem:[#allocation19_spill] sm:$0xff] }
 0x7c9   :  { %v1306_v20 = vpop.f32.mrf.mxu1 }
 0x7d1   :  { %v1308_v27 = vpop.f32.mrf.mxu1 }
 0x7d2   :  { %v3932_v35 = vpack.c.bf16 %v1308_v27, %v1306_v20 }
 0x7d9   :  { %v1311_v55 = vpop.f32.mrf.mxu1 }
 0x7e1   :  { %v1313_v3 = vpop.f32.mrf.mxu1 }
 0x7e2   :  { %v3929_v51 = vpack.c.bf16 %v1313_v3, %v1311_v55 }
 0x7e9   :  { %v1316_v16 = vpop.f32.mrf.mxu1 }
 0x7f1   :  { %v1318_v58 = vpop.f32.mrf.mxu1 }
 0x7f2   :  { %v3926_v61 = vpack.c.bf16 %v1318_v58, %v1316_v16  ;;  %v4955_v58 = vld [vmem:[#allocation18_spill] sm:$0xff] }
 0x7f9   :  { %v1321_v17 = vpop.f32.mrf.mxu1 }
 0x801   :  { %v1323_v47 = vpop.f32.mrf.mxu1 }
 0x802   :  { %v3923_v44 = vpack.c.bf16 %v1323_v47, %v1321_v17 }
 0x809   :  { %v1326_v33 = vpop.f32.mrf.mxu1 }
 0x811   :  { %v1328_v21 = vpop.f32.mrf.mxu1 }
 0x812   :  { %v3920_v1 = vpack.c.bf16 %v1328_v21, %v1326_v33 }
 0x814   :  { %1339 = vmatpush.bf16.msra.mxu2 %v3920_v1 }
 0x818   :  { %1340 = vmatpush.bf16.msra.mxu2 %v3923_v44 }
 0x81c   :  { %1341 = vmatpush.bf16.msra.mxu2 %v3926_v61 }
 0x820   :  { %1342 = vmatpush.bf16.msra.mxu2 %v3929_v51 }
 0x824   :  { %1343 = vmatpush.bf16.msra.mxu2 %v3932_v35 }
 0x828   :  { %1344 = vmatpush.bf16.msra.mxu2 %v3935_v14 }
 0x82c   :  { %1345 = vmatpush.bf16.msra.mxu2 %v3938_v46 }
 0x830   :  { %1346 = vmatpush.bf16.msra.mxu2 %v3941_v41 }
 0x833   :  { %1347 = vmatmul.bf16.vlgmr.msra.gmra.mxu2 %v3613_v25 }
 0x843   :  { %1352 = vmatmul.bf16.gmra.mxu2 %v3621_v29 }
 0x853   :  { %1357 = vmatmul.bf16.gmra.mxu2 %v3627_v34 }
 0x863   :  { %1362 = vmatmul.bf16.gmra.mxu2 %v3633_v9 }
 0x873   :  { %1367 = vmatmul.bf16.gmra.mxu2 %v3617_v28 }
 0x883   :  { %1372 = vmatmul.bf16.gmra.mxu2 %v4950_v43 }
 0x893   :  { %1377 = vmatmul.bf16.gmra.mxu2 %v4951_v8  ;;  %v4956_v8 = vld [vmem:[#allocation17_spill] sm:$0xff] }
 0x8a3   :  { %1382 = vmatmul.bf16.gmra.mxu2 %v4952_v57 }
 0x8b6   :  { %v1348_v0 = vpop.f32.mrf.mxu2 }
 0x8b7   :  { %v1445_v37 = vmul.f32 3.0, %v1348_v0 }
 0x8b9   :  { %v1461_v22 = vsub.f32 %v4953_v60, %v1445_v37 }
 0x8be   :  { %v3952_v12 = vpop.f32.mrf.mxu2 }
 0x8bf   :  { %v1388_v45 = vpack.c.bf16 %v3952_v12, %v1348_v0 }
 0x8c6   :  { %v1353_v4 = vpop.f32.mrf.mxu2 }
 0x8c7   :  { %v1447_v15 = vmul.f32 3.0, %v1353_v4 }
 0x8c9   :  { %v1463_v20 = vsub.f32 %v4954_v62, %v1447_v15 }
 0x8ce   :  { %v3954_v7 = vpop.f32.mrf.mxu2 }
 0x8cf   :  { %v1389_v23 = vpack.c.bf16 %v3954_v7, %v1353_v4  ;;  %v4957_v4 = vld [vmem:[#allocation15_spill] sm:$0xff] }
 0x8d6   :  { %v1358_v25 = vpop.f32.mrf.mxu2 }
 0x8d7   :  { %v1449_v16 = vmul.f32 3.0, %v1358_v25 }
 0x8d9   :  { %v1465_v17 = vsub.f32 %v4955_v58, %v1449_v16 }
 0x8de   :  { %v3956_v29 = vpop.f32.mrf.mxu2 }
 0x8df   :  { %v1390_v39 = vpack.c.bf16 %v3956_v29, %v1358_v25 }
 0x8e6   :  { %v1363_v34 = vpop.f32.mrf.mxu2 }
 0x8e7   :  { %v1451_v43 = vmul.f32 3.0, %v1363_v34 }
 0x8e9   :  { %v1467_v57 = vsub.f32 %v4956_v8, %v1451_v43 }
 0x8ee   :  { %v3958_v32 = vpop.f32.mrf.mxu2 }
 0x8ef   :  { %v1391_v53 = vpack.c.bf16 %v3958_v32, %v1363_v34 }
 0x8f6   :  { %v1368_v9 = vpop.f32.mrf.mxu2 }
 0x8fe   :  { %v3960_v28 = vpop.f32.mrf.mxu2 }
 0x8ff   :  { %v1392_v52 = vpack.c.bf16 %v3960_v28, %v1368_v9 }
 0x906   :  { %v3962_v13 = vpop.f32.mrf.mxu2 }
 0x90e   :  { %v3964_v36 = vpop.f32.mrf.mxu2 }
 0x90f   :  { %v1393_v50 = vpack.c.bf16 %v3964_v36, %v3962_v13 }
 0x916   :  { %v1378_v18 = vpop.f32.mrf.mxu2 }
 0x917   :  { %v1457_v34 = vmul.f32 3.0, %v1378_v18 }
 0x91e   :  { %v1380_v26 = vpop.f32.mrf.mxu2 }
 0x91f   :  { %v1394_v5 = vpack.c.bf16 %v1380_v26, %v1378_v18 }
 0x926   :  { %v1383_v40 = vpop.f32.mrf.mxu2 }
 0x927   :  { %v1459_v15 = vmul.f32 3.0, %v1383_v40 }
 0x929   :  { %v1475_v16 = vsub.f32 %v3725_v54, %v1459_v15 }
 0x92e   :  { %v1385_v59 = vpop.f32.mrf.mxu2 }
 0x92f   :  { %v1395_v31 = vpack.c.bf16 %v1385_v59, %v1383_v40 }
 0x931   :  { %1396 = vmatpush.bf16.msra.mxu3 %v1395_v31 }
 0x935   :  { %1397 = vmatpush.bf16.msra.mxu3 %v1394_v5 }
 0x939   :  { %1398 = vmatpush.bf16.msra.mxu3 %v1393_v50 }
 0x93d   :  { %1399 = vmatpush.bf16.msra.mxu3 %v1392_v52 }
 0x941   :  { %1400 = vmatpush.bf16.msra.mxu3 %v1391_v53 }
 0x945   :  { %1401 = vmatpush.bf16.msra.mxu3 %v1390_v39 }
 0x949   :  { %1402 = vmatpush.bf16.msra.mxu3 %v1389_v23 }
 0x94d   :  { %1403 = vmatpush.bf16.msra.mxu3 %v1388_v45 }
 0x950   :  { %1404 = vmatmul.bf16.vlgmr.msra.gmra.mxu3 %v1388_v45 }
 0x960   :  { %1409 = vmatmul.bf16.gmra.mxu3 %v1389_v23 }
 0x970   :  { %1414 = vmatmul.bf16.gmra.mxu3 %v1390_v39 }
 0x980   :  { %1419 = vmatmul.bf16.gmra.mxu3 %v1391_v53 }
 0x990   :  { %1424 = vmatmul.bf16.gmra.mxu3 %v1392_v52 }
 0x9a0   :  { %1429 = vmatmul.bf16.gmra.mxu3 %v1393_v50  ;;  %v1453_v50 = vmul.f32 3.0, %v1368_v9  ;;  %v1456_v9 = vmul.f32 3.0, %v3964_v36 }
 0x9a2   :  { %v1469_v52 = vsub.f32 %v4957_v4, %v1453_v50  ;;  %v1455_v50 = vmul.f32 3.0, %v3962_v13  ;;  %v1472_v18 = vsub.f32 %v3749_v49, %v1456_v9 }
 0x9a4   :  { %v1471_v15 = vsub.f32 %v3754_v38, %v1455_v50 }
 0x9b0   :  { %1434 = vmatmul.bf16.gmra.mxu3 %v1394_v5 }
 0x9c0   :  { %1439 = vmatmul.bf16.gmra.mxu3 %v1395_v31 }
 0x9d3   :  { %v1405_v48 = vpop.f32.mrf.mxu3 }
 0x9d4   :  { %v3974_v11 = vadd.f32 %v1461_v22, %v1405_v48 }
 0x9db   :  { %v3976_v24 = vpop.f32.mrf.mxu3 }
 0x9e3   :  { %v1410_v27 = vpop.f32.mrf.mxu3 }
 0x9e4   :  { %v3979_v55 = vadd.f32 %v1463_v20, %v1410_v27  ;;  %v1460_v20 = vmul.f32 3.0, %v1385_v59  ;;  %v1458_v27 = vmul.f32 3.0, %v1380_v26  ;;  %v1454_v26 = vmul.f32 3.0, %v3960_v28 }
 0x9e6   :  { %v1474_v43 = vsub.f32 %v3734_v42, %v1458_v27  ;;  %v1452_v27 = vmul.f32 3.0, %v3958_v32 }
 0x9e8   :  { %v1468_v28 = vsub.f32 %v3771_v30, %v1452_v27  ;;  %v4046_v27 = vld [vmem:[#allocation3 + $0x10] sm:$0xff] }
 0x9e9   :  { %4958 = vst [vmem:[#allocation16_spill] sm:$0xff] %v4046_v27 }
 0x9eb   :  { %v1412_v3 = vpop.f32.mrf.mxu3 }
 0x9f3   :  { %v1415_v47 = vpop.f32.mrf.mxu3 }
 0x9f4   :  { %v1481_v33 = vadd.f32 %v1465_v17, %v1415_v47  ;;  %v1476_v17 = vsub.f32 %v4949_v2, %v1460_v20 }
 0x9fb   :  { %v1417_v21 = vpop.f32.mrf.mxu3 }
 0xa03   :  { %v1420_v0 = vpop.f32.mrf.mxu3 }
 0xa04   :  { %v1483_v31 = vadd.f32 %v1467_v57, %v1420_v0 }
 0xa0b   :  { %v1422_v5 = vpop.f32.mrf.mxu3 }
 0xa13   :  { %v1425_v53 = vpop.f32.mrf.mxu3 }
 0xa14   :  { %v1485_v39 = vadd.f32 %v1469_v52, %v1425_v53  ;;  %v1473_v52 = vsub.f32 %v3742_v6, %v1457_v34 }
 0xa1b   :  { %v1427_v23 = vpop.f32.mrf.mxu3 }
 0xa23   :  { %v1430_v45 = vpop.f32.mrf.mxu3 }
 0xa2b   :  { %v1432_v37 = vpop.f32.mrf.mxu3 }
 0xa2c   :  { %v1488_v20 = vadd.f32 %v1472_v18, %v1432_v37 }
 0xa33   :  { %v1435_v25 = vpop.f32.mrf.mxu3 }
 0xa34   :  { %v1489_v59 = vadd.f32 %v1473_v52, %v1435_v25 }
 0xa3b   :  { %v1437_v22 = vpop.f32.mrf.mxu3 }
 0xa3c   :  { %v1490_v53 = vadd.f32 %v1474_v43, %v1437_v22  ;;  %v1450_v22 = vmul.f32 3.0, %v3956_v29  ;;  %v1446_v43 = vmul.f32 3.0, %v3952_v12 }
 0xa3e   :  { %v1499_v36 = vpack.c.bf16 %v1490_v53, %v1489_v59  ;;  %v1466_v37 = vsub.f32 %v3786_v10, %v1450_v22  ;;  %v1462_v29 = vsub.f32 %v3811_v56, %v1446_v43 }
 0xa40   :  { %v1482_v9 = vadd.f32 %v1466_v37, %v1417_v21 }
 0xa43   :  { %v1440_v48 = vpop.f32.mrf.mxu3 }
 0xa44   :  { %v1491_v57 = vadd.f32 %v1475_v16, %v1440_v48  ;;  %v1470_v48 = vsub.f32 %v3760_v63, %v1454_v26  ;;  %v1487_v16 = vadd.f32 %v1471_v15, %v1430_v45  ;;  %v4037_v15 = vld [vmem:[#allocation3 + $0x30] sm:$0xff] }
 0xa46   :  { %v1486_v13 = vadd.f32 %v1470_v48, %v1427_v23  ;;  %v1498_v34 = vpack.c.bf16 %v1488_v20, %v1487_v16  ;;  %v4040_v20 = vld [vmem:[#allocation3] sm:$0xff]  ;;  %v4049_v48 = vld [vmem:[#allocation3 + $0x8] sm:$0xff] }
 0xa47   :  { %4959 = vst [vmem:[#allocation11_spill] sm:$0xff] %v4049_v48  ;;  %v4052_v16 = vld [vmem:[#allocation3 + $0x20] sm:$0xff] }
 0xa48   :  { %v1497_v25 = vpack.c.bf16 %v1486_v13, %v1485_v39  ;;  %4960 = vst [vmem:[#allocation12_spill] sm:$0xff] %v4052_v16  ;;  %v4055_v13 = vld [vmem:[#allocation3 + $0x28] sm:$0xff] }
 0xa49   :  { %4961 = vst [vmem:[#allocation13_spill] sm:$0xff] %v4055_v13 }
 0xa4b   :  { %v1442_v47 = vpop.f32.mrf.mxu3 }
 0xa4c   :  { %v1492_v0 = vadd.f32 %v1476_v17, %v1442_v47  ;;  %v1484_v17 = vadd.f32 %v1468_v28, %v1422_v5  ;;  %v1448_v47 = vmul.f32 3.0, %v3954_v7  ;;  %v1478_v5 = vadd.f32 %v1462_v29, %v3976_v24 }
 0xa4e   :  { %v1500_v40 = vpack.c.bf16 %v1492_v0, %v1491_v57  ;;  %v1496_v32 = vpack.c.bf16 %v1484_v17, %v1483_v31  ;;  %v1464_v45 = vsub.f32 %v3799_v19, %v1448_v47  ;;  %v1495_v57 = vpack.c.bf16 %v1482_v9, %v1481_v33 }
 0xa4f   :  { %v1493_v7 = vpack.c.bf16 %v1478_v5, %v3974_v11 }
 0xa50   :  { %1501 = vmatpush.bf16.msra.mxu0 %v1500_v40  ;;  %v1480_v23 = vadd.f32 %v1464_v45, %v1412_v3 }
 0xa52   :  { %v1494_v39 = vpack.c.bf16 %v1480_v23, %v3979_v55 }
 0xa54   :  { %1502 = vmatpush.bf16.msra.mxu0 %v1499_v36  ;;  %v4043_v36 = vld [vmem:[#allocation3 + $0x18] sm:$0xff] }
 0xa58   :  { %1503 = vmatpush.bf16.msra.mxu0 %v1498_v34  ;;  %v4058_v34 = vld [vmem:[#allocation3 + $0x38] sm:$0xff] }
 0xa59   :  { %4962 = vst [vmem:[#allocation20_spill] sm:$0xff] %v4058_v34 }
 0xa5c   :  { %1504 = vmatpush.bf16.msra.mxu0 %v1497_v25 }
 0xa60   :  { %1505 = vmatpush.bf16.msra.mxu0 %v1496_v32 }
 0xa64   :  { %1506 = vmatpush.bf16.msra.mxu0 %v1495_v57 }
 0xa68   :  { %1507 = vmatpush.bf16.msra.mxu0 %v1494_v39 }
 0xa6c   :  { %1508 = vmatpush.bf16.msra.mxu0 %v1493_v7 }
 0xa6f   :  { %1509 = vmatmul.bf16.vlgmr.msra.gmra.mxu0 %v3941_v41 }
 0xa7f   :  { %1514 = vmatmul.bf16.gmra.mxu0 %v3938_v46 }
 0xa8f   :  { %1519 = vmatmul.bf16.gmra.mxu0 %v3935_v14 }
 0xa9f   :  { %1524 = vmatmul.bf16.gmra.mxu0 %v3932_v35 }
 0xaaf   :  { %1529 = vmatmul.bf16.gmra.mxu0 %v3929_v51 }
 0xabf   :  { %1534 = vmatmul.bf16.gmra.mxu0 %v3926_v61 }
 0xacf   :  { %1539 = vmatmul.bf16.gmra.mxu0 %v3923_v44 }
 0xadf   :  { %1544 = vmatmul.bf16.gmra.mxu0 %v3920_v1 }
 0xaec   :  { %v1510_v12 = vpop.f32.mrf.mxu0 }
 0xaf4   :  { %v1512_v24 = vpop.f32.mrf.mxu0 }
 0xaf5   :  { %v4034_v59 = vpack.c.bf16 %v1512_v24, %v1510_v12 }
 0xafc   :  { %v1515_v11 = vpop.f32.mrf.mxu0 }
 0xb04   :  { %v1517_v55 = vpop.f32.mrf.mxu0 }
 0xb05   :  { %v4031_v18 = vpack.c.bf16 %v1517_v55, %v1515_v11 }
 0xb0c   :  { %v1520_v3 = vpop.f32.mrf.mxu0 }
 0xb14   :  { %v1522_v41 = vpop.f32.mrf.mxu0 }
 0xb15   :  { %v4028_v26 = vpack.c.bf16 %v1522_v41, %v1520_v3 }
 0xb1c   :  { %v1525_v33 = vpop.f32.mrf.mxu0 }
 0xb24   :  { %v1527_v46 = vpop.f32.mrf.mxu0 }
 0xb25   :  { %v4025_v40 = vpack.c.bf16 %v1527_v46, %v1525_v33 }
 0xb2c   :  { %v1530_v21 = vpop.f32.mrf.mxu0 }
 0xb34   :  { %v1532_v14 = vpop.f32.mrf.mxu0 }
 0xb35   :  { %v4022_v53 = vpack.c.bf16 %v1532_v14, %v1530_v21 }
 0xb3c   :  { %v1535_v31 = vpop.f32.mrf.mxu0 }
 0xb44   :  { %v1537_v35 = vpop.f32.mrf.mxu0 }
 0xb45   :  { %v4019_v44 = vpack.c.bf16 %v1537_v35, %v1535_v31 }
 0xb4c   :  { %v1540_v0 = vpop.f32.mrf.mxu0 }
 0xb54   :  { %v1542_v51 = vpop.f32.mrf.mxu0 }
 0xb55   :  { %v4016_v1 = vpack.c.bf16 %v1542_v51, %v1540_v0 }
 0xb5c   :  { %v1545_v50 = vpop.f32.mrf.mxu0 }
 0xb64   :  { %v1547_v61 = vpop.f32.mrf.mxu0 }
 0xb65   :  { %v4013_v52 = vpack.c.bf16 %v1547_v61, %v1545_v50 }
 0xb67   :  { %1558 = vmatpush.bf16.msra.mxu1 %v4013_v52 }
 0xb6b   :  { %1559 = vmatpush.bf16.msra.mxu1 %v4016_v1 }
 0xb6f   :  { %1560 = vmatpush.bf16.msra.mxu1 %v4019_v44 }
 0xb73   :  { %1561 = vmatpush.bf16.msra.mxu1 %v4022_v53 }
 0xb77   :  { %1562 = vmatpush.bf16.msra.mxu1 %v4025_v40 }
 0xb7b   :  { %1563 = vmatpush.bf16.msra.mxu1 %v4028_v26 }
 0xb7f   :  { %1564 = vmatpush.bf16.msra.mxu1 %v4031_v18 }
 0xb83   :  { %1565 = vmatpush.bf16.msra.mxu1 %v4034_v59 }
 0xb86   :  { %1566 = vmatmul.bf16.vlgmr.msra.gmra.mxu1 %v4037_v15 }
 0xb96   :  { %1571 = vmatmul.bf16.gmra.mxu1 %v4040_v20 }
 0xba6   :  { %1576 = vmatmul.bf16.gmra.mxu1 %v4043_v36 }
 0xbb6   :  { %1581 = vmatmul.bf16.gmra.mxu1 %v4046_v27 }
 0xbc6   :  { %1586 = vmatmul.bf16.gmra.mxu1 %v4049_v48 }
 0xbd6   :  { %1591 = vmatmul.bf16.gmra.mxu1 %v4052_v16 }
 0xbe6   :  { %1596 = vmatmul.bf16.gmra.mxu1 %v4055_v13 }
 0xbf6   :  { %1601 = vmatmul.bf16.gmra.mxu1 %v4058_v34 }
 0xc03   :  { %v1567_v22 = vpop.f32.mrf.mxu1 }
 0xc04   :  { %v1664_v21 = vmul.f32 3.0, %v1567_v22 }
 0xc06   :  { %v1680_v14 = vsub.f32 %v4953_v60, %v1664_v21 }
 0xc0b   :  { %v4061_v28 = vpop.f32.mrf.mxu1 }
 0xc0c   :  { %v1607_v46 = vpack.c.bf16 %v4061_v28, %v1567_v22 }
 0xc13   :  { %v1572_v17 = vpop.f32.mrf.mxu1 }
 0xc14   :  { %v1666_v51 = vmul.f32 3.0, %v1572_v17 }
 0xc16   :  { %v1682_v50 = vsub.f32 %v4954_v62, %v1666_v51 }
 0xc1b   :  { %v4063_v25 = vpop.f32.mrf.mxu1 }
 0xc1c   :  { %v1608_v33 = vpack.c.bf16 %v4063_v25, %v1572_v17 }
 0xc23   :  { %v1577_v47 = vpop.f32.mrf.mxu1 }
 0xc2b   :  { %v4065_v37 = vpop.f32.mrf.mxu1 }
 0xc2c   :  { %v1609_v41 = vpack.c.bf16 %v4065_v37, %v1577_v47 }
 0xc33   :  { %v1582_v9 = vpop.f32.mrf.mxu1 }
 0xc3b   :  { %v4067_v32 = vpop.f32.mrf.mxu1 }
 0xc3c   :  { %v1610_v3 = vpack.c.bf16 %v4067_v32, %v1582_v9 }
 0xc43   :  { %v1587_v43 = vpop.f32.mrf.mxu1 }
 0xc44   :  { %v1672_v60 = vmul.f32 3.0, %v1587_v43 }
 0xc46   :  { %v1688_v17 = vsub.f32 %v4957_v4, %v1672_v60 }
 0xc4b   :  { %v4069_v45 = vpop.f32.mrf.mxu1 }
 0xc4c   :  { %v1611_v55 = vpack.c.bf16 %v4069_v45, %v1587_v43 }
 0xc53   :  { %v4071_v23 = vpop.f32.mrf.mxu1 }
 0xc54   :  { %v1674_v4 = vmul.f32 3.0, %v4071_v23 }
 0xc5b   :  { %v4073_v57 = vpop.f32.mrf.mxu1 }
 0xc5c   :  { %v1612_v11 = vpack.c.bf16 %v4073_v57, %v4071_v23  ;;  %v1675_v43 = vmul.f32 3.0, %v4073_v57 }
 0xc63   :  { %v1597_v29 = vpop.f32.mrf.mxu1 }
 0xc6b   :  { %v1599_v5 = vpop.f32.mrf.mxu1 }
 0xc6c   :  { %v1613_v24 = vpack.c.bf16 %v1599_v5, %v1597_v29 }
 0xc73   :  { %v1602_v39 = vpop.f32.mrf.mxu1 }
 0xc7b   :  { %v1604_v7 = vpop.f32.mrf.mxu1 }
 0xc7c   :  { %v1614_v12 = vpack.c.bf16 %v1604_v7, %v1602_v39 }
 0xc7e   :  { %1615 = vmatpush.bf16.msrb.mxu2 %v1614_v12 }
 0xc82   :  { %1616 = vmatpush.bf16.msrb.mxu2 %v1613_v24 }
 0xc86   :  { %1617 = vmatpush.bf16.msrb.mxu2 %v1612_v11 }
 0xc8a   :  { %1618 = vmatpush.bf16.msrb.mxu2 %v1611_v55 }
 0xc8e   :  { %1619 = vmatpush.bf16.msrb.mxu2 %v1610_v3 }
 0xc92   :  { %1620 = vmatpush.bf16.msrb.mxu2 %v1609_v41 }
 0xc96   :  { %1621 = vmatpush.bf16.msrb.mxu2 %v1608_v33 }
 0xc9a   :  { %1622 = vmatpush.bf16.msrb.mxu2 %v1607_v46 }
 0xc9d   :  { %1623 = vmatmul.bf16.vlgmr.msrb.gmra.mxu2 %v1607_v46 }
 0xcad   :  { %1628 = vmatmul.bf16.gmra.mxu2 %v1608_v33 }
 0xcbd   :  { %1633 = vmatmul.bf16.gmra.mxu2 %v1609_v41 }
 0xccd   :  { %1638 = vmatmul.bf16.gmra.mxu2 %v1610_v3  ;;  %v1668_v3 = vmul.f32 3.0, %v1577_v47 }
 0xcdd   :  { %1643 = vmatmul.bf16.gmra.mxu2 %v1611_v55  ;;  %v1670_v55 = vmul.f32 3.0, %v1582_v9  ;;  %v1676_v9 = vmul.f32 3.0, %v1597_v29  ;;  %v1691_v29 = vsub.f32 %v3749_v49, %v1675_v43 }
 0xcdf   :  { %v1686_v33 = vsub.f32 %v4956_v8, %v1670_v55  ;;  %v1692_v8 = vsub.f32 %v3742_v6, %v1676_v9 }
 0xced   :  { %1648 = vmatmul.bf16.gmra.mxu2 %v1612_v11  ;;  %v1684_v11 = vsub.f32 %v4955_v58, %v1668_v3  ;;  %v1678_v58 = vmul.f32 3.0, %v1602_v39 }
 0xcef   :  { %v1694_v55 = vsub.f32 %v3725_v54, %v1678_v58 }
 0xcfd   :  { %1653 = vmatmul.bf16.gmra.mxu2 %v1613_v24 }
 0xd0d   :  { %1658 = vmatmul.bf16.gmra.mxu2 %v1614_v12 }
 0xd20   :  { %v1624_v31 = vpop.f32.mrf.mxu2 }
 0xd21   :  { %v4083_v35 = vadd.f32 %v1680_v14, %v1624_v31 }
 0xd28   :  { %v4085_v0 = vpop.f32.mrf.mxu2 }
 0xd30   :  { %v1629_v61 = vpop.f32.mrf.mxu2 }
 0xd31   :  { %v4088_v46 = vadd.f32 %v1682_v50, %v1629_v61 }
 0xd38   :  { %v1631_v41 = vpop.f32.mrf.mxu2 }
 0xd40   :  { %v1634_v24 = vpop.f32.mrf.mxu2 }
 0xd41   :  { %v1700_v12 = vadd.f32 %v1684_v11, %v1634_v24  ;;  %v1679_v11 = vmul.f32 3.0, %v1604_v7  ;;  %v1677_v24 = vmul.f32 3.0, %v1599_v5  ;;  %v1673_v5 = vmul.f32 3.0, %v4069_v45 }
 0xd42   :  { %v1690_v7 = vsub.f32 %v3754_v38, %v1674_v4 }
 0xd43   :  { %v1693_v60 = vsub.f32 %v3734_v42, %v1677_v24  ;;  %v1671_v24 = vmul.f32 3.0, %v4067_v32  ;;  %v1665_v32 = vmul.f32 3.0, %v4061_v28 }
 0xd45   :  { %v1687_v45 = vsub.f32 %v3771_v30, %v1671_v24 }
 0xd48   :  { %v1636_v22 = vpop.f32.mrf.mxu2 }
 0xd50   :  { %v1639_v21 = vpop.f32.mrf.mxu2 }
 0xd51   :  { %v1702_v14 = vadd.f32 %v1686_v33, %v1639_v21  ;;  %v1695_v33 = vsub.f32 %v4949_v2, %v1679_v11 }
 0xd58   :  { %v1641_v31 = vpop.f32.mrf.mxu2 }
 0xd60   :  { %v1644_v51 = vpop.f32.mrf.mxu2 }
 0xd61   :  { %v1704_v62 = vadd.f32 %v1688_v17, %v1644_v51 }
 0xd68   :  { %v1646_v50 = vpop.f32.mrf.mxu2 }
 0xd70   :  { %v1649_v61 = vpop.f32.mrf.mxu2 }
 0xd78   :  { %v1651_v34 = vpop.f32.mrf.mxu2 }
 0xd79   :  { %v1707_v11 = vadd.f32 %v1691_v29, %v1651_v34 }
 0xd80   :  { %v1654_v47 = vpop.f32.mrf.mxu2 }
 0xd81   :  { %v1708_v58 = vadd.f32 %v1692_v8, %v1654_v47  ;;  %v1667_v47 = vmul.f32 3.0, %v4063_v25 }
 0xd88   :  { %v1656_v13 = vpop.f32.mrf.mxu2 }
 0xd89   :  { %v1709_v16 = vadd.f32 %v1693_v60, %v1656_v13  ;;  %v1669_v13 = vmul.f32 3.0, %v4065_v37  ;;  %v1681_v37 = vsub.f32 %v3811_v56, %v1665_v32 }
 0xd8b   :  { %v1718_v57 = vpack.c.bf16 %v1709_v16, %v1708_v58  ;;  %v1685_v4 = vsub.f32 %v3786_v10, %v1669_v13 }
 0xd8d   :  { %v1701_v16 = vadd.f32 %v1685_v4, %v1636_v22 }
 0xd90   :  { %v1659_v3 = vpop.f32.mrf.mxu2 }
 0xd91   :  { %v1710_v17 = vadd.f32 %v1694_v55, %v1659_v3  ;;  %v1689_v3 = vsub.f32 %v3760_v63, %v1673_v5  ;;  %v1706_v55 = vadd.f32 %v1690_v7, %v1649_v61  ;;  %v1683_v61 = vsub.f32 %v3799_v19, %v1667_v47  ;;  %v4963_v7 = vld [vmem:[#allocation12_spill] sm:$0xff] }
 0xd93   :  { %v1705_v23 = vadd.f32 %v1689_v3, %v1646_v50  ;;  %v1717_v9 = vpack.c.bf16 %v1707_v11, %v1706_v55  ;;  %v1699_v50 = vadd.f32 %v1683_v61, %v1631_v41  ;;  %v4964_v11 = vld [vmem:[#allocation13_spill] sm:$0xff] }
 0xd95   :  { %v1716_v8 = vpack.c.bf16 %v1705_v23, %v1704_v62  ;;  %v1713_v62 = vpack.c.bf16 %v1699_v50, %v4088_v46 }
 0xd98   :  { %v1661_v21 = vpop.f32.mrf.mxu2 }
 0xd99   :  { %v1711_v51 = vadd.f32 %v1695_v33, %v1661_v21  ;;  %v1703_v33 = vadd.f32 %v1687_v45, %v1641_v31  ;;  %v1714_v21 = vpack.c.bf16 %v1701_v16, %v1700_v12  ;;  %v1697_v31 = vadd.f32 %v1681_v37, %v4085_v0 }
 0xd9b   :  { %v1719_v39 = vpack.c.bf16 %v1711_v51, %v1710_v17  ;;  %v1715_v34 = vpack.c.bf16 %v1703_v33, %v1702_v14  ;;  %v1712_v25 = vpack.c.bf16 %v1697_v31, %v4083_v35 }
 0xd9d   :  { %1720 = vmatpush.bf16.msrb.mxu3 %v1719_v39 }
 0xda1   :  { %1721 = vmatpush.bf16.msrb.mxu3 %v1718_v57  ;;  %v4965_v57 = vld [vmem:[#allocation20_spill] sm:$0xff] }
 0xda5   :  { %1722 = vmatpush.bf16.msrb.mxu3 %v1717_v9 }
 0xda9   :  { %1723 = vmatpush.bf16.msrb.mxu3 %v1716_v8 }
 0xdad   :  { %1724 = vmatpush.bf16.msrb.mxu3 %v1715_v34 }
 0xdb1   :  { %1725 = vmatpush.bf16.msrb.mxu3 %v1714_v21 }
 0xdb5   :  { %1726 = vmatpush.bf16.msrb.mxu3 %v1713_v62 }
 0xdb9   :  { %1727 = vmatpush.bf16.msrb.mxu3 %v1712_v25 }
 0xdbc   :  { %1728 = vmatmul.bf16.vlgmr.msrb.gmra.mxu3 %v4034_v59 }
 0xdcc   :  { %1733 = vmatmul.bf16.gmra.mxu3 %v4031_v18 }
 0xddc   :  { %1738 = vmatmul.bf16.gmra.mxu3 %v4028_v26 }
 0xdec   :  { %1743 = vmatmul.bf16.gmra.mxu3 %v4025_v40 }
 0xdfc   :  { %1748 = vmatmul.bf16.gmra.mxu3 %v4022_v53 }
 0xe0c   :  { %1753 = vmatmul.bf16.gmra.mxu3 %v4019_v44 }
 0xe1c   :  { %1758 = vmatmul.bf16.gmra.mxu3 %v4016_v1 }
 0xe2c   :  { %1763 = vmatmul.bf16.gmra.mxu3 %v4013_v52 }
 0xe3f   :  { %v1729_v28 = vpop.f32.mrf.mxu3 }
 0xe47   :  { %v1731_v0 = vpop.f32.mrf.mxu3 }
 0xe48   :  { %v4143_v58 = vpack.c.bf16 %v1731_v0, %v1729_v28 }
 0xe4f   :  { %v1734_v35 = vpop.f32.mrf.mxu3 }
 0xe57   :  { %v1736_v46 = vpop.f32.mrf.mxu3 }
 0xe58   :  { %v4140_v29 = vpack.c.bf16 %v1736_v46, %v1734_v35 }
 0xe5f   :  { %v1739_v41 = vpop.f32.mrf.mxu3 }
 0xe67   :  { %v1741_v59 = vpop.f32.mrf.mxu3 }
 0xe68   :  { %v4137_v5 = vpack.c.bf16 %v1741_v59, %v1739_v41  ;;  %v4966_v41 = vld [vmem:[#allocation14_spill] sm:$0xff] }
 0xe6f   :  { %v1744_v12 = vpop.f32.mrf.mxu3 }
 0xe77   :  { %v1746_v18 = vpop.f32.mrf.mxu3 }
 0xe78   :  { %v4134_v39 = vpack.c.bf16 %v1746_v18, %v1744_v12 }
 0xe7f   :  { %v1749_v22 = vpop.f32.mrf.mxu3 }
 0xe87   :  { %v1751_v26 = vpop.f32.mrf.mxu3 }
 0xe88   :  { %v4131_v51 = vpack.c.bf16 %v1751_v26, %v1749_v22 }
 0xe8f   :  { %v1754_v14 = vpop.f32.mrf.mxu3 }
 0xe97   :  { %v1756_v40 = vpop.f32.mrf.mxu3 }
 0xe98   :  { %v4128_v1 = vpack.c.bf16 %v1756_v40, %v1754_v14  ;;  %v4967_v14 = vld [vmem:[#allocation19_spill] sm:$0xff] }
 0xe9f   :  { %v1759_v43 = vpop.f32.mrf.mxu3 }
 0xea7   :  { %v1761_v53 = vpop.f32.mrf.mxu3 }
 0xea8   :  { %v4125_v52 = vpack.c.bf16 %v1761_v53, %v1759_v43 }
 0xeaf   :  { %v1764_v60 = vpop.f32.mrf.mxu3 }
 0xeb7   :  { %v1766_v44 = vpop.f32.mrf.mxu3 }
 0xeb8   :  { %v4122_v17 = vpack.c.bf16 %v1766_v44, %v1764_v60 }
 0xeba   :  { %1777 = vmatpush.bf16.msrb.mxu0 %v4122_v17 }
 0xebe   :  { %1778 = vmatpush.bf16.msrb.mxu0 %v4125_v52 }
 0xec2   :  { %1779 = vmatpush.bf16.msrb.mxu0 %v4128_v1 }
 0xec6   :  { %1780 = vmatpush.bf16.msrb.mxu0 %v4131_v51 }
 0xeca   :  { %1781 = vmatpush.bf16.msrb.mxu0 %v4134_v39 }
 0xece   :  { %1782 = vmatpush.bf16.msrb.mxu0 %v4137_v5 }
 0xed2   :  { %1783 = vmatpush.bf16.msrb.mxu0 %v4140_v29 }
 0xed6   :  { %1784 = vmatpush.bf16.msrb.mxu0 %v4143_v58 }
 0xed9   :  { %1785 = vmatmul.bf16.vlgmr.msrb.gmra.mxu0 %v4037_v15 }
 0xee9   :  { %1790 = vmatmul.bf16.gmra.mxu0 %v4040_v20 }
 0xef9   :  { %1795 = vmatmul.bf16.gmra.mxu0 %v4043_v36 }
 0xf09   :  { %1800 = vmatmul.bf16.gmra.mxu0 %v4046_v27 }
 0xf19   :  { %1805 = vmatmul.bf16.gmra.mxu0 %v4049_v48 }
 0xf29   :  { %1810 = vmatmul.bf16.gmra.mxu0 %v4963_v7 }
 0xf39   :  { %1815 = vmatmul.bf16.gmra.mxu0 %v4964_v11 }
 0xf49   :  { %1820 = vmatmul.bf16.gmra.mxu0 %v4965_v57 }
 0xf56   :  { %v1786_v24 = vpop.f32.mrf.mxu0 }
 0xf57   :  { %v1883_v46 = vmul.f32 3.0, %v1786_v24 }
 0xf59   :  { %v1899_v59 = vsub.f32 %v4966_v41, %v1883_v46 }
 0xf5e   :  { %v4154_v3 = vpop.f32.mrf.mxu0 }
 0xf5f   :  { %v1826_v35 = vpack.c.bf16 %v4154_v3, %v1786_v24 }
 0xf66   :  { %v1791_v55 = vpop.f32.mrf.mxu0 }
 0xf67   :  { %v1885_v26 = vmul.f32 3.0, %v1791_v55 }
 0xf69   :  { %v1901_v40 = vsub.f32 %v4967_v14, %v1885_v26 }
 0xf6e   :  { %v4156_v23 = vpop.f32.mrf.mxu0 }
 0xf6f   :  { %v1827_v0 = vpack.c.bf16 %v4156_v23, %v1791_v55  ;;  %v4970_v55 = vld [vmem:[#allocation15_spill] sm:$0xff] }
 0xf76   :  { %v1796_v9 = vpop.f32.mrf.mxu0 }
 0xf77   :  { %v1887_v44 = vmul.f32 3.0, %v1796_v9 }
 0xf7e   :  { %v4158_v13 = vpop.f32.mrf.mxu0 }
 0xf7f   :  { %v1828_v28 = vpack.c.bf16 %v4158_v13, %v1796_v9 }
 0xf86   :  { %v1801_v45 = vpop.f32.mrf.mxu0 }
 0xf8e   :  { %v4160_v33 = vpop.f32.mrf.mxu0 }
 0xf8f   :  { %v1829_v25 = vpack.c.bf16 %v4160_v33, %v1801_v45 }
 0xf96   :  { %v1806_v8 = vpop.f32.mrf.mxu0 }
 0xf9e   :  { %v4162_v47 = vpop.f32.mrf.mxu0 }
 0xf9f   :  { %v1830_v62 = vpack.c.bf16 %v4162_v47, %v1806_v8 }
 0xfa6   :  { %v4164_v4 = vpop.f32.mrf.mxu0 }
 0xfae   :  { %v4166_v16 = vpop.f32.mrf.mxu0 }
 0xfaf   :  { %v1831_v31 = vpack.c.bf16 %v4166_v16, %v4164_v4 }
 0xfb6   :  { %v1816_v34 = vpop.f32.mrf.mxu0 }
 0xfbe   :  { %v1818_v32 = vpop.f32.mrf.mxu0 }
 0xfbf   :  { %v1832_v37 = vpack.c.bf16 %v1818_v32, %v1816_v34 }
 0xfc6   :  { %v1821_v61 = vpop.f32.mrf.mxu0 }
 0xfce   :  { %v1823_v50 = vpop.f32.mrf.mxu0 }
 0xfcf   :  { %v1833_v21 = vpack.c.bf16 %v1823_v50, %v1821_v61 }
 0xfd1   :  { %1834 = vmatpush.bf16.msrb.mxu1 %v1833_v21 }
 0xfd5   :  { %1835 = vmatpush.bf16.msrb.mxu1 %v1832_v37 }
 0xfd9   :  { %1836 = vmatpush.bf16.msrb.mxu1 %v1831_v31 }
 0xfdd   :  { %1837 = vmatpush.bf16.msrb.mxu1 %v1830_v62 }
 0xfe1   :  { %1838 = vmatpush.bf16.msrb.mxu1 %v1829_v25 }
 0xfe5   :  { %1839 = vmatpush.bf16.msrb.mxu1 %v1828_v28 }
 0xfe9   :  { %1840 = vmatpush.bf16.msrb.mxu1 %v1827_v0 }
 0xfed   :  { %1841 = vmatpush.bf16.msrb.mxu1 %v1826_v35 }
 0xff0   :  { %1842 = vmatmul.bf16.vlgmr.msrb.gmra.mxu1 %v1826_v35 }
0x1000   :  { %1847 = vmatmul.bf16.gmra.mxu1 %v1827_v0 }
0x1010   :  { %1852 = vmatmul.bf16.gmra.mxu1 %v1828_v28  ;;  %v4969_v28 = vld [vmem:[#allocation17_spill] sm:$0xff] }
0x1020   :  { %1857 = vmatmul.bf16.gmra.mxu1 %v1829_v25  ;;  %v1889_v25 = vmul.f32 3.0, %v1801_v45  ;;  %v1895_v45 = vmul.f32 3.0, %v1816_v34 }
0x1022   :  { %v1905_v0 = vsub.f32 %v4969_v28, %v1889_v25  ;;  %v1911_v28 = vsub.f32 %v3742_v6, %v1895_v45 }
0x1030   :  { %1862 = vmatmul.bf16.gmra.mxu1 %v1830_v62  ;;  %v4968_v62 = vld [vmem:[#allocation18_spill] sm:$0xff] }
0x1040   :  { %1867 = vmatmul.bf16.gmra.mxu1 %v1831_v31  ;;  %v1903_v31 = vsub.f32 %v4968_v62, %v1887_v44  ;;  %v1897_v62 = vmul.f32 3.0, %v1821_v61 }
0x1042   :  { %v1913_v25 = vsub.f32 %v3725_v54, %v1897_v62 }
0x1050   :  { %1872 = vmatmul.bf16.gmra.mxu1 %v1832_v37 }
0x1060   :  { %1877 = vmatmul.bf16.gmra.mxu1 %v1833_v21 }
0x106d   :  { %v1843_v12 = vpop.f32.mrf.mxu1 }
0x106e   :  { %v4176_v18 = vadd.f32 %v1899_v59, %v1843_v12  ;;  %v1891_v12 = vmul.f32 3.0, %v1806_v8  ;;  %v1894_v8 = vmul.f32 3.0, %v4166_v16 }
0x1070   :  { %v1907_v41 = vsub.f32 %v4970_v55, %v1891_v12  ;;  %v1893_v55 = vmul.f32 3.0, %v4164_v4  ;;  %v1910_v34 = vsub.f32 %v3749_v49, %v1894_v8 }
0x1072   :  { %v1909_v62 = vsub.f32 %v3754_v38, %v1893_v55  ;;  %v1884_v55 = vmul.f32 3.0, %v4154_v3 }
0x1075   :  { %v4178_v22 = vpop.f32.mrf.mxu1 }
0x107d   :  { %v1848_v43 = vpop.f32.mrf.mxu1 }
0x107e   :  { %v4181_v53 = vadd.f32 %v1901_v40, %v1848_v43 }
0x1085   :  { %v1850_v60 = vpop.f32.mrf.mxu1 }
0x108d   :  { %v1853_v37 = vpop.f32.mrf.mxu1 }
0x108e   :  { %v1919_v21 = vadd.f32 %v1903_v31, %v1853_v37  ;;  %v1898_v31 = vmul.f32 3.0, %v1823_v50  ;;  %v1896_v37 = vmul.f32 3.0, %v1818_v32  ;;  %v1892_v32 = vmul.f32 3.0, %v4162_v47 }
0x1090   :  { %v1912_v12 = vsub.f32 %v3734_v42, %v1896_v37  ;;  %v1890_v37 = vmul.f32 3.0, %v4160_v33 }
0x1092   :  { %v1906_v47 = vsub.f32 %v3771_v30, %v1890_v37 }
0x1095   :  { %v1855_v24 = vpop.f32.mrf.mxu1 }
0x109d   :  { %v1858_v35 = vpop.f32.mrf.mxu1 }
0x109e   :  { %v1921_v46 = vadd.f32 %v1905_v0, %v1858_v35  ;;  %v1914_v0 = vsub.f32 %v4949_v2, %v1898_v31 }
0x10a5   :  { %v1860_v59 = vpop.f32.mrf.mxu1 }
0x10ad   :  { %v1863_v26 = vpop.f32.mrf.mxu1 }
0x10ae   :  { %v1923_v14 = vadd.f32 %v1907_v41, %v1863_v26 }
0x10b5   :  { %v1865_v40 = vpop.f32.mrf.mxu1 }
0x10bd   :  { %v1868_v43 = vpop.f32.mrf.mxu1 }
0x10c5   :  { %v1870_v57 = vpop.f32.mrf.mxu1 }
0x10c6   :  { %v1926_v31 = vadd.f32 %v1910_v34, %v1870_v57 }
0x10cd   :  { %v1873_v9 = vpop.f32.mrf.mxu1 }
0x10ce   :  { %v1927_v50 = vadd.f32 %v1911_v28, %v1873_v9  ;;  %v1886_v9 = vmul.f32 3.0, %v4156_v23 }
0x10d5   :  { %v1875_v11 = vpop.f32.mrf.mxu1 }
0x10d6   :  { %v1928_v7 = vadd.f32 %v1912_v12, %v1875_v11  ;;  %v1888_v11 = vmul.f32 3.0, %v4158_v13  ;;  %v1900_v13 = vsub.f32 %v3811_v56, %v1884_v55 }
0x10d8   :  { %v1937_v16 = vpack.c.bf16 %v1928_v7, %v1927_v50  ;;  %v1904_v57 = vsub.f32 %v3786_v10, %v1888_v11 }
0x10da   :  { %v1920_v7 = vadd.f32 %v1904_v57, %v1855_v24 }
0x10dd   :  { %v1878_v44 = vpop.f32.mrf.mxu1 }
0x10de   :  { %v1929_v41 = vadd.f32 %v1913_v25, %v1878_v44  ;;  %v1908_v44 = vsub.f32 %v3760_v63, %v1892_v32  ;;  %v1925_v25 = vadd.f32 %v1909_v62, %v1868_v43  ;;  %v1902_v43 = vsub.f32 %v3799_v19, %v1886_v9  ;;  %v4971_v62 = vld [vmem:[#allocation12_spill] sm:$0xff] }
0x10e0   :  { %v1924_v4 = vadd.f32 %v1908_v44, %v1865_v40  ;;  %v1936_v45 = vpack.c.bf16 %v1926_v31, %v1925_v25  ;;  %v1918_v40 = vadd.f32 %v1902_v43, %v1850_v60  ;;  %v4972_v31 = vld [vmem:[#allocation13_spill] sm:$0xff] }
0x10e2   :  { %v1935_v28 = vpack.c.bf16 %v1924_v4, %v1923_v14  ;;  %v1932_v14 = vpack.c.bf16 %v1918_v40, %v4181_v53 }
0x10e5   :  { %v1880_v35 = vpop.f32.mrf.mxu1 }
0x10e6   :  { %v1930_v26 = vadd.f32 %v1914_v0, %v1880_v35  ;;  %v1922_v0 = vadd.f32 %v1906_v47, %v1860_v59  ;;  %v1933_v35 = vpack.c.bf16 %v1920_v7, %v1919_v21  ;;  %v1916_v59 = vadd.f32 %v1900_v13, %v4178_v22 }
0x10e8   :  { %v1938_v61 = vpack.c.bf16 %v1930_v26, %v1929_v41  ;;  %v1934_v33 = vpack.c.bf16 %v1922_v0, %v1921_v46  ;;  %v1931_v23 = vpack.c.bf16 %v1916_v59, %v4176_v18 }
0x10ea   :  { %1939 = vmatpush.bf16.msra.mxu2 %v1938_v61 }
0x10ee   :  { %1940 = vmatpush.bf16.msra.mxu2 %v1937_v16  ;;  %v4973_v16 = vld [vmem:[#allocation20_spill] sm:$0xff] }
0x10f2   :  { %1941 = vmatpush.bf16.msra.mxu2 %v1936_v45 }
0x10f6   :  { %1942 = vmatpush.bf16.msra.mxu2 %v1935_v28 }
0x10fa   :  { %1943 = vmatpush.bf16.msra.mxu2 %v1934_v33 }
0x10fe   :  { %1944 = vmatpush.bf16.msra.mxu2 %v1933_v35 }
0x1102   :  { %1945 = vmatpush.bf16.msra.mxu2 %v1932_v14 }
0x1106   :  { %1946 = vmatpush.bf16.msra.mxu2 %v1931_v23 }
0x1109   :  { %1947 = vmatmul.bf16.vlgmr.msra.gmra.mxu2 %v4143_v58 }
0x1119   :  { %1952 = vmatmul.bf16.gmra.mxu2 %v4140_v29 }
0x1129   :  { %1957 = vmatmul.bf16.gmra.mxu2 %v4137_v5 }
0x1139   :  { %1962 = vmatmul.bf16.gmra.mxu2 %v4134_v39 }
0x1149   :  { %1967 = vmatmul.bf16.gmra.mxu2 %v4131_v51 }
0x1159   :  { %1972 = vmatmul.bf16.gmra.mxu2 %v4128_v1 }
0x1169   :  { %1977 = vmatmul.bf16.gmra.mxu2 %v4125_v52 }
0x1179   :  { %1982 = vmatmul.bf16.gmra.mxu2 %v4122_v17 }
0x118c   :  { %v1948_v3 = vpop.f32.mrf.mxu2 }
0x1194   :  { %v1950_v22 = vpop.f32.mrf.mxu2 }
0x1195   :  { %v4236_v50 = vpack.c.bf16 %v1950_v22, %v1948_v3 }
0x119c   :  { %v1953_v18 = vpop.f32.mrf.mxu2 }
0x11a4   :  { %v1955_v53 = vpop.f32.mrf.mxu2 }
0x11a5   :  { %v4233_v34 = vpack.c.bf16 %v1955_v53, %v1953_v18 }
0x11ac   :  { %v1958_v60 = vpop.f32.mrf.mxu2 }
0x11b4   :  { %v1960_v58 = vpop.f32.mrf.mxu2 }
0x11b5   :  { %v4230_v32 = vpack.c.bf16 %v1960_v58, %v1958_v60  ;;  %v4974_v60 = vld [vmem:[#allocation14_spill] sm:$0xff] }
0x11bc   :  { %v1963_v21 = vpop.f32.mrf.mxu2 }
0x11c4   :  { %v1965_v29 = vpop.f32.mrf.mxu2 }
0x11c5   :  { %v4227_v61 = vpack.c.bf16 %v1965_v29, %v1963_v21 }
0x11cc   :  { %v1968_v24 = vpop.f32.mrf.mxu2 }
0x11d4   :  { %v1970_v5 = vpop.f32.mrf.mxu2 }
0x11d5   :  { %v4224_v26 = vpack.c.bf16 %v1970_v5, %v1968_v24 }
0x11dc   :  { %v1973_v46 = vpop.f32.mrf.mxu2 }
0x11e4   :  { %v1975_v39 = vpop.f32.mrf.mxu2 }
0x11e5   :  { %v4221_v52 = vpack.c.bf16 %v1975_v39, %v1973_v46  ;;  %v4975_v46 = vld [vmem:[#allocation19_spill] sm:$0xff] }
0x11ec   :  { %v1978_v8 = vpop.f32.mrf.mxu2 }
0x11f4   :  { %v1980_v51 = vpop.f32.mrf.mxu2 }
0x11f5   :  { %v4218_v17 = vpack.c.bf16 %v1980_v51, %v1978_v8 }
0x11fc   :  { %v1983_v12 = vpop.f32.mrf.mxu2 }
0x1204   :  { %v1985_v1 = vpop.f32.mrf.mxu2 }
0x1205   :  { %v4215_v41 = vpack.c.bf16 %v1985_v1, %v1983_v12 }
0x1207   :  { %1996 = vmatpush.bf16.msra.mxu3 %v4215_v41 }
0x120b   :  { %1997 = vmatpush.bf16.msra.mxu3 %v4218_v17 }
0x120f   :  { %1998 = vmatpush.bf16.msra.mxu3 %v4221_v52 }
0x1213   :  { %1999 = vmatpush.bf16.msra.mxu3 %v4224_v26 }
0x1217   :  { %2000 = vmatpush.bf16.msra.mxu3 %v4227_v61 }
0x121b   :  { %2001 = vmatpush.bf16.msra.mxu3 %v4230_v32 }
0x121f   :  { %2002 = vmatpush.bf16.msra.mxu3 %v4233_v34 }
0x1223   :  { %2003 = vmatpush.bf16.msra.mxu3 %v4236_v50 }
0x1226   :  { %2004 = vmatmul.bf16.vlgmr.msra.gmra.mxu3 %v4037_v15 }
0x1236   :  { %2009 = vmatmul.bf16.gmra.mxu3 %v4040_v20 }
0x1246   :  { %2014 = vmatmul.bf16.gmra.mxu3 %v4043_v36 }
0x1256   :  { %2019 = vmatmul.bf16.gmra.mxu3 %v4046_v27 }
0x1266   :  { %2024 = vmatmul.bf16.gmra.mxu3 %v4049_v48 }
0x1276   :  { %2029 = vmatmul.bf16.gmra.mxu3 %v4971_v62 }
0x1286   :  { %2034 = vmatmul.bf16.gmra.mxu3 %v4972_v31 }
0x1296   :  { %2039 = vmatmul.bf16.gmra.mxu3 %v4973_v16 }
0x12a9   :  { %v2005_v37 = vpop.f32.mrf.mxu3 }
0x12aa   :  { %v2102_v53 = vmul.f32 3.0, %v2005_v37 }
0x12ac   :  { %v2118_v58 = vsub.f32 %v4974_v60, %v2102_v53 }
0x12b1   :  { %v4247_v44 = vpop.f32.mrf.mxu3 }
0x12b2   :  { %v2045_v18 = vpack.c.bf16 %v4247_v44, %v2005_v37 }
0x12b9   :  { %v2010_v25 = vpop.f32.mrf.mxu3 }
0x12ba   :  { %v2104_v5 = vmul.f32 3.0, %v2010_v25 }
0x12bc   :  { %v2120_v39 = vsub.f32 %v4975_v46, %v2104_v5 }
0x12c1   :  { %v4249_v4 = vpop.f32.mrf.mxu3 }
0x12c2   :  { %v2046_v22 = vpack.c.bf16 %v4249_v4, %v2010_v25 }
0x12c9   :  { %v2015_v45 = vpop.f32.mrf.mxu3 }
0x12ca   :  { %v2106_v1 = vmul.f32 3.0, %v2015_v45 }
0x12d1   :  { %v4251_v11 = vpop.f32.mrf.mxu3 }
0x12d2   :  { %v2047_v3 = vpack.c.bf16 %v4251_v11, %v2015_v45 }
0x12d9   :  { %v2020_v47 = vpop.f32.mrf.mxu3 }
0x12e1   :  { %v4253_v0 = vpop.f32.mrf.mxu3 }
0x12e2   :  { %v2048_v23 = vpack.c.bf16 %v4253_v0, %v2020_v47 }
0x12e9   :  { %v4255_v28 = vpop.f32.mrf.mxu3 }
0x12f1   :  { %v4257_v9 = vpop.f32.mrf.mxu3 }
0x12f2   :  { %v2049_v14 = vpack.c.bf16 %v4257_v9, %v4255_v28 }
0x12f9   :  { %v4259_v57 = vpop.f32.mrf.mxu3 }
0x1301   :  { %v2032_v7 = vpop.f32.mrf.mxu3 }
0x1302   :  { %v2050_v59 = vpack.c.bf16 %v2032_v7, %v4259_v57 }
0x1309   :  { %v2035_v33 = vpop.f32.mrf.mxu3 }
0x1311   :  { %v2037_v55 = vpop.f32.mrf.mxu3 }
0x1312   :  { %v2051_v13 = vpack.c.bf16 %v2037_v55, %v2035_v33  ;;  %v2115_v31 = vmul.f32 3.0, %v2037_v55 }
0x1319   :  { %v2040_v43 = vpop.f32.mrf.mxu3 }
0x131a   :  { %v2116_v16 = vmul.f32 3.0, %v2040_v43 }
0x1321   :  { %v2042_v40 = vpop.f32.mrf.mxu3 }
0x1322   :  { %v2052_v35 = vpack.c.bf16 %v2042_v40, %v2040_v43  ;;  %v2117_v45 = vmul.f32 3.0, %v2042_v40  ;;  %v2111_v43 = vmul.f32 3.0, %v4257_v9 }
0x1324   :  { %2053 = vmatpush.bf16.msra.mxu0 %v2052_v35 }
0x1328   :  { %2054 = vmatpush.bf16.msra.mxu0 %v2051_v13 }
0x132c   :  { %2055 = vmatpush.bf16.msra.mxu0 %v2050_v59 }
0x1330   :  { %2056 = vmatpush.bf16.msra.mxu0 %v2049_v14 }
0x1334   :  { %2057 = vmatpush.bf16.msra.mxu0 %v2048_v23 }
0x1338   :  { %2058 = vmatpush.bf16.msra.mxu0 %v2047_v3 }
0x133c   :  { %2059 = vmatpush.bf16.msra.mxu0 %v2046_v22 }
0x1340   :  { %2060 = vmatpush.bf16.msra.mxu0 %v2045_v18 }
0x1343   :  { %2061 = vmatmul.bf16.vlgmr.msra.gmra.mxu0 %v2045_v18 }
0x1353   :  { %2066 = vmatmul.bf16.gmra.mxu0 %v2046_v22 }
0x1363   :  { %2071 = vmatmul.bf16.gmra.mxu0 %v2047_v3  ;;  %v4977_v3 = vld [vmem:[#allocation17_spill] sm:$0xff] }
0x1373   :  { %2076 = vmatmul.bf16.gmra.mxu0 %v2048_v23  ;;  %v2108_v23 = vmul.f32 3.0, %v2020_v47  ;;  %v2133_v47 = vsub.f32 %v4949_v2, %v2117_v45 }
0x1375   :  { %v2124_v22 = vsub.f32 %v4977_v3, %v2108_v23  ;;  %v2113_v23 = vmul.f32 3.0, %v2032_v7 }
0x1383   :  { %2081 = vmatmul.bf16.gmra.mxu0 %v2049_v14  ;;  %v4976_v14 = vld [vmem:[#allocation18_spill] sm:$0xff] }
0x1393   :  { %2086 = vmatmul.bf16.gmra.mxu0 %v2050_v59  ;;  %v2122_v59 = vsub.f32 %v4976_v14, %v2106_v1  ;;  %v2114_v1 = vmul.f32 3.0, %v2035_v33  ;;  %v2112_v14 = vmul.f32 3.0, %v4259_v57  ;;  %v2129_v33 = vsub.f32 %v3749_v49, %v2113_v23 }
0x1394   :  { %v2127_v57 = vsub.f32 %v3760_v63, %v2111_v43 }
0x1395   :  { %v2130_v62 = vsub.f32 %v3742_v6, %v2114_v1  ;;  %v2128_v7 = vsub.f32 %v3754_v38, %v2112_v14 }
0x13a3   :  { %2091 = vmatmul.bf16.gmra.mxu0 %v2051_v13 }
0x13b3   :  { %2096 = vmatmul.bf16.gmra.mxu0 %v2052_v35 }
0x13c0   :  { %v2062_v21 = vpop.f32.mrf.mxu0 }
0x13c1   :  { %v4269_v29 = vadd.f32 %v2118_v58, %v2062_v21 }
0x13c8   :  { %v4271_v24 = vpop.f32.mrf.mxu0 }
0x13d0   :  { %v2067_v8 = vpop.f32.mrf.mxu0 }
0x13d1   :  { %v4274_v51 = vadd.f32 %v2120_v39, %v2067_v8 }
0x13d8   :  { %v2069_v12 = vpop.f32.mrf.mxu0 }
0x13e0   :  { %v2072_v13 = vpop.f32.mrf.mxu0 }
0x13e1   :  { %v2138_v35 = vadd.f32 %v2122_v59, %v2072_v13  ;;  %v2132_v59 = vsub.f32 %v3725_v54, %v2116_v16  ;;  %v2110_v16 = vmul.f32 3.0, %v4255_v28 }
0x13e8   :  { %v2074_v37 = vpop.f32.mrf.mxu0 }
0x13f0   :  { %v2077_v18 = vpop.f32.mrf.mxu0 }
0x13f1   :  { %v2140_v53 = vadd.f32 %v2124_v22, %v2077_v18  ;;  %v2131_v22 = vsub.f32 %v3734_v42, %v2115_v31 }
0x13f8   :  { %v2079_v58 = vpop.f32.mrf.mxu0 }
0x1400   :  { %v2082_v21 = vpop.f32.mrf.mxu0 }
0x1408   :  { %v2084_v25 = vpop.f32.mrf.mxu0 }
0x1409   :  { %v2143_v1 = vadd.f32 %v2127_v57, %v2084_v25  ;;  %v4982_v57 = vld [vmem:[#allocation13_spill] sm:$0xff] }
0x1410   :  { %v2087_v60 = vpop.f32.mrf.mxu0 }
0x1411   :  { %v2144_v45 = vadd.f32 %v2128_v7, %v2087_v60 }
0x1418   :  { %v2089_v5 = vpop.f32.mrf.mxu0 }
0x1419   :  { %v2145_v40 = vadd.f32 %v2129_v33, %v2089_v5  ;;  %v2103_v5 = vmul.f32 3.0, %v4247_v44 }
0x141b   :  { %v2155_v9 = vpack.c.bf16 %v2145_v40, %v2144_v45  ;;  %v4979_v40 = vld [vmem:[#allocation16_spill] sm:$0xff] }
0x141c   :  { %v4983_v45 = vld [vmem:[#allocation20_spill] sm:$0xff] }
0x1420   :  { %v2092_v46 = vpop.f32.mrf.mxu0 }
0x1421   :  { %v2146_v55 = vadd.f32 %v2130_v62, %v2092_v46 }
0x1428   :  { %v2094_v39 = vpop.f32.mrf.mxu0 }
0x1429   :  { %v2147_v48 = vadd.f32 %v2131_v22, %v2094_v39  ;;  %v4978_v39 = vld [vmem:[#allocation15_spill] sm:$0xff] }
0x142b   :  { %v2156_v31 = vpack.c.bf16 %v2147_v48, %v2146_v55  ;;  %v2105_v48 = vmul.f32 3.0, %v4249_v4 }
0x142d   :  { %v2121_v25 = vsub.f32 %v3799_v19, %v2105_v48 }
0x1430   :  { %v2097_v8 = vpop.f32.mrf.mxu0 }
0x1431   :  { %v2148_v18 = vadd.f32 %v2132_v59, %v2097_v8  ;;  %v2109_v8 = vmul.f32 3.0, %v4253_v0  ;;  %v2107_v59 = vmul.f32 3.0, %v4251_v11 }
0x1433   :  { %v2123_v0 = vsub.f32 %v3786_v10, %v2107_v59 }
0x1435   :  { %v2139_v14 = vadd.f32 %v2123_v0, %v2074_v37 }
0x1437   :  { %v2152_v11 = vpack.c.bf16 %v2139_v14, %v2138_v35 }
0x1438   :  { %v2099_v13 = vpop.f32.mrf.mxu0 }
0x1439   :  { %v2149_v3 = vadd.f32 %v2133_v47, %v2099_v13  ;;  %v2137_v47 = vadd.f32 %v2121_v25, %v2069_v12  ;;  %v2119_v13 = vsub.f32 %v3811_v56, %v2103_v5 }
0x143b   :  { %v2157_v27 = vpack.c.bf16 %v2149_v3, %v2148_v18  ;;  %v2126_v3 = vsub.f32 %v4978_v39, %v2110_v16 }
0x143d   :  { %2158 = vmatpush.bf16.msra.mxu1 %v2157_v27  ;;  %v2125_v27 = vsub.f32 %v3771_v30, %v2109_v8  ;;  %v2142_v62 = vadd.f32 %v2126_v3, %v2082_v21  ;;  %v2151_v21 = vpack.c.bf16 %v2137_v47, %v4274_v51  ;;  %v4981_v8 = vld [vmem:[#allocation12_spill] sm:$0xff] }
0x143f   :  { %v2141_v28 = vadd.f32 %v2125_v27, %v2079_v58  ;;  %v2154_v46 = vpack.c.bf16 %v2143_v1, %v2142_v62  ;;  %v2135_v58 = vadd.f32 %v2119_v13, %v4271_v24 }
0x1441   :  { %2159 = vmatpush.bf16.msra.mxu1 %v2156_v31  ;;  %v2153_v60 = vpack.c.bf16 %v2141_v28, %v2140_v53  ;;  %v2150_v4 = vpack.c.bf16 %v2135_v58, %v4269_v29  ;;  %v4980_v31 = vld [vmem:[#allocation11_spill] sm:$0xff] }
0x1445   :  { %2160 = vmatpush.bf16.msra.mxu1 %v2155_v9 }
0x1449   :  { %2161 = vmatpush.bf16.msra.mxu1 %v2154_v46 }
0x144d   :  { %2162 = vmatpush.bf16.msra.mxu1 %v2153_v60 }
0x1451   :  { %2163 = vmatpush.bf16.msra.mxu1 %v2152_v11 }
0x1455   :  { %2164 = vmatpush.bf16.msra.mxu1 %v2151_v21 }
0x1459   :  { %2165 = vmatpush.bf16.msra.mxu1 %v2150_v4 }
0x145c   :  { %2166 = vmatmul.bf16.vlgmr.msra.gmra.mxu1 %v4236_v50 }
0x146c   :  { %2171 = vmatmul.bf16.gmra.mxu1 %v4233_v34 }
0x147c   :  { %2176 = vmatmul.bf16.gmra.mxu1 %v4230_v32 }
0x148c   :  { %2181 = vmatmul.bf16.gmra.mxu1 %v4227_v61 }
0x149c   :  { %2186 = vmatmul.bf16.gmra.mxu1 %v4224_v26 }
0x14ac   :  { %2191 = vmatmul.bf16.gmra.mxu1 %v4221_v52 }
0x14bc   :  { %2196 = vmatmul.bf16.gmra.mxu1 %v4218_v17 }
0x14cc   :  { %2201 = vmatmul.bf16.gmra.mxu1 %v4215_v41 }
0x14d9   :  { %v2167_v44 = vpop.f32.mrf.mxu1 }
0x14e1   :  { %v2169_v24 = vpop.f32.mrf.mxu1 }
0x14e2   :  { %v4329_v7 = vpack.c.bf16 %v2169_v24, %v2167_v44 }
0x14e9   :  { %v2172_v29 = vpop.f32.mrf.mxu1 }
0x14f1   :  { %v2174_v51 = vpop.f32.mrf.mxu1 }
0x14f2   :  { %v4326_v16 = vpack.c.bf16 %v2174_v51, %v2172_v29  ;;  %v4984_v29 = vld [vmem:[#allocation14_spill] sm:$0xff] }
0x14f9   :  { %v2177_v12 = vpop.f32.mrf.mxu1 }
0x1501   :  { %v2179_v50 = vpop.f32.mrf.mxu1 }
0x1502   :  { %v4323_v55 = vpack.c.bf16 %v2179_v50, %v2177_v12 }
0x1509   :  { %v2182_v35 = vpop.f32.mrf.mxu1 }
0x1511   :  { %v2184_v34 = vpop.f32.mrf.mxu1 }
0x1512   :  { %v4320_v33 = vpack.c.bf16 %v2184_v34, %v2182_v35 }
0x1519   :  { %v2187_v37 = vpop.f32.mrf.mxu1 }
0x1521   :  { %v2189_v32 = vpop.f32.mrf.mxu1 }
0x1522   :  { %v4317_v43 = vpack.c.bf16 %v2189_v32, %v2187_v37  ;;  %v4985_v37 = vld [vmem:[#allocation19_spill] sm:$0xff] }
0x1529   :  { %v2192_v53 = vpop.f32.mrf.mxu1 }
0x1531   :  { %v2194_v61 = vpop.f32.mrf.mxu1 }
0x1532   :  { %v4314_v17 = vpack.c.bf16 %v2194_v61, %v2192_v53 }
0x1539   :  { %v2197_v23 = vpop.f32.mrf.mxu1 }
0x1541   :  { %v2199_v26 = vpop.f32.mrf.mxu1 }
0x1542   :  { %v4311_v41 = vpack.c.bf16 %v2199_v26, %v2197_v23 }
0x1549   :  { %v2202_v22 = vpop.f32.mrf.mxu1 }
0x1551   :  { %v2204_v52 = vpop.f32.mrf.mxu1 }
0x1552   :  { %v4308_v18 = vpack.c.bf16 %v2204_v52, %v2202_v22  ;;  %v4986_v22 = vld [vmem:[#allocation18_spill] sm:$0xff] }
0x1554   :  { %2215 = vmatpush.bf16.msrb.mxu2 %v4308_v18 }
0x1558   :  { %2216 = vmatpush.bf16.msrb.mxu2 %v4311_v41 }
0x155c   :  { %2217 = vmatpush.bf16.msrb.mxu2 %v4314_v17 }
0x1560   :  { %2218 = vmatpush.bf16.msrb.mxu2 %v4317_v43 }
0x1564   :  { %2219 = vmatpush.bf16.msrb.mxu2 %v4320_v33 }
0x1568   :  { %2220 = vmatpush.bf16.msrb.mxu2 %v4323_v55 }
0x156c   :  { %2221 = vmatpush.bf16.msrb.mxu2 %v4326_v16 }
0x1570   :  { %2222 = vmatpush.bf16.msrb.mxu2 %v4329_v7 }
0x1573   :  { %2223 = vmatmul.bf16.vlgmr.msrb.gmra.mxu2 %v4037_v15 }
0x1583   :  { %2228 = vmatmul.bf16.gmra.mxu2 %v4040_v20 }
0x1593   :  { %2233 = vmatmul.bf16.gmra.mxu2 %v4043_v36 }
0x15a3   :  { %2238 = vmatmul.bf16.gmra.mxu2 %v4979_v40 }
0x15b3   :  { %2243 = vmatmul.bf16.gmra.mxu2 %v4980_v31 }
0x15c3   :  { %2248 = vmatmul.bf16.gmra.mxu2 %v4981_v8 }
0x15d3   :  { %2253 = vmatmul.bf16.gmra.mxu2 %v4982_v57 }
0x15e3   :  { %2258 = vmatmul.bf16.gmra.mxu2 %v4983_v45  ;;  %v4987_v45 = vld [vmem:[#allocation17_spill] sm:$0xff] }
0x15f6   :  { %v2224_v3 = vpop.f32.mrf.mxu2 }
0x15f7   :  { %v2321_v24 = vmul.f32 3.0, %v2224_v3 }
0x15f9   :  { %v2337_v51 = vsub.f32 %v4984_v29, %v2321_v24 }
0x15fe   :  { %v4340_v1 = vpop.f32.mrf.mxu2 }
0x15ff   :  { %v2264_v44 = vpack.c.bf16 %v4340_v1, %v2224_v3 }
0x1606   :  { %v2229_v9 = vpop.f32.mrf.mxu2 }
0x1607   :  { %v2323_v34 = vmul.f32 3.0, %v2229_v9 }
0x1609   :  { %v2339_v32 = vsub.f32 %v4985_v37, %v2323_v34 }
0x160e   :  { %v4342_v59 = vpop.f32.mrf.mxu2 }
0x160f   :  { %v2265_v4 = vpack.c.bf16 %v4342_v59, %v2229_v9 }
0x1616   :  { %v2234_v15 = vpop.f32.mrf.mxu2 }
0x1617   :  { %v2325_v26 = vmul.f32 3.0, %v2234_v15 }
0x1619   :  { %v2341_v52 = vsub.f32 %v4986_v22, %v2325_v26 }
0x161e   :  { %v4344_v20 = vpop.f32.mrf.mxu2 }
0x161f   :  { %v2266_v21 = vpack.c.bf16 %v4344_v20, %v2234_v15 }
0x1626   :  { %v2239_v36 = vpop.f32.mrf.mxu2 }
0x1627   :  { %v2327_v57 = vmul.f32 3.0, %v2239_v36 }
0x1629   :  { %v2343_v3 = vsub.f32 %v4987_v45, %v2327_v57 }
0x162e   :  { %v4346_v27 = vpop.f32.mrf.mxu2 }
0x162f   :  { %v2267_v58 = vpack.c.bf16 %v4346_v27, %v2239_v36 }
0x1636   :  { %v4348_v62 = vpop.f32.mrf.mxu2 }
0x163e   :  { %v4350_v28 = vpop.f32.mrf.mxu2 }
0x163f   :  { %v2268_v13 = vpack.c.bf16 %v4350_v28, %v4348_v62 }
0x1646   :  { %v4352_v46 = vpop.f32.mrf.mxu2 }
0x164e   :  { %v2251_v48 = vpop.f32.mrf.mxu2 }
0x164f   :  { %v2269_v11 = vpack.c.bf16 %v2251_v48, %v4352_v46  ;;  %v2332_v26 = vmul.f32 3.0, %v2251_v48 }
0x1656   :  { %v2254_v0 = vpop.f32.mrf.mxu2 }
0x1657   :  { %v2333_v34 = vmul.f32 3.0, %v2254_v0 }
0x165e   :  { %v2256_v14 = vpop.f32.mrf.mxu2 }
0x165f   :  { %v2270_v47 = vpack.c.bf16 %v2256_v14, %v2254_v0  ;;  %v2348_v0 = vsub.f32 %v3749_v49, %v2332_v26 }
0x1666   :  { %v2259_v60 = vpop.f32.mrf.mxu2 }
0x166e   :  { %v2261_v5 = vpop.f32.mrf.mxu2 }
0x166f   :  { %v2271_v25 = vpack.c.bf16 %v2261_v5, %v2259_v60  ;;  %v2336_v15 = vmul.f32 3.0, %v2261_v5  ;;  %v2329_v5 = vmul.f32 3.0, %v4348_v62 }
0x1671   :  { %2272 = vmatpush.bf16.msrb.mxu3 %v2271_v25  ;;  %v2352_v36 = vsub.f32 %v4949_v2, %v2336_v15 }
0x1675   :  { %2273 = vmatpush.bf16.msrb.mxu3 %v2270_v47 }
0x1679   :  { %2274 = vmatpush.bf16.msrb.mxu3 %v2269_v11 }
0x167d   :  { %2275 = vmatpush.bf16.msrb.mxu3 %v2268_v13 }
0x1681   :  { %2276 = vmatpush.bf16.msrb.mxu3 %v2267_v58 }
0x1685   :  { %2277 = vmatpush.bf16.msrb.mxu3 %v2266_v21 }
0x1689   :  { %2278 = vmatpush.bf16.msrb.mxu3 %v2265_v4 }
0x168d   :  { %2279 = vmatpush.bf16.msrb.mxu3 %v2264_v44 }
0x1690   :  { %2280 = vmatmul.bf16.vlgmr.msrb.gmra.mxu3 %v2264_v44 }
0x16a0   :  { %2285 = vmatmul.bf16.gmra.mxu3 %v2265_v4 }
0x16b0   :  { %2290 = vmatmul.bf16.gmra.mxu3 %v2266_v21 }
0x16c0   :  { %2295 = vmatmul.bf16.gmra.mxu3 %v2267_v58 }
0x16d0   :  { %2300 = vmatmul.bf16.gmra.mxu3 %v2268_v13 }
0x16e0   :  { %2305 = vmatmul.bf16.gmra.mxu3 %v2269_v11 }
0x16f0   :  { %2310 = vmatmul.bf16.gmra.mxu3 %v2270_v47 }
0x1700   :  { %2315 = vmatmul.bf16.gmra.mxu3 %v2271_v25 }
0x1713   :  { %v2281_v12 = vpop.f32.mrf.mxu3 }
0x1714   :  { %v4362_v50 = vadd.f32 %v2337_v51, %v2281_v12  ;;  %v2335_v51 = vmul.f32 3.0, %v2259_v60  ;;  %v2334_v12 = vmul.f32 3.0, %v2256_v14  ;;  %v2330_v60 = vmul.f32 3.0, %v4350_v28 }
0x171b   :  { %v4364_v35 = vpop.f32.mrf.mxu3 }
0x1723   :  { %v2286_v53 = vpop.f32.mrf.mxu3 }
0x1724   :  { %v4367_v61 = vadd.f32 %v2339_v32, %v2286_v53  ;;  %v2351_v32 = vsub.f32 %v3725_v54, %v2335_v51 }
0x172b   :  { %v2288_v23 = vpop.f32.mrf.mxu3 }
0x1733   :  { %v2291_v40 = vpop.f32.mrf.mxu3 }
0x1734   :  { %v2357_v31 = vadd.f32 %v2341_v52, %v2291_v40  ;;  %v2350_v52 = vsub.f32 %v3734_v42, %v2334_v12 }
0x173b   :  { %v2293_v8 = vpop.f32.mrf.mxu3 }
0x1743   :  { %v2296_v25 = vpop.f32.mrf.mxu3 }
0x1744   :  { %v2359_v47 = vadd.f32 %v2343_v3, %v2296_v25  ;;  %v2331_v3 = vmul.f32 3.0, %v4352_v46  ;;  %v2349_v25 = vsub.f32 %v3742_v6, %v2333_v34  ;;  %v2346_v46 = vsub.f32 %v3760_v63, %v2330_v60 }
0x1746   :  { %v2347_v48 = vsub.f32 %v3754_v38, %v2331_v3 }
0x174b   :  { %v2298_v11 = vpop.f32.mrf.mxu3 }
0x1753   :  { %v2301_v13 = vpop.f32.mrf.mxu3 }
0x175b   :  { %v2303_v9 = vpop.f32.mrf.mxu3 }
0x175c   :  { %v2362_v34 = vadd.f32 %v2346_v46, %v2303_v9  ;;  %v3341_v46 = vld [vmem:[#allocation3 + $0x8] sm:$0xff] }
0x1763   :  { %v2306_v58 = vpop.f32.mrf.mxu3 }
0x1764   :  { %v2363_v12 = vadd.f32 %v2347_v48, %v2306_v58  ;;  %v3337_v48 = vld [vmem:[#allocation3 + $0x30] sm:$0xff] }
0x176b   :  { %v2308_v21 = vpop.f32.mrf.mxu3 }
0x176c   :  { %v2364_v51 = vadd.f32 %v2348_v0, %v2308_v21 }
0x176e   :  { %v2374_v28 = vpack.c.bf16 %v2364_v51, %v2363_v12  ;;  %v3338_v51 = vld [vmem:[#allocation3] sm:$0xff] }
0x176f   :  { %v3342_v12 = vld [vmem:[#allocation3 + $0x20] sm:$0xff] }
0x1773   :  { %v2311_v4 = vpop.f32.mrf.mxu3 }
0x1774   :  { %v2365_v14 = vadd.f32 %v2349_v25, %v2311_v4 }
0x177b   :  { %v2313_v44 = vpop.f32.mrf.mxu3 }
0x177c   :  { %v2366_v29 = vadd.f32 %v2350_v52, %v2313_v44  ;;  %v2345_v44 = vsub.f32 %v4978_v39, %v2329_v5 }
0x177e   :  { %v2375_v15 = vpack.c.bf16 %v2366_v29, %v2365_v14  ;;  %v2361_v4 = vadd.f32 %v2345_v44, %v2301_v13  ;;  %v2324_v29 = vmul.f32 3.0, %v4342_v59  ;;  %v3343_v44 = vld [vmem:[#allocation3 + $0x28] sm:$0xff] }
0x1780   :  { %v2340_v9 = vsub.f32 %v3799_v19, %v2324_v29 }
0x1782   :  { %v2356_v26 = vadd.f32 %v2340_v9, %v2288_v23 }
0x1783   :  { %v2316_v24 = vpop.f32.mrf.mxu3 }
0x1784   :  { %v2367_v40 = vadd.f32 %v2351_v32, %v2316_v24  ;;  %v2328_v24 = vmul.f32 3.0, %v4346_v27  ;;  %v2326_v32 = vmul.f32 3.0, %v4344_v20  ;;  %v2370_v13 = vpack.c.bf16 %v2356_v26, %v4367_v61 }
0x1786   :  { %v2342_v27 = vsub.f32 %v3786_v10, %v2326_v32 }
0x1788   :  { %v2358_v21 = vadd.f32 %v2342_v27, %v2293_v8 }
0x178a   :  { %v2371_v20 = vpack.c.bf16 %v2358_v21, %v2357_v31 }
0x178b   :  { %v2318_v53 = vpop.f32.mrf.mxu3 }
0x178c   :  { %v2368_v57 = vadd.f32 %v2352_v36, %v2318_v53  ;;  %v2373_v36 = vpack.c.bf16 %v2362_v34, %v2361_v4  ;;  %v2322_v53 = vmul.f32 3.0, %v4340_v1  ;;  %v3344_v34 = vld [vmem:[#allocation3 + $0x38] sm:$0xff] }
0x178e   :  { %v2376_v37 = vpack.c.bf16 %v2368_v57, %v2367_v40  ;;  %v2338_v52 = vsub.f32 %v3811_v56, %v2322_v53 }
0x1790   :  { %2377 = vmatpush.bf16.msrb.mxu0 %v2376_v37  ;;  %v2344_v37 = vsub.f32 %v3771_v30, %v2328_v24  ;;  %v3340_v24 = vld [vmem:[#allocation3 + $0x10] sm:$0xff] }
0x1792   :  { %v2360_v62 = vadd.f32 %v2344_v37, %v2298_v11  ;;  %v2354_v11 = vadd.f32 %v2338_v52, %v4364_v35 }
0x1794   :  { %2378 = vmatpush.bf16.msrb.mxu0 %v2375_v15  ;;  %v2372_v58 = vpack.c.bf16 %v2360_v62, %v2359_v47  ;;  %v2369_v59 = vpack.c.bf16 %v2354_v11, %v4362_v50  ;;  %v3339_v15 = vld [vmem:[#allocation3 + $0x18] sm:$0xff] }
0x1798   :  { %2379 = vmatpush.bf16.msrb.mxu0 %v2374_v28 }
0x179c   :  { %2380 = vmatpush.bf16.msrb.mxu0 %v2373_v36 }
0x17a0   :  { %2381 = vmatpush.bf16.msrb.mxu0 %v2372_v58 }
0x17a4   :  { %2382 = vmatpush.bf16.msrb.mxu0 %v2371_v20 }
0x17a8   :  { %2383 = vmatpush.bf16.msrb.mxu0 %v2370_v13 }
0x17ac   :  { %2384 = vmatpush.bf16.msrb.mxu0 %v2369_v59 }
0x17af   :  { %2385 = vmatmul.bf16.vlgmr.msrb.gmra.mxu0 %v4329_v7 }
0x17bf   :  { %2390 = vmatmul.bf16.gmra.mxu0 %v4326_v16 }
0x17cf   :  { %2395 = vmatmul.bf16.gmra.mxu0 %v4323_v55 }
0x17df   :  { %2400 = vmatmul.bf16.gmra.mxu0 %v4320_v33 }
0x17ef   :  { %2405 = vmatmul.bf16.gmra.mxu0 %v4317_v43 }
0x17ff   :  { %2410 = vmatmul.bf16.gmra.mxu0 %v4314_v17 }
0x180f   :  { %2415 = vmatmul.bf16.gmra.mxu0 %v4311_v41 }
0x181f   :  { %2420 = vmatmul.bf16.gmra.mxu0 %v4308_v18 }
0x182c   :  { %v2386_v1 = vpop.f32.mrf.mxu0 }
0x1834   :  { %v2388_v35 = vpop.f32.mrf.mxu0 }
0x1835   :  { %v4422_v5 = vpack.c.bf16 %v2388_v35, %v2386_v1 }
0x183c   :  { %v2391_v50 = vpop.f32.mrf.mxu0 }
0x1844   :  { %v2393_v61 = vpop.f32.mrf.mxu0 }
0x1845   :  { %v4419_v14 = vpack.c.bf16 %v2393_v61, %v2391_v50 }
0x184c   :  { %v2396_v23 = vpop.f32.mrf.mxu0 }
0x1854   :  { %v2398_v7 = vpop.f32.mrf.mxu0 }
0x1855   :  { %v4416_v0 = vpack.c.bf16 %v2398_v7, %v2396_v23 }
0x185c   :  { %v2401_v31 = vpop.f32.mrf.mxu0 }
0x1864   :  { %v2403_v16 = vpop.f32.mrf.mxu0 }
0x1865   :  { %v4413_v60 = vpack.c.bf16 %v2403_v16, %v2401_v31 }
0x1867   :  { %4992 = vst [vmem:[#allocation13_spill] sm:$0xff] %v4413_v60 }
0x186c   :  { %v2406_v8 = vpop.f32.mrf.mxu0 }
0x1874   :  { %v2408_v55 = vpop.f32.mrf.mxu0 }
0x1875   :  { %v4410_v25 = vpack.c.bf16 %v2408_v55, %v2406_v8 }
0x1877   :  { %4991 = vst [vmem:[#allocation12_spill] sm:$0xff] %v4410_v25 }
0x187c   :  { %v2411_v47 = vpop.f32.mrf.mxu0 }
0x1884   :  { %v2413_v33 = vpop.f32.mrf.mxu0 }
0x1885   :  { %v4407_v41 = vpack.c.bf16 %v2413_v33, %v2411_v47 }
0x1887   :  { %4990 = vst [vmem:[#allocation11_spill] sm:$0xff] %v4407_v41 }
0x188c   :  { %v2416_v40 = vpop.f32.mrf.mxu0 }
0x1894   :  { %v2418_v43 = vpop.f32.mrf.mxu0 }
0x1895   :  { %v4404_v18 = vpack.c.bf16 %v2418_v43, %v2416_v40 }
0x1897   :  { %4989 = vst [vmem:[#allocation16_spill] sm:$0xff] %v4404_v18 }
0x189c   :  { %v2421_v57 = vpop.f32.mrf.mxu0 }
0x18a4   :  { %v2423_v17 = vpop.f32.mrf.mxu0 }
0x18a5   :  { %v4401_v3 = vpack.c.bf16 %v2423_v17, %v2421_v57 }
0x18a7   :  { %4988 = vst [vmem:[#allocation15_spill] sm:$0xff] %v4401_v3  ;;  %2434 = vmatpush.bf16.msrb.mxu1 %v4401_v3 }
0x18ab   :  { %2435 = vmatpush.bf16.msrb.mxu1 %v4404_v18 }
0x18af   :  { %2436 = vmatpush.bf16.msrb.mxu1 %v4407_v41 }
0x18b3   :  { %2437 = vmatpush.bf16.msrb.mxu1 %v4410_v25 }
0x18b7   :  { %2438 = vmatpush.bf16.msrb.mxu1 %v4413_v60 }
0x18bb   :  { %2439 = vmatpush.bf16.msrb.mxu1 %v4416_v0 }
0x18bf   :  { %2440 = vmatpush.bf16.msrb.mxu1 %v4419_v14 }
0x18c3   :  { %2441 = vmatpush.bf16.msrb.mxu1 %v4422_v5 }
0x18c6   :  { %2442 = vmatmul.bf16.vlgmr.msrb.gmra.mxu1 %v3337_v48 }
0x18d6   :  { %2447 = vmatmul.bf16.gmra.mxu1 %v3338_v51 }
0x18e6   :  { %2452 = vmatmul.bf16.gmra.mxu1 %v3339_v15 }
0x18f6   :  { %2457 = vmatmul.bf16.gmra.mxu1 %v3340_v24 }
0x1906   :  { %2462 = vmatmul.bf16.gmra.mxu1 %v3341_v46 }
0x1916   :  { %2467 = vmatmul.bf16.gmra.mxu1 %v3342_v12 }
0x1926   :  { %2472 = vmatmul.bf16.gmra.mxu1 %v3343_v44 }
0x1936   :  { %2477 = vmatmul.bf16.gmra.mxu1 %v3344_v34 }
0x1943   :  { %v4425_v28 = vpop.f32.mrf.mxu1 }
0x194b   :  { %v4427_v32 = vpop.f32.mrf.mxu1 }
0x194c   :  { %v2483_v7 = vpack.c.bf16 %v4427_v32, %v4425_v28 }
0x1953   :  { %v4429_v37 = vpop.f32.mrf.mxu1 }
0x195b   :  { %v4431_v4 = vpop.f32.mrf.mxu1 }
0x195c   :  { %v2484_v23 = vpack.c.bf16 %v4431_v4, %v4429_v37 }
0x1963   :  { %v4433_v62 = vpop.f32.mrf.mxu1 }
0x196b   :  { %v4435_v36 = vpop.f32.mrf.mxu1 }
0x196c   :  { %v2485_v61 = vpack.c.bf16 %v4435_v36, %v4433_v62 }
0x1973   :  { %v4437_v29 = vpop.f32.mrf.mxu1 }
0x197b   :  { %v4439_v27 = vpop.f32.mrf.mxu1 }
0x197c   :  { %v2486_v50 = vpack.c.bf16 %v4439_v27, %v4437_v29 }
0x1983   :  { %v4441_v21 = vpop.f32.mrf.mxu1 }
0x198b   :  { %v2465_v58 = vpop.f32.mrf.mxu1 }
0x198c   :  { %v2487_v35 = vpack.c.bf16 %v2465_v58, %v4441_v21  ;;  %v2549_v60 = vmul.f32 3.0, %v2465_v58 }
0x1993   :  { %v2468_v53 = vpop.f32.mrf.mxu1 }
0x1994   :  { %v2550_v3 = vmul.f32 3.0, %v2468_v53 }
0x199b   :  { %v2470_v9 = vpop.f32.mrf.mxu1 }
0x199c   :  { %v2488_v1 = vpack.c.bf16 %v2470_v9, %v2468_v53 }
0x19a3   :  { %v2473_v26 = vpop.f32.mrf.mxu1 }
0x19ab   :  { %v2475_v20 = vpop.f32.mrf.mxu1 }
0x19ac   :  { %v2489_v59 = vpack.c.bf16 %v2475_v20, %v2473_v26  ;;  %v2553_v34 = vmul.f32 3.0, %v2475_v20 }
0x19b3   :  { %v2478_v52 = vpop.f32.mrf.mxu1 }
0x19b4   :  { %v2554_v12 = vmul.f32 3.0, %v2478_v52 }
0x19bb   :  { %v2480_v11 = vpop.f32.mrf.mxu1 }
0x19bc   :  { %v2490_v13 = vpack.c.bf16 %v2480_v11, %v2478_v52  ;;  %v2555_v44 = vmul.f32 3.0, %v2480_v11  ;;  %v2566_v11 = vsub.f32 %v3754_v38, %v2550_v3  ;;  %v2544_v3 = vmul.f32 3.0, %v4433_v62 }
0x19be   :  { %2491 = vmatpush.bf16.msra.mxu2 %v2490_v13 }
0x19c2   :  { %2492 = vmatpush.bf16.msra.mxu2 %v2489_v59 }
0x19c6   :  { %2493 = vmatpush.bf16.msra.mxu2 %v2488_v1 }
0x19ca   :  { %2494 = vmatpush.bf16.msra.mxu2 %v2487_v35 }
0x19ce   :  { %2495 = vmatpush.bf16.msra.mxu2 %v2486_v50 }
0x19d2   :  { %2496 = vmatpush.bf16.msra.mxu2 %v2485_v61 }
0x19d6   :  { %2497 = vmatpush.bf16.msra.mxu2 %v2484_v23 }
0x19da   :  { %2498 = vmatpush.bf16.msra.mxu2 %v2483_v7 }
0x19dd   :  { %2499 = vmatmul.bf16.vlgmr.msra.gmra.mxu2 %v2483_v7 }
0x19ed   :  { %2504 = vmatmul.bf16.gmra.mxu2 %v2484_v23 }
0x19fd   :  { %2509 = vmatmul.bf16.gmra.mxu2 %v2485_v61  ;;  %v2569_v61 = vsub.f32 %v3734_v42, %v2553_v34 }
0x1a0d   :  { %2514 = vmatmul.bf16.gmra.mxu2 %v2486_v50  ;;  %v2551_v50 = vmul.f32 3.0, %v2470_v9 }
0x1a0f   :  { %v2567_v52 = vsub.f32 %v3749_v49, %v2551_v50 }
0x1a1d   :  { %2519 = vmatmul.bf16.gmra.mxu2 %v2487_v35 }
0x1a2d   :  { %2524 = vmatmul.bf16.gmra.mxu2 %v2488_v1  ;;  %v2571_v1 = vsub.f32 %v4949_v2, %v2555_v44  ;;  %v2547_v44 = vmul.f32 3.0, %v4439_v27 }
0x1a3d   :  { %2529 = vmatmul.bf16.gmra.mxu2 %v2489_v59  ;;  %v2570_v59 = vsub.f32 %v3725_v54, %v2554_v12 }
0x1a4d   :  { %2534 = vmatmul.bf16.gmra.mxu2 %v2490_v13  ;;  %v2552_v13 = vmul.f32 3.0, %v2473_v26  ;;  %v2548_v26 = vmul.f32 3.0, %v4441_v21 }
0x1a4f   :  { %v2568_v18 = vsub.f32 %v3742_v6, %v2552_v13  ;;  %v2564_v58 = vsub.f32 %v4978_v39, %v2548_v26 }
0x1a60   :  { %v4452_v31 = vpop.f32.mrf.mxu2 }
0x1a68   :  { %v4454_v16 = vpop.f32.mrf.mxu2 }
0x1a70   :  { %v4456_v8 = vpop.f32.mrf.mxu2 }
0x1a78   :  { %v4458_v55 = vpop.f32.mrf.mxu2 }
0x1a80   :  { %v2510_v47 = vpop.f32.mrf.mxu2 }
0x1a88   :  { %v2512_v33 = vpop.f32.mrf.mxu2 }
0x1a90   :  { %v2515_v40 = vpop.f32.mrf.mxu2 }
0x1a98   :  { %v2517_v43 = vpop.f32.mrf.mxu2 }
0x1aa0   :  { %v2520_v57 = vpop.f32.mrf.mxu2 }
0x1aa1   :  { %v2580_v21 = vadd.f32 %v2564_v58, %v2520_v57  ;;  %v2541_v57 = vmul.f32 3.0, %v4427_v32 }
0x1aa8   :  { %v2522_v17 = vpop.f32.mrf.mxu2 }
0x1ab0   :  { %v2525_v48 = vpop.f32.mrf.mxu2 }
0x1ab1   :  { %v2582_v53 = vadd.f32 %v2566_v11, %v2525_v48  ;;  %v2543_v48 = vmul.f32 3.0, %v4431_v4 }
0x1ab3   :  { %v2559_v62 = vsub.f32 %v3799_v19, %v2543_v48  ;;  %v4563_v48 = vld [vmem:[#allocation2 + $0x30] sm:$0xff] }
0x1ab4   :  { %5019 = vst [vmem:[#allocation30_spill] sm:$0xff] %v4563_v48 }
0x1ab5   :  { %v2575_v50 = vadd.f32 %v2559_v62, %v4458_v55  ;;  %v4997_v55 = vld [vmem:[#allocation11_spill] sm:$0xff]  ;;  %v4587_v62 = vld [vmem:[#allocation2 + $0x70] sm:$0xff] }
0x1ab6   :  { %5027 = vst [vmem:[#allocation38_spill] sm:$0xff] %v4587_v62 }
0x1ab8   :  { %v2527_v51 = vpop.f32.mrf.mxu2 }
0x1ab9   :  { %v2583_v12 = vadd.f32 %v2567_v52, %v2527_v51 }
0x1abb   :  { %v2593_v13 = vpack.c.bf16 %v2583_v12, %v2582_v53 }
0x1ac0   :  { %v2530_v15 = vpop.f32.mrf.mxu2 }
0x1ac1   :  { %v2584_v20 = vadd.f32 %v2568_v18, %v2530_v15  ;;  %v2545_v18 = vmul.f32 3.0, %v4435_v36  ;;  %v2560_v36 = vsub.f32 %v4986_v22, %v2544_v3  ;;  %v4551_v3 = vld [vmem:[#allocation2 + $0x10] sm:$0xff] }
0x1ac2   :  { %5015 = vst [vmem:[#allocation26_spill] sm:$0xff] %v4551_v3 }
0x1ac8   :  { %v2532_v24 = vpop.f32.mrf.mxu2 }
0x1ac9   :  { %v2585_v41 = vadd.f32 %v2569_v61, %v2532_v24  ;;  %v2546_v24 = vmul.f32 3.0, %v4437_v29  ;;  %v2561_v29 = vsub.f32 %v3786_v10, %v2545_v18  ;;  %v2557_v61 = vsub.f32 %v3811_v56, %v2541_v57  ;;  %v4584_v57 = vld [vmem:[#allocation2 + $0x68] sm:$0xff] }
0x1aca   :  { %5026 = vst [vmem:[#allocation37_spill] sm:$0xff] %v4584_v57 }
0x1acb   :  { %v2594_v9 = vpack.c.bf16 %v2585_v41, %v2584_v20  ;;  %v2562_v41 = vsub.f32 %v4987_v45, %v2546_v24  ;;  %v2577_v15 = vadd.f32 %v2561_v29, %v2512_v33  ;;  %v4994_v33 = vld [vmem:[#allocation14_spill] sm:$0xff]  ;;  %v2573_v32 = vadd.f32 %v2557_v61, %v4454_v16  ;;  %v4998_v20 = vld [vmem:[#allocation16_spill] sm:$0xff]  ;;  %v4999_v16 = vld [vmem:[#allocation15_spill] sm:$0xff] }
0x1acc   :  { %v4566_v29 = vld [vmem:[#allocation2 + $0x38] sm:$0xff] }
0x1acd   :  { %v2578_v51 = vadd.f32 %v2562_v41, %v2515_v40  ;;  %v4554_v41 = vld [vmem:[#allocation2 + $0x18] sm:$0xff]  ;;  %5020 = vst [vmem:[#allocation31_spill] sm:$0xff] %v4566_v29 }
0x1ace   :  { %5016 = vst [vmem:[#allocation27_spill] sm:$0xff] %v4554_v41 }
0x1ad0   :  { %v2535_v46 = vpop.f32.mrf.mxu2 }
0x1ad1   :  { %v2586_v23 = vadd.f32 %v2570_v59, %v2535_v46  ;;  %v2565_v46 = vsub.f32 %v3760_v63, %v2549_v60 }
0x1ad3   :  { %v2581_v34 = vadd.f32 %v2565_v46, %v2522_v17  ;;  %v2542_v17 = vmul.f32 3.0, %v4429_v37 }
0x1ad5   :  { %v2592_v60 = vpack.c.bf16 %v2581_v34, %v2580_v21  ;;  %v4548_v21 = vld [vmem:[#allocation2 + $0x8] sm:$0xff] }
0x1ad6   :  { %5014 = vst [vmem:[#allocation25_spill] sm:$0xff] %v4548_v21 }
0x1ad8   :  { %v2537_v35 = vpop.f32.mrf.mxu2 }
0x1ad9   :  { %v2587_v7 = vadd.f32 %v2571_v1, %v2537_v35  ;;  %v2576_v1 = vadd.f32 %v2560_v36, %v2510_v47  ;;  %v4993_v35 = vld [vmem:[#allocation19_spill] sm:$0xff]  ;;  %v4575_v36 = vld [vmem:[#allocation2 + $0x50] sm:$0xff] }
0x1ada   :  { %v2558_v4 = vsub.f32 %v4993_v35, %v2542_v17  ;;  %v4572_v17 = vld [vmem:[#allocation2 + $0x48] sm:$0xff]  ;;  %5023 = vst [vmem:[#allocation34_spill] sm:$0xff] %v4575_v36 }
0x1adb   :  { %v2595_v25 = vpack.c.bf16 %v2587_v7, %v2586_v23  ;;  %v2590_v40 = vpack.c.bf16 %v2577_v15, %v2576_v1  ;;  %5022 = vst [vmem:[#allocation33_spill] sm:$0xff] %v4572_v17  ;;  %v4578_v15 = vld [vmem:[#allocation2 + $0x58] sm:$0xff] }
0x1adc   :  { %v2574_v37 = vadd.f32 %v2558_v4, %v4456_v8  ;;  %v4996_v8 = vld [vmem:[#allocation12_spill] sm:$0xff]  ;;  %5024 = vst [vmem:[#allocation35_spill] sm:$0xff] %v4578_v15  ;;  %v4590_v1 = vld [vmem:[#allocation2 + $0x78] sm:$0xff] }
0x1add   :  { %2596 = vmatpush.bf16.msra.mxu3 %v2595_v25  ;;  %v2563_v25 = vsub.f32 %v3771_v30, %v2547_v44  ;;  %5028 = vst [vmem:[#allocation39_spill] sm:$0xff] %v4590_v1 }
0x1ade   :  { %v2589_v7 = vpack.c.bf16 %v2575_v50, %v2574_v37 }
0x1adf   :  { %v2579_v27 = vadd.f32 %v2563_v25, %v2517_v43  ;;  %v2540_v43 = vmul.f32 3.0, %v4425_v28  ;;  %v4995_v28 = vld [vmem:[#allocation13_spill] sm:$0xff]  ;;  %v4544_v25 = vld [vmem:[#allocation2] sm:$0xff] }
0x1ae0   :  { %5013 = vst [vmem:[#allocation24_spill] sm:$0xff] %v4544_v25 }
0x1ae1   :  { %2597 = vmatpush.bf16.msra.mxu3 %v2594_v9  ;;  %v2591_v59 = vpack.c.bf16 %v2579_v27, %v2578_v51  ;;  %v2556_v23 = vsub.f32 %v4994_v33, %v2540_v43  ;;  %v4557_v27 = vld [vmem:[#allocation2 + $0x20] sm:$0xff] }
0x1ae2   :  { %5017 = vst [vmem:[#allocation28_spill] sm:$0xff] %v4557_v27  ;;  %v4569_v51 = vld [vmem:[#allocation2 + $0x40] sm:$0xff] }
0x1ae3   :  { %v2572_v47 = vadd.f32 %v2556_v23, %v4452_v31  ;;  %5021 = vst [vmem:[#allocation32_spill] sm:$0xff] %v4569_v51 }
0x1ae5   :  { %2598 = vmatpush.bf16.msra.mxu3 %v2593_v13  ;;  %v2588_v52 = vpack.c.bf16 %v2573_v32, %v2572_v47 }
0x1ae9   :  { %2599 = vmatpush.bf16.msra.mxu3 %v2592_v60  ;;  %v4560_v60 = vld [vmem:[#allocation2 + $0x28] sm:$0xff] }
0x1aea   :  { %5018 = vst [vmem:[#allocation29_spill] sm:$0xff] %v4560_v60 }
0x1aed   :  { %2600 = vmatpush.bf16.msra.mxu3 %v2591_v59  ;;  %v4581_v59 = vld [vmem:[#allocation2 + $0x60] sm:$0xff] }
0x1aee   :  { %5025 = vst [vmem:[#allocation36_spill] sm:$0xff] %v4581_v59 }
0x1af1   :  { %2601 = vmatpush.bf16.msra.mxu3 %v2590_v40 }
0x1af5   :  { %2602 = vmatpush.bf16.msra.mxu3 %v2589_v7 }
0x1af9   :  { %2603 = vmatpush.bf16.msra.mxu3 %v2588_v52 }
0x1afc   :  { %2604 = vmatmul.bf16.vlgmr.msra.gmra.mxu3 %v4422_v5 }
0x1b0c   :  { %2609 = vmatmul.bf16.gmra.mxu3 %v4419_v14 }
0x1b1c   :  { %2614 = vmatmul.bf16.gmra.mxu3 %v4416_v0 }
0x1b2c   :  { %2619 = vmatmul.bf16.gmra.mxu3 %v4995_v28 }
0x1b3c   :  { %2624 = vmatmul.bf16.gmra.mxu3 %v4996_v8 }
0x1b4c   :  { %2629 = vmatmul.bf16.gmra.mxu3 %v4997_v55 }
0x1b5c   :  { %2634 = vmatmul.bf16.gmra.mxu3 %v4998_v20 }
0x1b6c   :  { %2639 = vmatmul.bf16.gmra.mxu3 %v4999_v16 }
0x1b7f   :  { %v4497_v31 = vpop.f32.mrf.mxu3 }
0x1b87   :  { %v4499_v26 = vpop.f32.mrf.mxu3 }
0x1b8f   :  { %v4501_v11 = vpop.f32.mrf.mxu3 }
0x1b97   :  { %v4503_v5 = vpop.f32.mrf.mxu3 }
0x1b98   :  { %5000 = vst [vmem:[#allocation20_spill] sm:$0xff] %v4503_v5 }
0x1b9f   :  { %v4505_v14 = vpop.f32.mrf.mxu3 }
0x1ba0   :  { %5001 = vst [vmem:[#allocation18_spill] sm:$0xff] %v4505_v14 }
0x1ba7   :  { %v4507_v0 = vpop.f32.mrf.mxu3 }
0x1ba8   :  { %5002 = vst [vmem:[#allocation17_spill] sm:$0xff] %v4507_v0 }
0x1baf   :  { %v4509_v12 = vpop.f32.mrf.mxu3 }
0x1bb0   :  { %5003 = vst [vmem:[#allocation19_spill] sm:$0xff] %v4509_v12 }
0x1bb7   :  { %v4511_v9 = vpop.f32.mrf.mxu3 }
0x1bb8   :  { %5004 = vst [vmem:[#allocation14_spill] sm:$0xff] %v4511_v9 }
0x1bbf   :  { %v4513_v44 = vpop.f32.mrf.mxu3 }
0x1bc0   :  { %5005 = vst [vmem:[#allocation13_spill] sm:$0xff] %v4513_v44 }
0x1bc7   :  { %v4515_v46 = vpop.f32.mrf.mxu3 }
0x1bc8   :  { %5006 = vst [vmem:[#allocation12_spill] sm:$0xff] %v4515_v46 }
0x1bcf   :  { %v4517_v53 = vpop.f32.mrf.mxu3 }
0x1bd0   :  { %5007 = vst [vmem:[#allocation11_spill] sm:$0xff] %v4517_v53 }
0x1bd7   :  { %v4519_v24 = vpop.f32.mrf.mxu3 }
0x1bd8   :  { %5008 = vst [vmem:[#allocation16_spill] sm:$0xff] %v4519_v24 }
0x1bdf   :  { %v4521_v58 = vpop.f32.mrf.mxu3 }
0x1be0   :  { %5009 = vst [vmem:[#allocation15_spill] sm:$0xff] %v4521_v58 }
0x1be7   :  { %v4523_v34 = vpop.f32.mrf.mxu3 }
0x1be8   :  { %5010 = vst [vmem:[#allocation21_spill] sm:$0xff] %v4523_v34 }
0x1bef   :  { %v4525_v13 = vpop.f32.mrf.mxu3 }
0x1bf0   :  { %5011 = vst [vmem:[#allocation22_spill] sm:$0xff] %v4525_v13 }
0x1bf7   :  { %v4527_v18 = vpop.f32.mrf.mxu3 }
0x1bf8   :  { %5012 = vst [vmem:[#allocation23_spill] sm:$0xff] %v4527_v18  ;;  %2661 = vmatpush.msra.mxu0 %v4527_v18 }
0x1bfa   :  { %2662 = vmatpush.msra.mxu0 %v4525_v13 }
0x1bfc   :  { %2663 = vmatpush.msra.mxu0 %v4523_v34 }
0x1bfe   :  { %2664 = vmatpush.msra.mxu0 %v4521_v58 }
0x1c00   :  { %2665 = vmatpush.msra.mxu0 %v4519_v24 }
0x1c02   :  { %2666 = vmatpush.msra.mxu0 %v4517_v53 }
0x1c04   :  { %2667 = vmatpush.msra.mxu0 %v4515_v46 }
0x1c06   :  { %2668 = vmatpush.msra.mxu0 %v4513_v44 }
0x1c08   :  { %2669 = vmatpush.msra.mxu0 %v4511_v9 }
0x1c0a   :  { %2670 = vmatpush.msra.mxu0 %v4509_v12 }
0x1c0c   :  { %2671 = vmatpush.msra.mxu0 %v4507_v0 }
0x1c0e   :  { %2672 = vmatpush.msra.mxu0 %v4505_v14 }
0x1c10   :  { %2673 = vmatpush.msra.mxu0 %v4503_v5 }
0x1c12   :  { %2674 = vmatpush.msra.mxu0 %v4501_v11 }
0x1c14   :  { %2675 = vmatpush.msra.mxu0 %v4499_v26 }
0x1c16   :  { %2676 = vmatpush.msra.mxu0 %v4497_v31 }
0x1c17   :  { %2677 = vmatmul.f32.vlgmr.msra.gmra.mxu0 %v4544_v25 }
0x1c1f   :  { %2680 = vmatmul.f32.gmra.mxu0 %v4548_v21 }
0x1c27   :  { %2683 = vmatmul.f32.gmra.mxu0 %v4551_v3 }
0x1c2f   :  { %2686 = vmatmul.f32.gmra.mxu0 %v4554_v41 }
0x1c37   :  { %2689 = vmatmul.f32.gmra.mxu0 %v4557_v27 }
0x1c3f   :  { %2692 = vmatmul.f32.gmra.mxu0 %v4560_v60 }
0x1c47   :  { %2695 = vmatmul.f32.gmra.mxu0 %v4563_v48 }
0x1c4f   :  { %2698 = vmatmul.f32.gmra.mxu0 %v4566_v29 }
0x1c57   :  { %2701 = vmatmul.f32.gmra.mxu0 %v4569_v51 }
0x1c5f   :  { %2704 = vmatmul.f32.gmra.mxu0 %v4572_v17 }
0x1c67   :  { %2707 = vmatmul.f32.gmra.mxu0 %v4575_v36 }
0x1c6f   :  { %2710 = vmatmul.f32.gmra.mxu0 %v4578_v15 }
0x1c77   :  { %2713 = vmatmul.f32.gmra.mxu0 %v4581_v59 }
0x1c7f   :  { %2716 = vmatmul.f32.gmra.mxu0 %v4584_v57 }
0x1c87   :  { %2719 = vmatmul.f32.gmra.mxu0 %v4587_v62 }
0x1c8f   :  { %2722 = vmatmul.f32.gmra.mxu0 %v4590_v1 }
0x1c94   :  { %v4593_v43 = vpop.f32.mrf.mxu0 }
0x1c9c   :  { %v4595_v4 = vpop.f32.mrf.mxu0 }
0x1ca4   :  { %v4597_v50 = vpop.f32.mrf.mxu0 }
0x1cac   :  { %v4599_v40 = vpop.f32.mrf.mxu0 }
0x1cb4   :  { %v4601_v61 = vpop.f32.mrf.mxu0 }
0x1cbc   :  { %v4603_v37 = vpop.f32.mrf.mxu0 }
0x1cc4   :  { %v4605_v23 = vpop.f32.mrf.mxu0 }
0x1ccc   :  { %v4607_v32 = vpop.f32.mrf.mxu0 }
0x1cd4   :  { %v4609_v7 = vpop.f32.mrf.mxu0 }
0x1cdc   :  { %v4611_v47 = vpop.f32.mrf.mxu0 }
0x1ce4   :  { %v4613_v52 = vpop.f32.mrf.mxu0 }
0x1ce5   :  { %v2801_v0 = vmul.f32 3.0, %v4613_v52 }
0x1cec   :  { %v2711_v28 = vpop.f32.mrf.mxu0 }
0x1ced   :  { %v2802_v44 = vmul.f32 3.0, %v2711_v28 }
0x1cf4   :  { %v2714_v8 = vpop.f32.mrf.mxu0 }
0x1cf5   :  { %v2803_v24 = vmul.f32 3.0, %v2714_v8 }
0x1cf7   :  { %v2819_v14 = vsub.f32 %v3742_v6, %v2803_v24 }
0x1cfc   :  { %v2717_v55 = vpop.f32.mrf.mxu0 }
0x1cfd   :  { %v2804_v13 = vmul.f32 3.0, %v2717_v55 }
0x1cff   :  { %v2820_v9 = vsub.f32 %v3734_v42, %v2804_v13 }
0x1d04   :  { %v2720_v20 = vpop.f32.mrf.mxu0 }
0x1d05   :  { %v2805_v18 = vmul.f32 3.0, %v2720_v20 }
0x1d07   :  { %v2821_v53 = vsub.f32 %v3725_v54, %v2805_v18  ;;  %v2799_v18 = vmul.f32 3.0, %v4609_v7 }
0x1d0c   :  { %v2723_v16 = vpop.f32.mrf.mxu0 }
0x1d0d   :  { %2726 = vmatpush.msra.mxu1 %v2723_v16  ;;  %v2806_v25 = vmul.f32 3.0, %v2723_v16 }
0x1d0f   :  { %2727 = vmatpush.msra.mxu1 %v2720_v20  ;;  %v2822_v34 = vsub.f32 %v4949_v2, %v2806_v25  ;;  %v2818_v25 = vsub.f32 %v3749_v49, %v2802_v44 }
0x1d11   :  { %2728 = vmatpush.msra.mxu1 %v2717_v55 }
0x1d13   :  { %2729 = vmatpush.msra.mxu1 %v2714_v8 }
0x1d15   :  { %2730 = vmatpush.msra.mxu1 %v2711_v28 }
0x1d17   :  { %2731 = vmatpush.msra.mxu1 %v4613_v52 }
0x1d19   :  { %2732 = vmatpush.msra.mxu1 %v4611_v47 }
0x1d1b   :  { %2733 = vmatpush.msra.mxu1 %v4609_v7 }
0x1d1d   :  { %2734 = vmatpush.msra.mxu1 %v4607_v32 }
0x1d1f   :  { %2735 = vmatpush.msra.mxu1 %v4605_v23 }
0x1d21   :  { %2736 = vmatpush.msra.mxu1 %v4603_v37 }
0x1d23   :  { %2737 = vmatpush.msra.mxu1 %v4601_v61 }
0x1d25   :  { %2738 = vmatpush.msra.mxu1 %v4599_v40 }
0x1d27   :  { %2739 = vmatpush.msra.mxu1 %v4597_v50 }
0x1d29   :  { %2740 = vmatpush.msra.mxu1 %v4595_v4 }
0x1d2b   :  { %2741 = vmatpush.msra.mxu1 %v4593_v43 }
0x1d2c   :  { %2742 = vmatmul.f32.vlgmr.msra.gmra.mxu1 %v4593_v43 }
0x1d34   :  { %2745 = vmatmul.f32.gmra.mxu1 %v4595_v4 }
0x1d3c   :  { %2748 = vmatmul.f32.gmra.mxu1 %v4597_v50 }
0x1d44   :  { %2751 = vmatmul.f32.gmra.mxu1 %v4599_v40 }
0x1d4c   :  { %2754 = vmatmul.f32.gmra.mxu1 %v4601_v61 }
0x1d54   :  { %2757 = vmatmul.f32.gmra.mxu1 %v4603_v37 }
0x1d5c   :  { %2760 = vmatmul.f32.gmra.mxu1 %v4605_v23 }
0x1d64   :  { %2763 = vmatmul.f32.gmra.mxu1 %v4607_v32 }
0x1d6c   :  { %2766 = vmatmul.f32.gmra.mxu1 %v4609_v7 }
0x1d74   :  { %2769 = vmatmul.f32.gmra.mxu1 %v4611_v47 }
0x1d7c   :  { %2772 = vmatmul.f32.gmra.mxu1 %v4613_v52  ;;  %v5034_v52 = vld [vmem:[#allocation13_spill] sm:$0xff] }
0x1d84   :  { %2775 = vmatmul.f32.gmra.mxu1 %v2711_v28  ;;  %v5036_v28 = vld [vmem:[#allocation11_spill] sm:$0xff] }
0x1d8c   :  { %2778 = vmatmul.f32.gmra.mxu1 %v2714_v8  ;;  %v5040_v8 = vld [vmem:[#allocation22_spill] sm:$0xff] }
0x1d94   :  { %2781 = vmatmul.f32.gmra.mxu1 %v2717_v55  ;;  %v2800_v55 = vmul.f32 3.0, %v4611_v47  ;;  %v5032_v47 = vld [vmem:[#allocation19_spill] sm:$0xff] }
0x1d9c   :  { %2784 = vmatmul.f32.gmra.mxu1 %v2720_v20 }
0x1da4   :  { %2787 = vmatmul.f32.gmra.mxu1 %v2723_v16  ;;  %v5041_v16 = vld [vmem:[#allocation23_spill] sm:$0xff] }
0x1da9   :  { %v4637_v1 = vpop.f32.mrf.mxu1 }
0x1db1   :  { %v4639_v62 = vpop.f32.mrf.mxu1 }
0x1db9   :  { %v4641_v57 = vpop.f32.mrf.mxu1 }
0x1dc1   :  { %v4643_v59 = vpop.f32.mrf.mxu1 }
0x1dc9   :  { %v2755_v15 = vpop.f32.mrf.mxu1 }
0x1dd1   :  { %v2758_v36 = vpop.f32.mrf.mxu1 }
0x1dd9   :  { %v2761_v17 = vpop.f32.mrf.mxu1 }
0x1de1   :  { %v2764_v51 = vpop.f32.mrf.mxu1 }
0x1de9   :  { %v2767_v29 = vpop.f32.mrf.mxu1 }
0x1df1   :  { %v2770_v48 = vpop.f32.mrf.mxu1 }
0x1df9   :  { %v2773_v60 = vpop.f32.mrf.mxu1 }
0x1e01   :  { %v2776_v27 = vpop.f32.mrf.mxu1 }
0x1e09   :  { %v2779_v41 = vpop.f32.mrf.mxu1 }
0x1e0a   :  { %v2835_v20 = vadd.f32 %v2819_v14, %v2779_v41  ;;  %v2794_v41 = vmul.f32 3.0, %v4599_v40 }
0x1e11   :  { %v2782_v3 = vpop.f32.mrf.mxu1 }
0x1e12   :  { %v2836_v5 = vadd.f32 %v2820_v9, %v2782_v3  ;;  %v2815_v9 = vsub.f32 %v4978_v39, %v2799_v18 }
0x1e14   :  { %v2831_v44 = vadd.f32 %v2815_v9, %v2767_v29  ;;  %v2792_v29 = vmul.f32 3.0, %v4595_v4 }
0x1e19   :  { %v2785_v21 = vpop.f32.mrf.mxu1 }
0x1e1a   :  { %v2837_v12 = vadd.f32 %v2821_v53, %v2785_v21  ;;  %v2816_v53 = vsub.f32 %v3760_v63, %v2800_v55 }
0x1e1c   :  { %v2832_v24 = vadd.f32 %v2816_v53, %v2770_v48  ;;  %v2793_v48 = vmul.f32 3.0, %v4597_v50 }
0x1e1e   :  { %v2809_v40 = vsub.f32 %v4993_v35, %v2793_v48  ;;  %v5060_v48 = vld [vmem:[#allocation29_spill] sm:$0xff] }
0x1e20   :  { %v2825_v50 = vadd.f32 %v2809_v40, %v4641_v57  ;;  %v5031_v57 = vld [vmem:[#allocation17_spill] sm:$0xff]  ;;  %v5067_v40 = vld [vmem:[#allocation36_spill] sm:$0xff] }
0x1e21   :  { %v2788_v58 = vpop.f32.mrf.mxu1 }
0x1e22   :  { %v2838_v46 = vadd.f32 %v2822_v34, %v2788_v58  ;;  %v2817_v58 = vsub.f32 %v3754_v38, %v2801_v0  ;;  %v2834_v34 = vadd.f32 %v2818_v25, %v2776_v27  ;;  %v2795_v0 = vmul.f32 3.0, %v4601_v61 }
0x1e23   :  { %v2810_v61 = vsub.f32 %v3799_v19, %v2794_v41  ;;  %v5057_v41 = vld [vmem:[#allocation26_spill] sm:$0xff] }
0x1e24   :  { %2839 = vmatpush.msrb.mxu2 %v2838_v46  ;;  %v2798_v46 = vmul.f32 3.0, %v4607_v32  ;;  %v2833_v13 = vadd.f32 %v2817_v58, %v2773_v60 }
0x1e25   :  { %v2826_v7 = vadd.f32 %v2810_v61, %v4643_v59  ;;  %v5029_v59 = vld [vmem:[#allocation20_spill] sm:$0xff]  ;;  %v5064_v61 = vld [vmem:[#allocation33_spill] sm:$0xff] }
0x1e26   :  { %2840 = vmatpush.msrb.mxu2 %v2837_v12  ;;  %v2797_v12 = vmul.f32 3.0, %v4605_v23  ;;  %v2814_v14 = vsub.f32 %v3771_v30, %v2798_v46 }
0x1e28   :  { %2841 = vmatpush.msrb.mxu2 %v2836_v5  ;;  %v2796_v5 = vmul.f32 3.0, %v4603_v37  ;;  %v2813_v21 = vsub.f32 %v4987_v45, %v2797_v12  ;;  %v2830_v3 = vadd.f32 %v2814_v14, %v2764_v51  ;;  %v2811_v37 = vsub.f32 %v4986_v22, %v2795_v0 }
0x1e29   :  { %v2791_v51 = vmul.f32 3.0, %v4593_v43  ;;  %v5030_v43 = vld [vmem:[#allocation18_spill] sm:$0xff] }
0x1e2a   :  { %2842 = vmatpush.msrb.mxu2 %v2835_v20  ;;  %v2812_v27 = vsub.f32 %v3786_v10, %v2796_v5  ;;  %v2829_v60 = vadd.f32 %v2813_v21, %v2761_v17  ;;  %v2827_v32 = vadd.f32 %v2811_v37, %v2755_v15  ;;  %v2808_v17 = vsub.f32 %v3811_v56, %v2792_v29  ;;  %v5055_v21 = vld [vmem:[#allocation24_spill] sm:$0xff]  ;;  %v5061_v37 = vld [vmem:[#allocation30_spill] sm:$0xff] }
0x1e2b   :  { %v5063_v29 = vld [vmem:[#allocation32_spill] sm:$0xff] }
0x1e2c   :  { %2843 = vmatpush.msrb.mxu2 %v2834_v34  ;;  %v2828_v23 = vadd.f32 %v2812_v27, %v2758_v36  ;;  %v2807_v36 = vsub.f32 %v4994_v33, %v2791_v51  ;;  %v2824_v4 = vadd.f32 %v2808_v17, %v4639_v62  ;;  %v5033_v62 = vld [vmem:[#allocation14_spill] sm:$0xff]  ;;  %v5058_v27 = vld [vmem:[#allocation27_spill] sm:$0xff] }
0x1e2d   :  { %v5066_v51 = vld [vmem:[#allocation35_spill] sm:$0xff]  ;;  %v5069_v17 = vld [vmem:[#allocation38_spill] sm:$0xff] }
0x1e2e   :  { %2844 = vmatpush.msrb.mxu2 %v2833_v13  ;;  %v2823_v15 = vadd.f32 %v2807_v36, %v4637_v1  ;;  %v5035_v1 = vld [vmem:[#allocation12_spill] sm:$0xff] }
0x1e30   :  { %2845 = vmatpush.msrb.mxu2 %v2832_v24 }
0x1e32   :  { %2846 = vmatpush.msrb.mxu2 %v2831_v44 }
0x1e34   :  { %2847 = vmatpush.msrb.mxu2 %v2830_v3  ;;  %v5056_v3 = vld [vmem:[#allocation25_spill] sm:$0xff] }
0x1e36   :  { %2848 = vmatpush.msrb.mxu2 %v2829_v60  ;;  %v5059_v60 = vld [vmem:[#allocation28_spill] sm:$0xff] }
0x1e38   :  { %2849 = vmatpush.msrb.mxu2 %v2828_v23  ;;  %v5062_v23 = vld [vmem:[#allocation31_spill] sm:$0xff] }
0x1e3a   :  { %2850 = vmatpush.msrb.mxu2 %v2827_v32  ;;  %v5065_v32 = vld [vmem:[#allocation34_spill] sm:$0xff] }
0x1e3c   :  { %2851 = vmatpush.msrb.mxu2 %v2826_v7  ;;  %v5068_v7 = vld [vmem:[#allocation37_spill] sm:$0xff] }
0x1e3e   :  { %2852 = vmatpush.msrb.mxu2 %v2825_v50  ;;  %v5070_v50 = vld [vmem:[#allocation39_spill] sm:$0xff] }
0x1e40   :  { %2853 = vmatpush.msrb.mxu2 %v2824_v4 }
0x1e42   :  { %2854 = vmatpush.msrb.mxu2 %v2823_v15 }
0x1e43   :  { %2855 = vmatmul.f32.vlgmr.msrb.gmra.mxu2 %v4497_v31  ;;  %v5037_v31 = vld [vmem:[#allocation16_spill] sm:$0xff] }
0x1e4b   :  { %2858 = vmatmul.f32.gmra.mxu2 %v4499_v26  ;;  %v5038_v26 = vld [vmem:[#allocation15_spill] sm:$0xff] }
0x1e53   :  { %2861 = vmatmul.f32.gmra.mxu2 %v4501_v11  ;;  %v5039_v11 = vld [vmem:[#allocation21_spill] sm:$0xff] }
0x1e5b   :  { %2864 = vmatmul.f32.gmra.mxu2 %v5029_v59 }
0x1e63   :  { %2867 = vmatmul.f32.gmra.mxu2 %v5030_v43 }
0x1e6b   :  { %2870 = vmatmul.f32.gmra.mxu2 %v5031_v57 }
0x1e73   :  { %2873 = vmatmul.f32.gmra.mxu2 %v5032_v47 }
0x1e7b   :  { %2876 = vmatmul.f32.gmra.mxu2 %v5033_v62 }
0x1e83   :  { %2879 = vmatmul.f32.gmra.mxu2 %v5034_v52 }
0x1e8b   :  { %2882 = vmatmul.f32.gmra.mxu2 %v5035_v1 }
0x1e93   :  { %2885 = vmatmul.f32.gmra.mxu2 %v5036_v28 }
0x1e9b   :  { %2888 = vmatmul.f32.gmra.mxu2 %v5037_v31 }
0x1ea3   :  { %2891 = vmatmul.f32.gmra.mxu2 %v5038_v26 }
0x1eab   :  { %2894 = vmatmul.f32.gmra.mxu2 %v5039_v11 }
0x1eb3   :  { %2897 = vmatmul.f32.gmra.mxu2 %v5040_v8 }
0x1ebb   :  { %2900 = vmatmul.f32.gmra.mxu2 %v5041_v16 }
0x1ec6   :  { %v4692_v55 = vpop.f32.mrf.mxu2 }
0x1ece   :  { %v4694_v25 = vpop.f32.mrf.mxu2 }
0x1ed6   :  { %v4696_v20 = vpop.f32.mrf.mxu2 }
0x1ede   :  { %v4698_v18 = vpop.f32.mrf.mxu2 }
0x1edf   :  { %5042 = vst [vmem:[#allocation20_spill] sm:$0xff] %v4698_v18 }
0x1ee6   :  { %v4700_v58 = vpop.f32.mrf.mxu2 }
0x1ee7   :  { %5043 = vst [vmem:[#allocation18_spill] sm:$0xff] %v4700_v58 }
0x1eee   :  { %v4702_v34 = vpop.f32.mrf.mxu2 }
0x1eef   :  { %5044 = vst [vmem:[#allocation17_spill] sm:$0xff] %v4702_v34 }
0x1ef6   :  { %v4704_v46 = vpop.f32.mrf.mxu2 }
0x1ef7   :  { %5045 = vst [vmem:[#allocation19_spill] sm:$0xff] %v4704_v46 }
0x1efe   :  { %v4706_v53 = vpop.f32.mrf.mxu2 }
0x1eff   :  { %5046 = vst [vmem:[#allocation14_spill] sm:$0xff] %v4706_v53 }
0x1f06   :  { %v4708_v13 = vpop.f32.mrf.mxu2 }
0x1f07   :  { %5047 = vst [vmem:[#allocation13_spill] sm:$0xff] %v4708_v13 }
0x1f0e   :  { %v4710_v12 = vpop.f32.mrf.mxu2 }
0x1f0f   :  { %5048 = vst [vmem:[#allocation12_spill] sm:$0xff] %v4710_v12 }
0x1f16   :  { %v4712_v9 = vpop.f32.mrf.mxu2 }
0x1f17   :  { %5049 = vst [vmem:[#allocation11_spill] sm:$0xff] %v4712_v9 }
0x1f1e   :  { %v4714_v24 = vpop.f32.mrf.mxu2 }
0x1f1f   :  { %5050 = vst [vmem:[#allocation16_spill] sm:$0xff] %v4714_v24 }
0x1f26   :  { %v4716_v5 = vpop.f32.mrf.mxu2 }
0x1f27   :  { %5051 = vst [vmem:[#allocation15_spill] sm:$0xff] %v4716_v5 }
0x1f2e   :  { %v4718_v14 = vpop.f32.mrf.mxu2 }
0x1f2f   :  { %5052 = vst [vmem:[#allocation21_spill] sm:$0xff] %v4718_v14 }
0x1f36   :  { %v4720_v44 = vpop.f32.mrf.mxu2 }
0x1f37   :  { %5053 = vst [vmem:[#allocation22_spill] sm:$0xff] %v4720_v44 }
0x1f3e   :  { %v4722_v0 = vpop.f32.mrf.mxu2 }
0x1f3f   :  { %5054 = vst [vmem:[#allocation23_spill] sm:$0xff] %v4722_v0  ;;  %2904 = vmatpush.msrb.mxu3 %v4722_v0 }
0x1f41   :  { %2905 = vmatpush.msrb.mxu3 %v4720_v44 }
0x1f43   :  { %2906 = vmatpush.msrb.mxu3 %v4718_v14 }
0x1f45   :  { %2907 = vmatpush.msrb.mxu3 %v4716_v5 }
0x1f47   :  { %2908 = vmatpush.msrb.mxu3 %v4714_v24 }
0x1f49   :  { %2909 = vmatpush.msrb.mxu3 %v4712_v9 }
0x1f4b   :  { %2910 = vmatpush.msrb.mxu3 %v4710_v12 }
0x1f4d   :  { %2911 = vmatpush.msrb.mxu3 %v4708_v13 }
0x1f4f   :  { %2912 = vmatpush.msrb.mxu3 %v4706_v53 }
0x1f51   :  { %2913 = vmatpush.msrb.mxu3 %v4704_v46 }
0x1f53   :  { %2914 = vmatpush.msrb.mxu3 %v4702_v34 }
0x1f55   :  { %2915 = vmatpush.msrb.mxu3 %v4700_v58 }
0x1f57   :  { %2916 = vmatpush.msrb.mxu3 %v4698_v18 }
0x1f59   :  { %2917 = vmatpush.msrb.mxu3 %v4696_v20 }
0x1f5b   :  { %2918 = vmatpush.msrb.mxu3 %v4694_v25 }
0x1f5d   :  { %2919 = vmatpush.msrb.mxu3 %v4692_v55 }
0x1f5e   :  { %2920 = vmatmul.f32.vlgmr.msrb.gmra.mxu3 %v5055_v21 }
0x1f66   :  { %2923 = vmatmul.f32.gmra.mxu3 %v5056_v3 }
0x1f6e   :  { %2926 = vmatmul.f32.gmra.mxu3 %v5057_v41 }
0x1f76   :  { %2929 = vmatmul.f32.gmra.mxu3 %v5058_v27 }
0x1f7e   :  { %2932 = vmatmul.f32.gmra.mxu3 %v5059_v60 }
0x1f86   :  { %2935 = vmatmul.f32.gmra.mxu3 %v5060_v48 }
0x1f8e   :  { %2938 = vmatmul.f32.gmra.mxu3 %v5061_v37 }
0x1f96   :  { %2941 = vmatmul.f32.gmra.mxu3 %v5062_v23 }
0x1f9e   :  { %2944 = vmatmul.f32.gmra.mxu3 %v5063_v29 }
0x1fa6   :  { %2947 = vmatmul.f32.gmra.mxu3 %v5064_v61 }
0x1fae   :  { %2950 = vmatmul.f32.gmra.mxu3 %v5065_v32 }
0x1fb6   :  { %2953 = vmatmul.f32.gmra.mxu3 %v5066_v51 }
0x1fbe   :  { %2956 = vmatmul.f32.gmra.mxu3 %v5067_v40 }
0x1fc6   :  { %2959 = vmatmul.f32.gmra.mxu3 %v5068_v7 }
0x1fce   :  { %2962 = vmatmul.f32.gmra.mxu3 %v5069_v17 }
0x1fd6   :  { %2965 = vmatmul.f32.gmra.mxu3 %v5070_v50 }
0x1fe1   :  { %v4756_v36 = vpop.f32.mrf.mxu3 }
0x1fe9   :  { %v4758_v4 = vpop.f32.mrf.mxu3 }
0x1ff1   :  { %v4760_v15 = vpop.f32.mrf.mxu3 }
0x1ff9   :  { %v4762_v59 = vpop.f32.mrf.mxu3 }
0x2001   :  { %v4764_v43 = vpop.f32.mrf.mxu3 }
0x2009   :  { %v4766_v57 = vpop.f32.mrf.mxu3 }
0x2011   :  { %v4768_v47 = vpop.f32.mrf.mxu3 }
0x2019   :  { %v4770_v62 = vpop.f32.mrf.mxu3 }
0x2021   :  { %v4772_v52 = vpop.f32.mrf.mxu3 }
0x2029   :  { %v4774_v1 = vpop.f32.mrf.mxu3 }
0x2031   :  { %v4776_v28 = vpop.f32.mrf.mxu3 }
0x2032   :  { %v3044_v34 = vmul.f32 3.0, %v4776_v28 }
0x2039   :  { %v2954_v31 = vpop.f32.mrf.mxu3 }
0x203a   :  { %v3045_v13 = vmul.f32 3.0, %v2954_v31 }
0x2041   :  { %v2957_v26 = vpop.f32.mrf.mxu3 }
0x2042   :  { %v3046_v24 = vmul.f32 3.0, %v2957_v26 }
0x2044   :  { %v3062_v58 = vsub.f32 %v3742_v6, %v3046_v24  ;;  %v3040_v6 = vmul.f32 3.0, %v4768_v47 }
0x2049   :  { %v2960_v11 = vpop.f32.mrf.mxu3 }
0x204a   :  { %v3047_v44 = vmul.f32 3.0, %v2960_v11 }
0x204c   :  { %v3063_v53 = vsub.f32 %v3734_v42, %v3047_v44  ;;  %v3041_v42 = vmul.f32 3.0, %v4770_v62 }
0x2051   :  { %v2963_v8 = vpop.f32.mrf.mxu3 }
0x2052   :  { %v3048_v0 = vmul.f32 3.0, %v2963_v8 }
0x2054   :  { %v3064_v9 = vsub.f32 %v3725_v54, %v3048_v0  ;;  %v3042_v54 = vmul.f32 3.0, %v4772_v52 }
0x2059   :  { %v2966_v16 = vpop.f32.mrf.mxu3 }
0x205a   :  { %2969 = vmatpush.msrb.mxu0 %v2966_v16  ;;  %v3049_v50 = vmul.f32 3.0, %v2966_v16 }
0x205c   :  { %2970 = vmatpush.msrb.mxu0 %v2963_v8  ;;  %v3065_v14 = vsub.f32 %v4949_v2, %v3049_v50  ;;  %v3061_v2 = vsub.f32 %v3749_v49, %v3045_v13  ;;  %v3039_v49 = vmul.f32 3.0, %v4766_v57 }
0x205e   :  { %2971 = vmatpush.msrb.mxu0 %v2960_v11  ;;  %v3055_v24 = vsub.f32 %v3786_v10, %v3039_v49 }
0x2060   :  { %2972 = vmatpush.msrb.mxu0 %v2957_v26 }
0x2062   :  { %2973 = vmatpush.msrb.mxu0 %v2954_v31 }
0x2064   :  { %2974 = vmatpush.msrb.mxu0 %v4776_v28 }
0x2066   :  { %2975 = vmatpush.msrb.mxu0 %v4774_v1 }
0x2068   :  { %2976 = vmatpush.msrb.mxu0 %v4772_v52 }
0x206a   :  { %2977 = vmatpush.msrb.mxu0 %v4770_v62 }
0x206c   :  { %2978 = vmatpush.msrb.mxu0 %v4768_v47 }
0x206e   :  { %2979 = vmatpush.msrb.mxu0 %v4766_v57 }
0x2070   :  { %2980 = vmatpush.msrb.mxu0 %v4764_v43 }
0x2072   :  { %2981 = vmatpush.msrb.mxu0 %v4762_v59 }
0x2074   :  { %2982 = vmatpush.msrb.mxu0 %v4760_v15 }
0x2076   :  { %2983 = vmatpush.msrb.mxu0 %v4758_v4 }
0x2078   :  { %2984 = vmatpush.msrb.mxu0 %v4756_v36 }
0x2079   :  { %2985 = vmatmul.f32.vlgmr.msrb.gmra.mxu0 %v4756_v36 }
0x2081   :  { %2988 = vmatmul.f32.gmra.mxu0 %v4758_v4 }
0x2089   :  { %2991 = vmatmul.f32.gmra.mxu0 %v4760_v15 }
0x2091   :  { %2994 = vmatmul.f32.gmra.mxu0 %v4762_v59 }
0x2099   :  { %2997 = vmatmul.f32.gmra.mxu0 %v4764_v43 }
0x20a1   :  { %3000 = vmatmul.f32.gmra.mxu0 %v4766_v57 }
0x20a9   :  { %3003 = vmatmul.f32.gmra.mxu0 %v4768_v47 }
0x20b1   :  { %3006 = vmatmul.f32.gmra.mxu0 %v4770_v62 }
0x20b9   :  { %3009 = vmatmul.f32.gmra.mxu0 %v4772_v52  ;;  %v5075_v52 = vld [vmem:[#allocation14_spill] sm:$0xff] }
0x20c1   :  { %3012 = vmatmul.f32.gmra.mxu0 %v4774_v1 }
0x20c9   :  { %3015 = vmatmul.f32.gmra.mxu0 %v4776_v28  ;;  %v5077_v28 = vld [vmem:[#allocation12_spill] sm:$0xff] }
0x20d1   :  { %3018 = vmatmul.f32.gmra.mxu0 %v2954_v31  ;;  %v5078_v31 = vld [vmem:[#allocation11_spill] sm:$0xff] }
0x20d9   :  { %3021 = vmatmul.f32.gmra.mxu0 %v2957_v26  ;;  %v5082_v26 = vld [vmem:[#allocation22_spill] sm:$0xff] }
0x20e1   :  { %3024 = vmatmul.f32.gmra.mxu0 %v2960_v11  ;;  %v3043_v11 = vmul.f32 3.0, %v4774_v1  ;;  %v5076_v1 = vld [vmem:[#allocation13_spill] sm:$0xff] }
0x20e9   :  { %3027 = vmatmul.f32.gmra.mxu0 %v2963_v8 }
0x20f1   :  { %3030 = vmatmul.f32.gmra.mxu0 %v2966_v16  ;;  %v5083_v16 = vld [vmem:[#allocation23_spill] sm:$0xff] }
0x20f6   :  { %v4800_v21 = vpop.f32.mrf.mxu0 }
0x20fe   :  { %v4802_v3 = vpop.f32.mrf.mxu0 }
0x2106   :  { %v4804_v41 = vpop.f32.mrf.mxu0 }
0x210e   :  { %v4806_v27 = vpop.f32.mrf.mxu0 }
0x2116   :  { %v2998_v60 = vpop.f32.mrf.mxu0 }
0x211e   :  { %v3001_v48 = vpop.f32.mrf.mxu0 }
0x211f   :  { %v3071_v57 = vadd.f32 %v3055_v24, %v3001_v48 }
0x2126   :  { %v3004_v37 = vpop.f32.mrf.mxu0 }
0x212e   :  { %v3007_v23 = vpop.f32.mrf.mxu0 }
0x2136   :  { %v3010_v29 = vpop.f32.mrf.mxu0 }
0x213e   :  { %v3013_v61 = vpop.f32.mrf.mxu0 }
0x2146   :  { %v3016_v32 = vpop.f32.mrf.mxu0 }
0x214e   :  { %v3019_v51 = vpop.f32.mrf.mxu0 }
0x2156   :  { %v3022_v40 = vpop.f32.mrf.mxu0 }
0x2157   :  { %v3078_v8 = vadd.f32 %v3062_v58, %v3022_v40 }
0x215e   :  { %v3025_v7 = vpop.f32.mrf.mxu0 }
0x215f   :  { %v3079_v18 = vadd.f32 %v3063_v53, %v3025_v7 }
0x2166   :  { %v3028_v17 = vpop.f32.mrf.mxu0 }
0x2167   :  { %v3080_v46 = vadd.f32 %v3064_v9, %v3028_v17 }
0x216e   :  { %v3031_v5 = vpop.f32.mrf.mxu0 }
0x216f   :  { %v3081_v12 = vadd.f32 %v3065_v14, %v3031_v5  ;;  %v3060_v5 = vsub.f32 %v3754_v38, %v3044_v34  ;;  %v3077_v14 = vadd.f32 %v3061_v2, %v3019_v51  ;;  %v3038_v38 = vmul.f32 3.0, %v4764_v43 }
0x2170   :  { %v3056_v34 = vsub.f32 %v4987_v45, %v3040_v6  ;;  %v3034_v45 = vmul.f32 3.0, %v4756_v36  ;;  %v5073_v36 = vld [vmem:[#allocation17_spill] sm:$0xff] }
0x2171   :  { %3082 = vmatpush.msrb.mxu1 %v3081_v12  ;;  %v3059_v12 = vsub.f32 %v3760_v63, %v3043_v11  ;;  %v3076_v9 = vadd.f32 %v3060_v5, %v3016_v32  ;;  %v3037_v63 = vmul.f32 3.0, %v4762_v59  ;;  %v3054_v0 = vsub.f32 %v4986_v22, %v3038_v38 }
0x2172   :  { %v3072_v44 = vadd.f32 %v3056_v34, %v3004_v37  ;;  %v3050_v22 = vsub.f32 %v4994_v33, %v3034_v45  ;;  %v5074_v33 = vld [vmem:[#allocation19_spill] sm:$0xff] }
0x2173   :  { %3083 = vmatpush.msrb.mxu1 %v3080_v46  ;;  %v3058_v46 = vsub.f32 %v4978_v39, %v3042_v54  ;;  %v3075_v53 = vadd.f32 %v3059_v12, %v3013_v61  ;;  %v3036_v39 = vmul.f32 3.0, %v4760_v15  ;;  %v3053_v43 = vsub.f32 %v3799_v19, %v3037_v63 }
0x2174   :  { %v3070_v47 = vadd.f32 %v3054_v0, %v2998_v60  ;;  %v3066_v19 = vadd.f32 %v3050_v22, %v4800_v21 }
0x2175   :  { %3084 = vmatpush.msrb.mxu1 %v3079_v18  ;;  %v3057_v18 = vsub.f32 %v3771_v30, %v3041_v42  ;;  %v3074_v58 = vadd.f32 %v3058_v46, %v3010_v29  ;;  %v3035_v30 = vmul.f32 3.0, %v4758_v4  ;;  %v3052_v59 = vsub.f32 %v4993_v35, %v3036_v39  ;;  %v5071_v35 = vld [vmem:[#allocation20_spill] sm:$0xff] }
0x2176   :  { %v3069_v10 = vadd.f32 %v3053_v43, %v4806_v27 }
0x2177   :  { %3085 = vmatpush.msrb.mxu1 %v3078_v8  ;;  %v3073_v13 = vadd.f32 %v3057_v18, %v3007_v23  ;;  %v3051_v62 = vsub.f32 %v3811_v56, %v3035_v30  ;;  %v3068_v15 = vadd.f32 %v3052_v59, %v4804_v41  ;;  %v5072_v56 = vld [vmem:[#allocation18_spill] sm:$0xff] }
0x2179   :  { %3086 = vmatpush.msrb.mxu1 %v3077_v14  ;;  %v3067_v4 = vadd.f32 %v3051_v62, %v4802_v3 }
0x217b   :  { %3087 = vmatpush.msrb.mxu1 %v3076_v9 }
0x217d   :  { %3088 = vmatpush.msrb.mxu1 %v3075_v53 }
0x217f   :  { %3089 = vmatpush.msrb.mxu1 %v3074_v58 }
0x2181   :  { %3090 = vmatpush.msrb.mxu1 %v3073_v13 }
0x2183   :  { %3091 = vmatpush.msrb.mxu1 %v3072_v44 }
0x2185   :  { %3092 = vmatpush.msrb.mxu1 %v3071_v57 }
0x2187   :  { %3093 = vmatpush.msrb.mxu1 %v3070_v47 }
0x2189   :  { %3094 = vmatpush.msrb.mxu1 %v3069_v10 }
0x218b   :  { %3095 = vmatpush.msrb.mxu1 %v3068_v15 }
0x218d   :  { %3096 = vmatpush.msrb.mxu1 %v3067_v4 }
0x218f   :  { %3097 = vmatpush.msrb.mxu1 %v3066_v19 }
0x2190   :  { %3098 = vmatmul.f32.vlgmr.msrb.gmra.mxu1 %v4692_v55  ;;  %v5079_v55 = vld [vmem:[#allocation16_spill] sm:$0xff] }
0x2198   :  { %3101 = vmatmul.f32.gmra.mxu1 %v4694_v25  ;;  %v5080_v25 = vld [vmem:[#allocation15_spill] sm:$0xff] }
0x21a0   :  { %3104 = vmatmul.f32.gmra.mxu1 %v4696_v20  ;;  %v5081_v20 = vld [vmem:[#allocation21_spill] sm:$0xff] }
0x21a8   :  { %3107 = vmatmul.f32.gmra.mxu1 %v5071_v35 }
0x21b0   :  { %3110 = vmatmul.f32.gmra.mxu1 %v5072_v56 }
0x21b8   :  { %3113 = vmatmul.f32.gmra.mxu1 %v5073_v36 }
0x21c0   :  { %3116 = vmatmul.f32.gmra.mxu1 %v5074_v33 }
0x21c8   :  { %3119 = vmatmul.f32.gmra.mxu1 %v5075_v52 }
0x21d0   :  { %3122 = vmatmul.f32.gmra.mxu1 %v5076_v1 }
0x21d8   :  { %3125 = vmatmul.f32.gmra.mxu1 %v5077_v28 }
0x21e0   :  { %3128 = vmatmul.f32.gmra.mxu1 %v5078_v31 }
0x21e8   :  { %3131 = vmatmul.f32.gmra.mxu1 %v5079_v55 }
0x21f0   :  { %3134 = vmatmul.f32.gmra.mxu1 %v5080_v25 }
0x21f8   :  { %3137 = vmatmul.f32.gmra.mxu1 %v5081_v20 }
0x2200   :  { %3140 = vmatmul.f32.gmra.mxu1 %v5082_v26 }
0x2208   :  { %3143 = vmatmul.f32.gmra.mxu1 %v5083_v16 }
0x220d   :  { %v3099_v21 = vpop.f32.mrf.mxu1 }
0x2215   :  { %v3102_v3 = vpop.f32.mrf.mxu1 }
0x221d   :  { %v3105_v41 = vpop.f32.mrf.mxu1 }
0x2225   :  { %v3108_v27 = vpop.f32.mrf.mxu1 }
0x222d   :  { %v3111_v60 = vpop.f32.mrf.mxu1 }
0x222e   :  { %v3147_v40 = vadd.f32 %v3111_v60, %v3099_v21 }
0x2235   :  { %v3114_v48 = vpop.f32.mrf.mxu1 }
0x2236   :  { %v3148_v11 = vadd.f32 %v3114_v48, %v3102_v3 }
0x223d   :  { %v3117_v37 = vpop.f32.mrf.mxu1 }
0x223e   :  { %v3149_v5 = vadd.f32 %v3117_v37, %v3105_v41 }
0x2245   :  { %v3120_v23 = vpop.f32.mrf.mxu1 }
0x2246   :  { %v3150_v9 = vadd.f32 %v3120_v23, %v3108_v27 }
0x224d   :  { %v3123_v29 = vpop.f32.mrf.mxu1 }
0x224e   :  { %v3151_v7 = vadd.f32 %v3147_v40, %v3123_v29 }
0x2255   :  { %v3126_v61 = vpop.f32.mrf.mxu1 }
0x2256   :  { %v3152_v2 = vadd.f32 %v3148_v11, %v3126_v61 }
0x225d   :  { %v3129_v32 = vpop.f32.mrf.mxu1 }
0x225e   :  { %v3153_v14 = vadd.f32 %v3149_v5, %v3129_v32 }
0x2265   :  { %v3132_v51 = vpop.f32.mrf.mxu1 }
0x2266   :  { %v3154_v6 = vadd.f32 %v3150_v9, %v3132_v51 }
0x226d   :  { %v3135_v17 = vpop.f32.mrf.mxu1 }
0x226e   :  { %v3155_v50 = vadd.f32 %v3151_v7, %v3135_v17 }
0x2270   :  { %3159 = vst [vmem:[#allocation8] sm:$0xff] %v3155_v50 }
0x2275   :  { %v3138_v8 = vpop.f32.mrf.mxu1 }
0x2276   :  { %v3156_v54 = vadd.f32 %v3152_v2, %v3138_v8 }
0x2278   :  { %3160 = vst [vmem:[#allocation8 + $0x8] sm:$0xff] %v3156_v54 }
0x227d   :  { %v3141_v42 = vpop.f32.mrf.mxu1 }
0x227e   :  { %v3157_v12 = vadd.f32 %v3153_v14, %v3141_v42 }
0x2280   :  { %3161 = vst [vmem:[#allocation8 + $0x10] sm:$0xff] %v3157_v12 }
0x2285   :  { %v3144_v46 = vpop.f32.mrf.mxu1 }
0x2286   :  { %v3158_v53 = vadd.f32 %v3154_v6, %v3144_v46 }
0x2288   :  { %3162 = vst [vmem:[#allocation8 + $0x18] sm:$0xff] %v3158_v53 }
0x2289   :  { %3175 = dma.vmem_to_hbm [thread:$0]  %s3168_s7, 512, %s3170_s10, [#allocation7], %s3398_s11, %s3398_s11, %s3399_s12  }
0x228a   :  { %3395 = dma.done.wait [#allocation7], 512  }
0x228b   :  { %3396 = vsyncadd [#allocation7], 4294966784 }
0x228c   :  { %3180 = vsyncpa [#allocation6], 1 }
0x228d   :  { %3181 = vsyncpa [#allocation7], 1 }

</bundles_post_ra>
